<compile_context>
chip_gen: v5e
topology: v5e:2x2
jax: 0.10.0
libtpu: 0.0.40
codegen_flags: <defaults>
</compile_context>

<pallas_src>
import functools

import jax
import jax.numpy as jnp
import numpy as np
from jax.experimental import pallas as pl
from jax.experimental.pallas import tpu as pltpu

CHANNEL = 32
KERNELS = (1, 2, 4, 8)              # branch kernel sizes (PyTorch default)
IN_DIM = 768
OUT_DIM = len(KERNELS) * CHANNEL    # 128 output channels, lane groups [k1|k2|k4|k8]
MAX_K = max(KERNELS)                # 8 taps
NSLAB = 5                           # packed weight slabs (640 cols vs naive 1024)
NCOL = NSLAB * OUT_DIM              # 640
BN_EPS = 1e-5
NEG = -1e30

# (slab, lane_group, branch, tap) placements for the 640-column packing.
#   slab 0: time shift 0 for all lanes  -> tap 0 of every branch
#   slab 1: time shift 1 for all lanes  -> tap 1 of branches with k >= 2
#   slab s>=2: shift 2s-2 for lanes<64, 2s-1 for lanes>=64; the kernel folds the
#              lower 64 lanes onto the upper 64 (k=4 / k=8 output channels) with
#              a self-inverse 64-lane rotation + masked add.
_PLACEMENTS = (
    (0, 0, 0, 0), (0, 1, 1, 0), (0, 2, 2, 0), (0, 3, 3, 0),
    (1, 1, 1, 1), (1, 2, 2, 1), (1, 3, 3, 1),
    (2, 0, 2, 2), (2, 2, 2, 3), (2, 1, 3, 2), (2, 3, 3, 3),
    (3, 1, 3, 4), (3, 3, 3, 5),
    (4, 1, 3, 6), (4, 3, 3, 7),
)


def fast_text_cnn_kernel(x_ref, w_ref, bias_ref, mask_ref, out_ref, y_ref):
    # x_ref:    (bT, Lp, 768)      f32  one batch tile (NLC layout, 768 on lanes)
    # w_ref:    (768, 640)         bf16 packed tap weights (BN scale folded in)
    # bias_ref: (1, 128)           f32  folded conv bias + BN offset
    # mask_ref: (Lp, 128)          f32  0 at valid conv positions, -1e30 elsewhere
    # out_ref:  (bT, 128)          f32
    # y_ref:    (bT*Lp + 8, 640)   f32  VMEM scratch (matmul result + zero tail)
    bT, Lp, cin = x_ref.shape
    rows = bT * Lp

    # In-kernel f32 -> bf16 cast: x is DMA'd exactly once as f32 (no wrapper
    # convert pass -> no extra HBM round trip).
    x_bf = x_ref[...].reshape(rows, cin).astype(jnp.bfloat16)

    # One fused MXU pass over all packed (branch, tap) columns, written straight
    # into a zero-tailed VMEM scratch so the per-tap time shifts below are plain
    # static ref slices (no concatenate copy of the whole slab).
    y_ref[0:rows, :] = jnp.dot(x_bf, w_ref[...], preferred_element_type=jnp.float32)
    y_ref[rows:rows + MAX_K, :] = jnp.zeros((MAX_K, NCOL), jnp.float32)

    lane = jax.lax.broadcasted_iota(jnp.int32, (rows, OUT_DIM), 1)
    hi64 = lane >= 64

    # Slabs 0/1 (shifts 0/1) are already in output channel order: add directly.
    acc = y_ref[0:rows, 0:OUT_DIM] + y_ref[1:1 + rows, OUT_DIM:2 * OUT_DIM]

    # Slabs 2..4: two shifts per slab (base for lanes<64, base+1 for lanes>=64);
    # fold the lower half onto the upper half (k=4 / k=8 channels) with a
    # 64-lane rotation (self-inverse on 128 lanes, so direction-independent)
    # followed by a masked add.  Rows shifted past a sequence end / the tile end
    # only ever feed zero-weight columns or -1e30-masked time positions.
    for s in range(2, NSLAB):
        base = 2 * s - 2
        c0 = s * OUT_DIM
        lo = y_ref[base:base + rows, c0:c0 + OUT_DIM]          # shift = base
        hi = y_ref[base + 1:base + 1 + rows, c0:c0 + OUT_DIM]  # shift = base + 1
        sel = jnp.where(hi64, hi, lo)
        comb = sel + pltpu.roll(sel, shift=64, axis=1)
        acc = acc + jnp.where(hi64, comb, 0.0)

    # AdaptiveMaxPool1d(1): lane-dense masked max over the time axis.
    acc = acc.reshape(bT, Lp, OUT_DIM) + mask_ref[...][None, :, :]
    pooled = jnp.max(acc, axis=1)                              # (bT, 128)

    # Folded conv-bias + BN offset, then ReLU (both monotone => commute with max).
    out_ref[...] = jnp.maximum(pooled + bias_ref[...], 0.0).astype(out_ref.dtype)


def _pick_batch_tile(B, Lp, max_rows=2048):
    """Pick bT: divides B, multiple of 8 (output sublane rule), bT*Lp <= max_rows,
    and prefer >= 2 grid steps so the 'parallel' axis can shard across the two
    TensorCores on v7x."""
    cands = [bt for bt in range(8, B + 1, 8) if B % bt == 0 and bt * Lp <= max_rows]
    if not cands:
        # Fallback: single tile (fine for small B; large awkward B should be padded).
        return B
    two_step = [bt for bt in cands if B // bt >= 2]
    return max(two_step) if two_step else max(cands)


@functools.partial(jax.jit, static_argnames=("batch_tile",))
def fast_text_cnn(x, w_fused, bias_vec, time_mask, *, batch_tile=None):
    """x: (B, L, 768) f32 -> (B, 128) f32  (4x Conv1d+BN(eval)+ReLU+MaxPool, concat)."""
    B, L, cin = x.shape
    assert cin == IN_DIM, f"expected {IN_DIM} input channels, got {cin}"
    assert L >= MAX_K, f"sequence length must be >= {MAX_K}"
    Lp = time_mask.shape[0]                      # time axis padded to a multiple of 8
    assert Lp % 8 == 0 and Lp >= L
    if Lp > L:
        x = jnp.pad(x, ((0, 0), (0, Lp - L), (0, 0)))   # padded rows are masked

    bT = _pick_batch_tile(B, Lp) if batch_tile is None else batch_tile
    assert B % bT == 0 and (bT == B or bT % 8 == 0), (B, bT)

    return pl.pallas_call(
        fast_text_cnn_kernel,
        out_shape=jax.ShapeDtypeStruct((B, OUT_DIM), jnp.float32),
        grid_spec=pltpu.PrefetchScalarGridSpec(
            num_scalar_prefetch=0,
            grid=(B // bT,),
            in_specs=[
                pl.BlockSpec((bT, Lp, IN_DIM), lambda i: (i, 0, 0)),  # x (f32)
                pl.BlockSpec((IN_DIM, NCOL), lambda i: (0, 0)),       # packed W
                pl.BlockSpec((1, OUT_DIM), lambda i: (0, 0)),         # bias
                pl.BlockSpec((Lp, OUT_DIM), lambda i: (0, 0)),        # time mask
            ],
            out_specs=pl.BlockSpec((bT, OUT_DIM), lambda i: (i, 0)),
            scratch_shapes=[pltpu.VMEM((bT * Lp + MAX_K, NCOL), jnp.float32)],
        ),
        compiler_params=pltpu.CompilerParams(
            dimension_semantics=("parallel",),
            vmem_limit_bytes=48 * 1024 * 1024,
        ),
    )(x, w_fused, bias_vec, time_mask)


def build_fused_params(ws, scales, biases):
    """Fold eval-mode BN + conv bias and pack all 15 (branch, tap) weight slabs
    into one (768, 640) bf16 matrix (25% zero padding vs 53% in the naive
    1024-column tap-major layout).

    ws:     list of (k, 768, 32) conv weights, one per branch in KERNELS order
    scales: (4, 32)  gamma / sqrt(running_var + eps)
    biases: (4, 32)  (conv_bias - running_mean) * scale + beta
    """
    scales_np = np.asarray(scales, np.float32)
    w_fused = np.zeros((IN_DIM, NCOL), np.float32)
    for slab, group, branch, tap in _PLACEMENTS:
        w_scaled = np.asarray(ws[branch], np.float32) * scales_np[branch][None, None, :]
        col = slab * OUT_DIM + group * CHANNEL
        w_fused[:, col:col + CHANNEL] = w_scaled[tap]
    bias_vec = np.asarray(biases, np.float32).reshape(1, OUT_DIM)
    return jnp.asarray(w_fused, jnp.bfloat16), jnp.asarray(bias_vec)


def build_time_mask(L):
    """(Lp, 128) additive mask (Lp = L rounded up to 8): 0 where time t is a valid
    conv output for the lane's branch (t < L - k + 1), -1e30 otherwise."""
    Lp = ((L + 7) // 8) * 8
    t = np.arange(Lp)[:, None]
    k_lane = np.repeat(np.asarray(KERNELS, np.int64), CHANNEL)[None, :]
    valid = t < (L - k_lane + 1)
    return jnp.asarray(np.where(valid, 0.0, NEG).astype(np.float32))


def reference_folded(x, ws_scaled, bias_rows):
    """Pure-JAX reference: conv (BN scale pre-folded into weights) + bias + ReLU + max.
    Mathematically identical to PyTorch eval-mode Conv1d->BN->ReLU->MaxPool."""
    outs = []
    L = x.shape[1]
    for i, (k, w) in enumerate(zip(KERNELS, ws_scaled)):
        lout = L - k + 1
        y = jnp.zeros((x.shape[0], lout, CHANNEL), jnp.float32)
        for j in range(k):
            y = y + jnp.einsum('blc,co->blo', x[:, j:j + lout, :], w[j])
        z = jnp.maximum(y + bias_rows[i][None, None, :], 0.0)
        outs.append(jnp.max(z, axis=1))
    return jnp.concatenate(outs, axis=-1)


if __name__ == "__main__":
    key = jax.random.PRNGKey(0)
    B, L = 16, 16                 # small demo; picker -> batch_tile=8, grid=(2,)
    keys = jax.random.split(key, 17)

    x = jax.random.normal(keys[0], (B, L, IN_DIM), jnp.float32)

    ws, scale_rows, bias_rows = [], [], []
    for i, k in enumerate(KERNELS):
        w = 0.02 * jax.random.normal(keys[1 + i], (k, IN_DIM, CHANNEL), jnp.float32)
        conv_b = 0.1 * jax.random.normal(keys[5 + i], (CHANNEL,), jnp.float32)
        gamma = 1.0 + 0.1 * jax.random.normal(keys[9 + i], (CHANNEL,), jnp.float32)
        beta = 0.1 * jax.random.normal(keys[13 + i], (CHANNEL,), jnp.float32)
        run_mean = jnp.zeros((CHANNEL,), jnp.float32)
        run_var = jnp.ones((CHANNEL,), jnp.float32)
        # BN(conv(x)+b) = conv(x)*s + ((b - mean)*s + beta), s = gamma/sqrt(var+eps)
        s = gamma / jnp.sqrt(run_var + BN_EPS)
        b = (conv_b - run_mean) * s + beta
        ws.append(w)
        scale_rows.append(s)
        bias_rows.append(b)

    scales = jnp.stack(scale_rows)   # (4, 32)
    biases = jnp.stack(bias_rows)    # (4, 32)

    w_fused, bias_vec = build_fused_params(ws, scales, biases)
    time_mask = build_time_mask(L)

    out = fast_text_cnn(x, w_fused, bias_vec, time_mask)
    jax.block_until_ready(out)
    assert out.shape == (B, OUT_DIM)

    # (1) Tight check vs. a reference using the same bf16 MXU input precision.
    x_bf = x.astype(jnp.bfloat16).astype(jnp.float32)
    ws_scaled_bf = [(w * s[None, None, :]).astype(jnp.bfloat16).astype(jnp.float32)
                    for w, s in zip(ws, scale_rows)]
    ref_bf = reference_folded(x_bf, ws_scaled_bf, bias_rows)
    np.testing.assert_allclose(np.asarray(out), np.asarray(ref_bf),
                               rtol=2e-3, atol=2e-3)

    # (2) Loose check vs. exact f32 PyTorch eval-mode semantics (bf16 rounding slack).
    ws_scaled = [w * s[None, None, :] for w, s in zip(ws, scale_rows)]
    ref_f32 = reference_folded(x, ws_scaled, bias_rows)
    np.testing.assert_allclose(np.asarray(out), np.asarray(ref_f32),
                               rtol=5e-2, atol=5e-2)

    print("KERNEL_OK")
</pallas_src>

<mosaic_0001>
module attributes {stable_mosaic.version = 11 : i64} {
  func.func @fast_text_cnn_kernel(%arg0: i32, %arg1: memref<8x16x768xf32, #tpu.memory_space<vmem>>, %arg2: memref<768x640xbf16, #tpu.memory_space<vmem>>, %arg3: memref<1x128xf32, #tpu.memory_space<vmem>>, %arg4: memref<16x128xf32, #tpu.memory_space<vmem>>, %arg5: memref<8x128xf32, #tpu.memory_space<vmem>>, %arg6: memref<136x640xf32, #tpu.memory_space<vmem>>) attributes {dimension_semantics = [#tpu.dimension_semantics<parallel>], iteration_bounds = array<i64: 2>, scalar_prefetch = 0 : i64, scratch_operands = 1 : i64, tpu.core_type = #tpu.core_type<tc>, window_params = [{transform_indices = @transform_0, window_bounds = array<i64: 8, 16, 768>}, {pipeline_mode = #tpu.pipeline_mode<synchronous>, transform_indices = @transform_1, window_bounds = array<i64: 768, 640>}, {pipeline_mode = #tpu.pipeline_mode<synchronous>, transform_indices = @transform_2, window_bounds = array<i64: 1, 128>}, {pipeline_mode = #tpu.pipeline_mode<synchronous>, transform_indices = @transform_3, window_bounds = array<i64: 16, 128>}, {transform_indices = @transform_4, window_bounds = array<i64: 8, 128>}]} {
    %c0 = arith.constant 0 : index
    %c0_0 = arith.constant 0 : index
    %c0_1 = arith.constant 0 : index
    %0 = vector.load %arg1[%c0, %c0_0, %c0_1] : memref<8x16x768xf32, #tpu.memory_space<vmem>>, vector<8x16x768xf32>
    %1 = vector.shape_cast %0 : vector<8x16x768xf32> to vector<128x768xf32>
    %2 = arith.truncf %1 : vector<128x768xf32> to vector<128x768xbf16>
    %c0_2 = arith.constant 0 : index
    %c0_3 = arith.constant 0 : index
    %3 = vector.load %arg2[%c0_2, %c0_3] : memref<768x640xbf16, #tpu.memory_space<vmem>>, vector<768x640xbf16>
    %cst = arith.constant dense<0.000000e+00> : vector<128x640xf32>
    %4 = tpu.matmul %2, %3, %cst {dimension_numbers = #tpu.dot_dimension_numbers<[1], [0], [0], [1], [0, 0, 1, 1], [], []>} : vector<128x768xbf16>, vector<768x640xbf16>, vector<128x640xf32> -> vector<128x640xf32>
    %c0_4 = arith.constant 0 : index
    %c0_5 = arith.constant 0 : index
    %5 = vector.load %arg6[%c0_4, %c0_5] : memref<136x640xf32, #tpu.memory_space<vmem>>, vector<128x640xf32>
    tpu.vector_store %arg6[%c0_4, %c0_5], %4 {strides = array<i32>} : memref<136x640xf32, #tpu.memory_space<vmem>>, vector<128x640xf32>,
    %cst_6 = arith.constant 0.000000e+00 : f32
    %6 = vector.broadcast %cst_6 : f32 to vector<8x640xf32>
    %c128 = arith.constant 128 : index
    %c0_7 = arith.constant 0 : index
    %7 = vector.load %arg6[%c128, %c0_7] : memref<136x640xf32, #tpu.memory_space<vmem>>, vector<8x640xf32>
    tpu.vector_store %arg6[%c128, %c0_7], %6 {strides = array<i32>} : memref<136x640xf32, #tpu.memory_space<vmem>>, vector<8x640xf32>,
    %8 = tpu.iota {dimensions = array<i32: 1>} : vector<128x128xi32>
    %c64_i32 = arith.constant 64 : i32
    %9 = vector.broadcast %c64_i32 : i32 to vector<128x128xi32>
    %10 = arith.cmpi sge, %8, %9 : vector<128x128xi32>
    %c0_8 = arith.constant 0 : index
    %c0_9 = arith.constant 0 : index
    %11 = vector.load %arg6[%c0_8, %c0_9] : memref<136x640xf32, #tpu.memory_space<vmem>>, vector<128x128xf32>
    %c1 = arith.constant 1 : index
    %c128_10 = arith.constant 128 : index
    %12 = vector.load %arg6[%c1, %c128_10] : memref<136x640xf32, #tpu.memory_space<vmem>>, vector<128x128xf32>
    %13 = arith.addf %11, %12 : vector<128x128xf32>
    %c2 = arith.constant 2 : index
    %c256 = arith.constant 256 : index
    %14 = vector.load %arg6[%c2, %c256] : memref<136x640xf32, #tpu.memory_space<vmem>>, vector<128x128xf32>
    %c3 = arith.constant 3 : index
    %c256_11 = arith.constant 256 : index
    %15 = vector.load %arg6[%c3, %c256_11] : memref<136x640xf32, #tpu.memory_space<vmem>>, vector<128x128xf32>
    %16 = arith.select %10, %15, %14 : vector<128x128xi1>, vector<128x128xf32>
    %c64_i32_12 = arith.constant 64 : i32
    %17 = tpu.dynamic_rotate %16 by %c64_i32_12 dim 1 : vector<128x128xf32>, i32 -> vector<128x128xf32>
    %18 = arith.addf %16, %17 : vector<128x128xf32>
    %cst_13 = arith.constant 0.000000e+00 : f32
    %19 = vector.broadcast %cst_13 : f32 to vector<128x128xf32>
    %20 = arith.select %10, %18, %19 : vector<128x128xi1>, vector<128x128xf32>
    %21 = arith.addf %13, %20 : vector<128x128xf32>
    %c4 = arith.constant 4 : index
    %c384 = arith.constant 384 : index
    %22 = vector.load %arg6[%c4, %c384] : memref<136x640xf32, #tpu.memory_space<vmem>>, vector<128x128xf32>
    %c5 = arith.constant 5 : index
    %c384_14 = arith.constant 384 : index
    %23 = vector.load %arg6[%c5, %c384_14] : memref<136x640xf32, #tpu.memory_space<vmem>>, vector<128x128xf32>
    %24 = arith.select %10, %23, %22 : vector<128x128xi1>, vector<128x128xf32>
    %c64_i32_15 = arith.constant 64 : i32
    %25 = tpu.dynamic_rotate %24 by %c64_i32_15 dim 1 : vector<128x128xf32>, i32 -> vector<128x128xf32>
    %26 = arith.addf %24, %25 : vector<128x128xf32>
    %cst_16 = arith.constant 0.000000e+00 : f32
    %27 = vector.broadcast %cst_16 : f32 to vector<128x128xf32>
    %28 = arith.select %10, %26, %27 : vector<128x128xi1>, vector<128x128xf32>
    %29 = arith.addf %21, %28 : vector<128x128xf32>
    %c6 = arith.constant 6 : index
    %c512 = arith.constant 512 : index
    %30 = vector.load %arg6[%c6, %c512] : memref<136x640xf32, #tpu.memory_space<vmem>>, vector<128x128xf32>
    %c7 = arith.constant 7 : index
    %c512_17 = arith.constant 512 : index
    %31 = vector.load %arg6[%c7, %c512_17] : memref<136x640xf32, #tpu.memory_space<vmem>>, vector<128x128xf32>
    %32 = arith.select %10, %31, %30 : vector<128x128xi1>, vector<128x128xf32>
    %c64_i32_18 = arith.constant 64 : i32
    %33 = tpu.dynamic_rotate %32 by %c64_i32_18 dim 1 : vector<128x128xf32>, i32 -> vector<128x128xf32>
    %34 = arith.addf %32, %33 : vector<128x128xf32>
    %cst_19 = arith.constant 0.000000e+00 : f32
    %35 = vector.broadcast %cst_19 : f32 to vector<128x128xf32>
    %36 = arith.select %10, %34, %35 : vector<128x128xi1>, vector<128x128xf32>
    %37 = arith.addf %29, %36 : vector<128x128xf32>
    %38 = vector.shape_cast %37 : vector<128x128xf32> to vector<8x16x128xf32>
    %c0_20 = arith.constant 0 : index
    %c0_21 = arith.constant 0 : index
    %39 = vector.load %arg4[%c0_20, %c0_21] : memref<16x128xf32, #tpu.memory_space<vmem>>, vector<16x128xf32>
    %40 = vector.shape_cast %39 : vector<16x128xf32> to vector<1x16x128xf32>
    %41 = vector.broadcast %40 : vector<1x16x128xf32> to vector<8x16x128xf32>
    %42 = arith.addf %38, %41 : vector<8x16x128xf32>
    %cst_22 = arith.constant dense<0xFF800000> : vector<8x128xf32>
    %43 = vector.multi_reduction <maximumf>, %42, %cst_22 [1] : vector<8x16x128xf32> to vector<8x128xf32>
    %c0_23 = arith.constant 0 : index
    %c0_24 = arith.constant 0 : index
    %44 = vector.load %arg3[%c0_23, %c0_24] : memref<1x128xf32, #tpu.memory_space<vmem>>, vector<1x128xf32>
    %45 = vector.broadcast %44 : vector<1x128xf32> to vector<8x128xf32>
    %46 = arith.addf %43, %45 : vector<8x128xf32>
    %cst_25 = arith.constant 0.000000e+00 : f32
    %47 = vector.broadcast %cst_25 : f32 to vector<8x128xf32>
    %48 = arith.maximumf %46, %47 : vector<8x128xf32>
    %c0_26 = arith.constant 0 : index
    %c0_27 = arith.constant 0 : index
    %49 = vector.load %arg5[%c0_26, %c0_27] : memref<8x128xf32, #tpu.memory_space<vmem>>, vector<8x128xf32>
    tpu.vector_store %arg5[%c0_26, %c0_27], %48 {strides = array<i32>} : memref<8x128xf32, #tpu.memory_space<vmem>>, vector<8x128xf32>,
    return
  }
  func.func @transform_0(%arg0: i32) -> (i32, i32, i32) {
    %c0_i32 = arith.constant 0 : i32
    %c0_i32_0 = arith.constant 0 : i32
    %c0_i32_1 = arith.constant 0 : i32
    return %arg0, %c0_i32, %c0_i32_0 : i32, i32, i32
  }
  func.func @transform_1(%arg0: i32) -> (i32, i32) {
    %c0_i32 = arith.constant 0 : i32
    %c0_i32_0 = arith.constant 0 : i32
    %c0_i32_1 = arith.constant 0 : i32
    return %c0_i32, %c0_i32_0 : i32, i32
  }
  func.func @transform_2(%arg0: i32) -> (i32, i32) {
    %c0_i32 = arith.constant 0 : i32
    %c0_i32_0 = arith.constant 0 : i32
    %c0_i32_1 = arith.constant 0 : i32
    return %c0_i32, %c0_i32_0 : i32, i32
  }
  func.func @transform_3(%arg0: i32) -> (i32, i32) {
    %c0_i32 = arith.constant 0 : i32
    %c0_i32_0 = arith.constant 0 : i32
    %c0_i32_1 = arith.constant 0 : i32
    return %c0_i32, %c0_i32_0 : i32, i32
  }
  func.func @transform_4(%arg0: i32) -> (i32, i32) {
    %c0_i32 = arith.constant 0 : i32
    %c0_i32_0 = arith.constant 0 : i32
    return %arg0, %c0_i32 : i32, i32
  }
}

</mosaic_0001>

<bundles_post_ra>
// kernel: fast_text_cnn.1
= control target key start
LH: loop header
LB: loop body
LE: loop exit
PB: predicated region body
PF: predicated region fallthrough
CT: control target
= control target key end

     0   :  { %9 = vsyncpa [#allocation4], 0  ;;  %s8286_s0 = inlined_call_operand.hbm [shape: f32[16,16,768], index: 0, kind: input, shape index: {}]   ;;  %s8287_s1 = inlined_call_operand.hbm [shape: bf16[768,640], index: 1, kind: input, shape index: {}]   ;;  %s8288_s2 = inlined_call_operand.vmem [shape: f32[1,128], index: 2, kind: input, shape index: {}]   ;;  %s8289_s3 = inlined_call_operand.hbm [shape: f32[16,128], index: 3, kind: input, shape index: {}]   ;;  %s8290_s4 = inlined_call_operand.hbm [shape: f32[16,128], index: 4, kind: output, shape index: {}]  }
   0x1   :  { %11 = vsyncpa [#allocation4 + $0x1], 0 }
   0x2   :  { %12 = vsyncpa [#allocation7], 0 }
   0x3   :  { %13 = vsyncpa [#allocation5], 0 }
   0x4   :  { %15 = vsyncpa [#allocation5 + $0x1], 0  ;;  %s6491_s15 = smov 0   ;;  %s6493_s16 = smov 0  }
   0x5   :  { %s6495_s17 = smov 0   ;;  %s6497_s18 = smov 0  }
   0x6 LB: > { %s6512_s19 = sadd.s32 4294967295, %s6454_s18   ;;  %s4983_s20 = sadd.s32 4294967294, %s6454_s18   ;;  %s6454_s18 = sphi %s6497_s18, %s8566_s18   ;;  %s6450_s17 = sphi %s6495_s17, %s8565_s17   ;;  %s6446_s16 = sphi %s6493_s16, %s8564_s16   ;;  %s6442_s15 = sphi %s6491_s15, %s8563_s15  }
   0x7   : > { %p41_p0 = scmp.ne.s32.totalorder %s6446_s16, %s6442_s15  ;;  %p42_p1 = scmp.eq.s32.totalorder %s6512_s19, 0 }
   0x8   : > { %p128_p2 = scmp.eq.s32.totalorder %s6512_s19, 1  ;;  %p134_p3 = scmp.eq.s32.totalorder %s4983_s20, 1 }
   0x9   : > { %p6521_p4 = por %p42_p1, %p41_p0  ;;  %p4984_p5 = scmp.ge.s32.totalorder %s6454_s18, 1 }
   0xa   : > { %p6526_p6 = por %p134_p3, %p41_p0  ;;  %p141_p7 = scmp.lt.s32.totalorder %s6454_s18, 3 }
   0xb   : > { %s152_s25 = sshll.u32 %s8287_s1, 4  ;;  %s6456_s27 = smov [#allocation6]   ;;  %s153_s25 = int_to_ptr.hbm [resolvable:$true] %s152_s25 }
   0xc   : > { %p6534_p8 = pnand %p4984_p5, %p141_p7  ;;  %s154_s28 = sshll.u32 %s6456_s27, 4  ;;  %s155_s28 = int_to_ptr.vmem [resolvable:$true] %s154_s28 }
   0xd   : > { %s169_s5 = sshll.u32 %s8289_s3, 4  ;;  %s6457_s6 = smov 320   ;;  %s170_s5 = int_to_ptr.hbm [resolvable:$true] %s169_s5 }
   0xe   : > { %p6230_p9 = pneg %p6534_p8  ;;  %s6458_s7 = smov 20  }
   0xf   : > { %s6459_s8 = smov [#allocation8]   ;;  %s6460_s10 = smov 128  }
  0x10   : > { %p6231_p10 = pnand %p6230_p9, %p42_p1  ;;  %s171_s9 = sshll.u32 %s6459_s8, 4  ;;  %s172_s9 = int_to_ptr.vmem [resolvable:$true] %s171_s9 }
  0x11   : > { %s6461_s11 = smov 8   ;;  %s6547_s12 = sadd.s32 1, %s6454_s18  }
  0x12   : > { %6233 = dma.hbm_to_vmem [thread:$0]  (!%p6231_p10), %s153_s25, 30720, %s155_s28, [#allocation7], %s6457_s6, %s6457_s6, %s6458_s7  }
  0x13   : > { %6236 = dma.hbm_to_vmem [thread:$0]  (!%p6231_p10), %s170_s5, 256, %s172_s9, [#allocation7], %s6460_s10, %s6460_s10, %s6461_s11  }
  0x14   : > { %s25_s13 = ssub.s32 %s6454_s18, %s6547_s12  ;;  %s28_s14 = sadd.s32 1, %s6450_s17 }
  0x15   : > { %p26_p12 = scmp.eq.s32.totalorder %s25_s13, 0  ;;  %p35_p13 = scmp.ne.s32.totalorder %s6450_s17, %s6446_s16 }
  0x16   : > { %p36_p0 = scmp.eq.s32.totalorder %s6454_s18, 0  ;;  %p6247_p7 = scmp.lt.s32.totalorder %s6454_s18, 2 }
  0x17   : > { %s6556_s20 = scalar_select %p26_p12, %s6450_s17, %s28_s14  }
  0x18   : > { %p37_p3 = por %p36_p0, %p35_p13  ;;  %p6560_p5 = por %p128_p2, %p35_p13 }
  0x19   : > { %s185_s24 = sand.u32 1, %s6450_s17   ;;  %s6216_s27 = smul.u32 768, %s6454_s18 }
  0x1a   : > { %s6215_s25 = smul.u32 768, %s185_s24  ;;  %p6567_p9 = pnand %p6247_p7, %p37_p3 }
  0x1b   : > { %s195_s5 = scalar_lea.hbm %s8286_s0, %s6216_s27  ;;  %s186_s9 = scalar_lea.sflag [#allocation4], %s185_s24 }
  0x1c   : > { %s189_s6 = scalar_lea.vmem [#allocation3], %s6215_s25  ;;  %s196_s8 = sshll.u32 %s195_s5, 4  ;;  %s197_s8 = int_to_ptr.hbm [resolvable:$true] %s196_s8 }
  0x1d   : > { %s198_s7 = sshll.u32 %s189_s6, 4  ;;  %s6354_s10 = sshra.s32 %s197_s8, 4  ;;  %s199_s7 = int_to_ptr.vmem [resolvable:$true] %s198_s7  ;;  %s6355_s10 = int_to_ptr.hbm [resolvable:$true] %s6354_s10 }
  0x1e   : > { %s6356_s11 = scalar_lea.hbm %s6355_s10, 768  ;;  %p6358_p10 = pneg %p6567_p9 }
  0x1f   : > { %p6357_p2 = scmp.ne.s32.totalorder %s6355_s10, %s6356_s11  ;;  %s6361_s29 = scalar_lea.hbm %s8286_s0, 1536 }
  0x20   : > { %p6362_p0 = scmp.lt.s32.totalorder %s6355_s10, %s8286_s0  ;;  %p6363_p3 = scmp.lt.s32.totalorder %s6361_s29, %s6356_s11 }
  0x21   : > { %p6359_p12 = pnand %p6358_p10, %p6357_p2 }
  0x22   : > { %p6364_p7 = por %p6363_p3, %p6362_p0 }
  0x23   : > { %p6360_p13 = pneg %p6359_p12 }
  0x25   : > { %p6365_p11 = pnand %p6364_p7, %p6360_p13 }
  0x27   : > { %6368 = shalt.err (!%p6365_p11)
}
  0x28   : > { %s6462_s24 = smov 768   ;;  %s6463_s25 = smov 48  }
  0x29   : > { %6240 = dma.hbm_to_vmem [thread:$0]  (!%p6567_p9), %s197_s8, 12288, %s199_s7, %s186_s9, %s6462_s24, %s6462_s24, %s6463_s25  }
  0x2a   : > { %210 = sbr.rel (%p6534_p8) target bundleno = 1340 (0x53c), region = 36 }
  0x2f   : > { %s6587_s5 = sand.u32 1, %s6446_s16  }
  0x30   : > { %s6217_s6 = smul.u32 768, %s6587_s5  ;;  %s213_s10 = scalar_lea.sflag [#allocation4], %s6587_s5 }
  0x32   : > { %s6591_s11 = scalar_lea.vmem [#allocation3], %s6217_s6 }
  0x33   : > { %6429 = dma.done.wait (%p6521_p4), %s213_s10, 12288  }
  0x34   : > { %6431 = vsyncadd (%p6521_p4), %s213_s10, 4294955008 }
  0x35   : > { %6433 = dma.done.wait (%p42_p1), [#allocation7], 30976  }
  0x36   : > { %6435 = vsyncadd (%p42_p1), [#allocation7], 4294936320  ;;  %v5137_v0 = vld [vmem:[#allocation6 + $0x118] sm:$0xf]  ;;  %v5996_v1 = vld [vmem:[#allocation6 + $0x128] sm:$0xf0] }
  0x37   : > { %v5297_v2 = vld [vmem:[#allocation6 + $0x258] sm:$0xf]  ;;  %v5138_v3 = vor.u32 %v5996_v1, %v5137_v0  ;;  %v6036_v4 = vld [vmem:[#allocation6 + $0x268] sm:$0xf0]  ;;  %v5117_v5 = vld [vmem:[#allocation6 + $0xf0] sm:$0xf] }
  0x38   : > { %v5991_v6 = vld [vmem:[#allocation6 + $0x100] sm:$0xf0]  ;;  %v5298_v7 = vor.u32 %v6036_v4, %v5297_v2  ;;  %v5277_v8 = vld [vmem:[#allocation6 + $0x230] sm:$0xf]  ;;  %v5097_v12 = vld [vmem:[#allocation6 + $0xc8] sm:$0xf] }
  0x39   : > { %v6031_v9 = vld [vmem:[#allocation6 + $0x240] sm:$0xf0]  ;;  %6199 = vmatpush.bf16.msra.mxu2 %v5138_v3  ;;  %1933 = vmatpush.bf16.msra.mxu0 %v5138_v3  ;;  %v5118_v10 = vor.u32 %v5991_v6, %v5117_v5  ;;  %v5986_v13 = vld [vmem:[#allocation6 + $0xd8] sm:$0xf0]  ;;  %v5257_v14 = vld [vmem:[#allocation6 + $0x208] sm:$0xf] }
  0x3a   : > { %6207 = vmatpush.bf16.msra.mxu3 %v5298_v7  ;;  %1982 = vmatpush.bf16.msra.mxu1 %v5298_v7  ;;  %v5278_v11 = vor.u32 %v6031_v9, %v5277_v8  ;;  %v6026_v15 = vld [vmem:[#allocation6 + $0x218] sm:$0xf0]  ;;  %v5098_v16 = vor.u32 %v5986_v13, %v5097_v12  ;;  %v5077_v18 = vld [vmem:[#allocation6 + $0xa0] sm:$0xf]  ;;  %v5981_v19 = vld [vmem:[#allocation6 + $0xb0] sm:$0xf0] }
  0x3b   : > { %v5258_v17 = vor.u32 %v6026_v15, %v5257_v14  ;;  %v5237_v20 = vld [vmem:[#allocation6 + $0x1e0] sm:$0xf]  ;;  %v6021_v21 = vld [vmem:[#allocation6 + $0x1f0] sm:$0xf0]  ;;  %v5078_v22 = vor.u32 %v5981_v19, %v5077_v18  ;;  %v5057_v24 = vld [vmem:[#allocation6 + $0x78] sm:$0xf] }
  0x3c   : > { %v5238_v23 = vor.u32 %v6021_v21, %v5237_v20  ;;  %v5976_v25 = vld [vmem:[#allocation6 + $0x88] sm:$0xf0]  ;;  %v5217_v26 = vld [vmem:[#allocation6 + $0x1b8] sm:$0xf]  ;;  %v5037_v30 = vld [vmem:[#allocation6 + $0x50] sm:$0xf] }
  0x3d   : > { %6200 = vmatpush.bf16.msra.mxu2 %v5118_v10  ;;  %1934 = vmatpush.bf16.msra.mxu0 %v5118_v10  ;;  %v6016_v27 = vld [vmem:[#allocation6 + $0x1c8] sm:$0xf0]  ;;  %v5058_v28 = vor.u32 %v5976_v25, %v5057_v24  ;;  %v5971_v31 = vld [vmem:[#allocation6 + $0x60] sm:$0xf0]  ;;  %v5197_v32 = vld [vmem:[#allocation6 + $0x190] sm:$0xf] }
  0x3e   : > { %6208 = vmatpush.bf16.msra.mxu3 %v5278_v11  ;;  %1983 = vmatpush.bf16.msra.mxu1 %v5278_v11  ;;  %v5218_v29 = vor.u32 %v6016_v27, %v5217_v26  ;;  %v6011_v33 = vld [vmem:[#allocation6 + $0x1a0] sm:$0xf0]  ;;  %v5038_v34 = vor.u32 %v5971_v31, %v5037_v30  ;;  %v5017_v36 = vld [vmem:[#allocation6 + $0x28] sm:$0xf]  ;;  %v5966_v37 = vld [vmem:[#allocation6 + $0x38] sm:$0xf0] }
  0x3f   : > { %v5198_v35 = vor.u32 %v6011_v33, %v5197_v32  ;;  %v5177_v38 = vld [vmem:[#allocation6 + $0x168] sm:$0xf]  ;;  %v6006_v39 = vld [vmem:[#allocation6 + $0x178] sm:$0xf0]  ;;  %v5018_v40 = vor.u32 %v5966_v37, %v5017_v36  ;;  %v4997_v41 = vld [vmem:[#allocation6] sm:$0xf] }
  0x40   : > { %v5178_v42 = vor.u32 %v6006_v39, %v5177_v38  ;;  %v5961_v43 = vld [vmem:[#allocation6 + $0x10] sm:$0xf0]  ;;  %v5157_v44 = vld [vmem:[#allocation6 + $0x140] sm:$0xf]  ;;  %v5457_v48 = vld [vmem:[#allocation6 + $0x398] sm:$0xf] }
  0x41   : > { %6201 = vmatpush.bf16.msra.mxu2 %v5098_v16  ;;  %1935 = vmatpush.bf16.msra.mxu0 %v5098_v16  ;;  %v6001_v45 = vld [vmem:[#allocation6 + $0x150] sm:$0xf0]  ;;  %v301_v46 = vld [vmem:[%s6591_s11 + $0x180] sm:$0xff]  ;;  %v6076_v49 = vld [vmem:[#allocation6 + $0x3a8] sm:$0xf0]  ;;  %v4998_v54 = vor.u32 %v5961_v43, %v4997_v41  ;;  %vm3643_vm1 = vcmask 1040384  }
  0x42   : > { %6209 = vmatpush.bf16.msra.mxu3 %v5258_v17  ;;  %1984 = vmatpush.bf16.msra.mxu1 %v5258_v17  ;;  %v307_v47 = vld [vmem:[%s6591_s11 + $0x1b0] sm:$0xff]  ;;  %v302_v50 = vld [vmem:[%s6591_s11 + $0x188] sm:$0xff]  ;;  %v308_v51 = vld [vmem:[%s6591_s11 + $0x1b8] sm:$0xff]  ;;  %v5158_v58 = vor.u32 %v6001_v45, %v5157_v44  ;;  %v5458_v62 = vor.u32 %v6076_v49, %v5457_v48  ;;  %vm3728_vm2 = vcmask 1044480   ;;  %s6465_s21 = smov 64   ;;  %vm3826_vm3 = vcmask 1042432  }
  0x43   : > { %v5617_v52 = vld [vmem:[#allocation6 + $0x4d8] sm:$0xf]  ;;  %v6116_v53 = vld [vmem:[#allocation6 + $0x4e8] sm:$0xf0]  ;;  %v253_v55 = vld [vmem:[%s6591_s11] sm:$0xff]  ;;  %v6609_v3 = vpack.c.bf16 %v307_v47, %v301_v46  ;;  %v6613_v8 = vpack.c.bf16 %v308_v51, %v302_v50  ;;  %vm3541_vm4 = vcmask 1046528  }
  0x44   : > { %v259_v56 = vld [vmem:[%s6591_s11 + $0x30] sm:$0xff]  ;;  %v254_v57 = vld [vmem:[%s6591_s11 + $0x8] sm:$0xff]  ;;  %v260_v59 = vld [vmem:[%s6591_s11 + $0x38] sm:$0xff]  ;;  %v5618_v63 = vor.u32 %v6116_v53, %v5617_v52  ;;  %vm4856_vm5 = vcmask 1041409   ;;  %vm4859_vm6 = vcmask 1042434   ;;  %vm4862_vm7 = vcmask 1043459  }
  0x45   : > { %6202 = vmatpush.bf16.msra.mxu2 %v5078_v22  ;;  %1936 = vmatpush.bf16.msra.mxu0 %v5078_v22  ;;  %v5437_v60 = vld [vmem:[#allocation6 + $0x370] sm:$0xf]  ;;  %v5777_v61 = vld [vmem:[#allocation6 + $0x618] sm:$0xf]  ;;  %v6156_v0 = vld [vmem:[#allocation6 + $0x628] sm:$0xf0]  ;;  %v6611_v4 = vpack.c.bf16 %v259_v56, %v253_v55  ;;  %v6615_v9 = vpack.c.bf16 %v260_v59, %v254_v57 }
  0x46   : > { %6210 = vmatpush.bf16.msra.mxu3 %v5238_v23  ;;  %1985 = vmatpush.bf16.msra.mxu1 %v5238_v23  ;;  %v5937_v1 = vld [vmem:[#allocation6 + $0x758] sm:$0xf]  ;;  %v6196_v2 = vld [vmem:[#allocation6 + $0x768] sm:$0xf0]  ;;  %8407 = vst [vmem:[#allocation13_spill] sm:$0xff] %v6609_v3  ;;  %v5778_v10 = vor.u32 %v6156_v0, %v5777_v61  ;;  %v313_v38 = vld [vmem:[%s6591_s11 + $0x1e0] sm:$0xff] }
  0x47   : > { %8408 = vst [vmem:[#allocation14_spill] sm:$0xff] %v6611_v4  ;;  %v6071_v5 = vld [vmem:[#allocation6 + $0x380] sm:$0xf0]  ;;  %v5597_v6 = vld [vmem:[#allocation6 + $0x4b0] sm:$0xf]  ;;  %v5938_v11 = vor.u32 %v6196_v2, %v5937_v1  ;;  %v314_v45 = vld [vmem:[%s6591_s11 + $0x1e8] sm:$0xff] }
  0x48   : > { %v6111_v7 = vld [vmem:[#allocation6 + $0x4c0] sm:$0xf0]  ;;  %8409 = vst [vmem:[#allocation15_spill] sm:$0xff] %v6613_v8  ;;  %v5417_v12 = vld [vmem:[#allocation6 + $0x348] sm:$0xf]  ;;  %v5438_v14 = vor.u32 %v6071_v5, %v5437_v60  ;;  %v319_v39 = vld [vmem:[%s6591_s11 + $0x210] sm:$0xff] }
  0x49   : > { %6203 = vmatpush.bf16.msra.mxu2 %v5058_v28  ;;  %1937 = vmatpush.bf16.msra.mxu0 %v5058_v28  ;;  %8410 = vst [vmem:[#allocation16_spill] sm:$0xff] %v6615_v9  ;;  %v5757_v13 = vld [vmem:[#allocation6 + $0x5f0] sm:$0xf]  ;;  %v5598_v15 = vor.u32 %v6111_v7, %v5597_v6  ;;  %v6151_v16 = vld [vmem:[#allocation6 + $0x600] sm:$0xf0]  ;;  %v320_v46 = vld [vmem:[%s6591_s11 + $0x218] sm:$0xff] }
  0x4a   : > { %6211 = vmatpush.bf16.msra.mxu3 %v5218_v29  ;;  %1986 = vmatpush.bf16.msra.mxu1 %v5218_v29  ;;  %v5917_v17 = vld [vmem:[#allocation6 + $0x730] sm:$0xf]  ;;  %v6191_v18 = vld [vmem:[#allocation6 + $0x740] sm:$0xf0]  ;;  %v6066_v19 = vld [vmem:[#allocation6 + $0x358] sm:$0xf0]  ;;  %v5758_v22 = vor.u32 %v6151_v16, %v5757_v13  ;;  %v6633_v6 = vpack.c.bf16 %v320_v46, %v314_v45 }
  0x4b   : > { %v5577_v20 = vld [vmem:[#allocation6 + $0x488] sm:$0xf]  ;;  %v6106_v21 = vld [vmem:[#allocation6 + $0x498] sm:$0xf0]  ;;  %v5918_v23 = vor.u32 %v6191_v18, %v5917_v17  ;;  %v5397_v24 = vld [vmem:[#allocation6 + $0x320] sm:$0xf]  ;;  %v5418_v26 = vor.u32 %v6066_v19, %v5417_v12 }
  0x4c   : > { %v5737_v25 = vld [vmem:[#allocation6 + $0x5c8] sm:$0xf]  ;;  %v5578_v27 = vor.u32 %v6106_v21, %v5577_v20  ;;  %v6146_v28 = vld [vmem:[#allocation6 + $0x5d8] sm:$0xf0]  ;;  %v6061_v31 = vld [vmem:[#allocation6 + $0x330] sm:$0xf0] }
  0x4d   : > { %6204 = vmatpush.bf16.msra.mxu2 %v5038_v34  ;;  %1938 = vmatpush.bf16.msra.mxu0 %v5038_v34  ;;  %v5897_v29 = vld [vmem:[#allocation6 + $0x708] sm:$0xf]  ;;  %v6186_v30 = vld [vmem:[#allocation6 + $0x718] sm:$0xf0]  ;;  %v5557_v32 = vld [vmem:[#allocation6 + $0x460] sm:$0xf]  ;;  %v5738_v34 = vor.u32 %v6146_v28, %v5737_v25 }
  0x4e   : > { %6212 = vmatpush.bf16.msra.mxu3 %v5198_v35  ;;  %1987 = vmatpush.bf16.msra.mxu1 %v5198_v35  ;;  %v6101_v33 = vld [vmem:[#allocation6 + $0x470] sm:$0xf0]  ;;  %v5898_v35 = vor.u32 %v6186_v30, %v5897_v29  ;;  %v5377_v36 = vld [vmem:[#allocation6 + $0x2f8] sm:$0xf]  ;;  %v5717_v37 = vld [vmem:[#allocation6 + $0x5a0] sm:$0xf] }
  0x4f   : > { %v5558_v41 = vor.u32 %v6101_v33, %v5557_v32  ;;  %v5877_v43 = vld [vmem:[#allocation6 + $0x6e0] sm:$0xf]  ;;  %v6181_v44 = vld [vmem:[#allocation6 + $0x6f0] sm:$0xf0]  ;;  %v6056_v47 = vld [vmem:[#allocation6 + $0x308] sm:$0xf0] }
  0x50   : > { %v5537_v48 = vld [vmem:[#allocation6 + $0x438] sm:$0xf]  ;;  %v6096_v49 = vld [vmem:[#allocation6 + $0x448] sm:$0xf0]  ;;  %v265_v50 = vld [vmem:[%s6591_s11 + $0x60] sm:$0xff]  ;;  %v5878_v55 = vor.u32 %v6181_v44, %v5877_v43  ;;  %8413 = vst [vmem:[#allocation19_spill] sm:$0xff] %v6633_v6 }
  0x51   : > { %6205 = vmatpush.bf16.msra.mxu2 %v5018_v40  ;;  %1939 = vmatpush.bf16.msra.mxu0 %v5018_v40  ;;  %v5398_v40 = vor.u32 %v6061_v31, %v5397_v24  ;;  %v271_v51 = vld [vmem:[%s6591_s11 + $0x90] sm:$0xff]  ;;  %v266_v52 = vld [vmem:[%s6591_s11 + $0x68] sm:$0xff]  ;;  %v272_v53 = vld [vmem:[%s6591_s11 + $0x98] sm:$0xff]  ;;  %v5538_v59 = vor.u32 %v6096_v49, %v5537_v48  ;;  %vm4865_vm8 = vcmask 1044484   ;;  %vm4868_vm9 = vcmask 1045509   ;;  %s4994_s7 = sshll.u32 %s6587_s5, 3 }
  0x52   : > { %6213 = vmatpush.bf16.msra.mxu3 %v5178_v42  ;;  %1988 = vmatpush.bf16.msra.mxu1 %v5178_v42  ;;  %v6141_v42 = vld [vmem:[#allocation6 + $0x5b0] sm:$0xf0]  ;;  %v5357_v56 = vld [vmem:[#allocation6 + $0x2d0] sm:$0xf]  ;;  %v5697_v57 = vld [vmem:[#allocation6 + $0x578] sm:$0xf]  ;;  %v6631_v0 = vpack.c.bf16 %v271_v51, %v265_v50  ;;  %v6635_v7 = vpack.c.bf16 %v272_v53, %v266_v52 }
  0x53   : > { %v6136_v60 = vld [vmem:[#allocation6 + $0x588] sm:$0xf0]  ;;  %v5857_v61 = vld [vmem:[#allocation6 + $0x6b8] sm:$0xf]  ;;  %v6051_v1 = vld [vmem:[#allocation6 + $0x2e0] sm:$0xf0] }
  0x54   : > { %8412 = vst [vmem:[#allocation18_spill] sm:$0xff] %v6631_v0  ;;  %v5517_v2 = vld [vmem:[#allocation6 + $0x410] sm:$0xf]  ;;  %v6091_v5 = vld [vmem:[#allocation6 + $0x420] sm:$0xf0]  ;;  %v5358_v12 = vor.u32 %v6051_v1, %v5357_v56  ;;  %v326_v44 = vld [vmem:[%s6591_s11 + $0x248] sm:$0xff] }
  0x55   : > { %6206 = vmatpush.bf16.msra.mxu2 %v4998_v54  ;;  %1940 = vmatpush.bf16.msra.mxu0 %v4998_v54  ;;  %v5718_v54 = vor.u32 %v6141_v42, %v5717_v37  ;;  %8414 = vst [vmem:[#allocation20_spill] sm:$0xff] %v6635_v7  ;;  %v5518_v13 = vor.u32 %v6091_v5, %v5517_v2  ;;  %v5497_v16 = vld [vmem:[#allocation6 + $0x3e8] sm:$0xf]  ;;  %v6086_v17 = vld [vmem:[#allocation6 + $0x3f8] sm:$0xf0]  ;;  %v325_v42 = vld [vmem:[%s6591_s11 + $0x240] sm:$0xff] }
  0x56   : > { %6214 = vmatpush.bf16.msra.mxu3 %v5158_v58  ;;  %1989 = vmatpush.bf16.msra.mxu1 %v5158_v58  ;;  %v5378_v58 = vor.u32 %v6056_v47, %v5377_v36  ;;  %v5677_v18 = vld [vmem:[#allocation6 + $0x550] sm:$0xf]  ;;  %v5498_v20 = vor.u32 %v6086_v17, %v5497_v16  ;;  %v6131_v21 = vld [vmem:[#allocation6 + $0x560] sm:$0xf0]  ;;  %v5477_v28 = vld [vmem:[#allocation6 + $0x3c0] sm:$0xf] }
  0x57   : > { %v5678_v24 = vor.u32 %v6131_v21, %v5677_v18  ;;  %v6081_v29 = vld [vmem:[#allocation6 + $0x3d0] sm:$0xf0]  ;;  %v5657_v30 = vld [vmem:[#allocation6 + $0x528] sm:$0xf]  ;;  %v6126_v31 = vld [vmem:[#allocation6 + $0x538] sm:$0xf0] }
  0x58   : > { %1961 = vmatmul.bf16.vlgmr.msra.gmra.mxu2 %v6609_v3  ;;  %1941 = vmatmul.bf16.vlgmr.msra.gmra.mxu0 %v6611_v4  ;;  %v5658_v32 = vor.u32 %v6126_v31, %v5657_v30  ;;  %v5817_v33 = vld [vmem:[#allocation6 + $0x668] sm:$0xf]  ;;  %v5478_v37 = vor.u32 %v6081_v29, %v5477_v28  ;;  %v331_v43 = vld [vmem:[%s6591_s11 + $0x270] sm:$0xff]  ;;  %v277_v45 = vld [vmem:[%s6591_s11 + $0xc0] sm:$0xff]  ;;  %s5956_s8 = sshll.u32 %s6512_s19, 3  ;;  %vm4871_vm10 = vcmask 1046534  }
  0x59   : > { %2031 = vmatpush.bf16.msrb.mxu2 %v5458_v62  ;;  %2010 = vmatmul.bf16.vlgmr.msra.gmra.mxu3 %v6613_v8  ;;  %v6176_v62 = vld [vmem:[#allocation6 + $0x6c8] sm:$0xf0]  ;;  %v283_v46 = vld [vmem:[%s6591_s11 + $0xf0] sm:$0xff]  ;;  %v332_v47 = vld [vmem:[%s6591_s11 + $0x278] sm:$0xff]  ;;  %v6649_v52 = vpack.c.bf16 %v331_v43, %v325_v42  ;;  %s4889_s14 = scalar_lea.hbm %s8290_s4, %s5956_s8  ;;  %s251_s29 = scalar_lea.vmem [#allocation9], %s4994_s7  ;;  %vm4874_vm11 = vcmask 1047559  }
  0x5a   : > { %2080 = vmatpush.bf16.msrb.mxu3 %v5618_v63  ;;  %1990 = vmatmul.bf16.vlgmr.msra.gmra.mxu1 %v6615_v9  ;;  %v6629_v63 = vpack.c.bf16 %v319_v39, %v313_v38  ;;  %v6121_v39 = vld [vmem:[#allocation6 + $0x510] sm:$0xf0]  ;;  %v278_v48 = vld [vmem:[%s6591_s11 + $0xc8] sm:$0xff]  ;;  %v284_v49 = vld [vmem:[%s6591_s11 + $0xf8] sm:$0xff]  ;;  %v6651_v53 = vpack.c.bf16 %v283_v46, %v277_v45  ;;  %s4891_s30 = sshll.u32 %s251_s29, 4  ;;  %s4893_s27 = sshll.u32 %s4889_s14, 4  ;;  %s4892_s30 = int_to_ptr.vmem [resolvable:$true] %s4891_s30  ;;  %s4894_s27 = int_to_ptr.hbm [resolvable:$true] %s4893_s27 }
  0x5b   : > { %2129 = vmatpush.bf16.msrb.mxu0 %v5778_v10  ;;  %2178 = vmatpush.bf16.msrb.mxu1 %v5938_v11  ;;  %v5698_v10 = vor.u32 %v6136_v60, %v5697_v57  ;;  %v5858_v11 = vor.u32 %v6176_v62, %v5857_v61  ;;  %8415 = vst [vmem:[#allocation21_spill] sm:$0xff] %v6649_v52  ;;  %v5994_v56 = vld [vmem:[#allocation6 + $0x11c] sm:$0xf]  ;;  %v5139_v57 = vld [vmem:[#allocation6 + $0x12c] sm:$0xf0]  ;;  %v290_v18 = vld [vmem:[%s6591_s11 + $0x128] sm:$0xff] }
  0x5c   : > { %8411 = vst [vmem:[#allocation17_spill] sm:$0xff] %v6629_v63  ;;  %v5299_v60 = vld [vmem:[#allocation6 + $0x26c] sm:$0xf0]  ;;  %v6074_v61 = vld [vmem:[#allocation6 + $0x39c] sm:$0xf]  ;;  %v258_v42 = vld [vmem:[%s6591_s11 + $0x28] sm:$0xff] }
  0x5d   : > { %2032 = vmatpush.bf16.msrb.mxu2 %v5438_v14  ;;  %v5337_v14 = vld [vmem:[#allocation6 + $0x2a8] sm:$0xf]  ;;  %8416 = vst [vmem:[#allocation22_spill] sm:$0xff] %v6651_v53  ;;  %v5459_v1 = vld [vmem:[#allocation6 + $0x3ac] sm:$0xf0]  ;;  %v344_v17 = vld [vmem:[%s6591_s11 + $0x2d8] sm:$0xff] }
  0x5e   : > { %2081 = vmatpush.bf16.msrb.mxu3 %v5598_v15  ;;  %v6046_v15 = vld [vmem:[#allocation6 + $0x2b8] sm:$0xf0]  ;;  %v5619_v5 = vld [vmem:[#allocation6 + $0x4ec] sm:$0xf0]  ;;  %v5279_v28 = vld [vmem:[#allocation6 + $0x244] sm:$0xf0] }
  0x5f   : > { %2130 = vmatpush.bf16.msrb.mxu0 %v5758_v22  ;;  %2179 = vmatpush.bf16.msrb.mxu1 %v5918_v23  ;;  %v5338_v19 = vor.u32 %v6046_v15, %v5337_v14  ;;  %v5837_v22 = vld [vmem:[#allocation6 + $0x690] sm:$0xf]  ;;  %v6171_v23 = vld [vmem:[#allocation6 + $0x6a0] sm:$0xf0]  ;;  %v6114_v2 = vld [vmem:[#allocation6 + $0x4dc] sm:$0xf] }
  0x60   : > { %v5838_v25 = vor.u32 %v6171_v23, %v5837_v22  ;;  %v338_v14 = vld [vmem:[%s6591_s11 + $0x2a8] sm:$0xff]  ;;  %v289_v15 = vld [vmem:[%s6591_s11 + $0x120] sm:$0xff]  ;;  %v295_v16 = vld [vmem:[%s6591_s11 + $0x150] sm:$0xff]  ;;  %s4879_s19 = scalar_lea.sflag [#allocation5], %s6587_s5  ;;  %s6398_s24 = sshra.s32 %s4894_s27, 4  ;;  %s6399_s24 = int_to_ptr.hbm [resolvable:$true] %s6398_s24 }
  0x61   : > { %2033 = vmatpush.bf16.msrb.mxu2 %v5418_v26  ;;  %v5317_v26 = vld [vmem:[#allocation6 + $0x280] sm:$0xf]  ;;  %v6671_v21 = vpack.c.bf16 %v295_v16, %v289_v15  ;;  %v6673_v22 = vpack.c.bf16 %v344_v17, %v338_v14  ;;  %v6069_v29 = vld [vmem:[#allocation6 + $0x374] sm:$0xf]  ;;  %v5439_v31 = vld [vmem:[#allocation6 + $0x384] sm:$0xf0]  ;;  %p6405_p11 = scmp.lt.s32.totalorder %s6399_s24, %s8290_s4 }
  0x62   : > { %2082 = vmatpush.bf16.msrb.mxu3 %v5578_v27  ;;  %v6041_v27 = vld [vmem:[#allocation6 + $0x290] sm:$0xf0]  ;;  %v264_v43 = vld [vmem:[%s6591_s11 + $0x58] sm:$0xff]  ;;  %v270_v14 = vld [vmem:[%s6591_s11 + $0x88] sm:$0xff]  ;;  %s6400_s25 = scalar_lea.hbm %s6399_s24, 8 }
  0x63   : > { %2131 = vmatpush.bf16.msrb.mxu0 %v5738_v34  ;;  %2180 = vmatpush.bf16.msrb.mxu1 %v5898_v35  ;;  %v6166_v34 = vld [vmem:[#allocation6 + $0x678] sm:$0xf0]  ;;  %v5637_v35 = vld [vmem:[#allocation6 + $0x500] sm:$0xf]  ;;  %v5318_v36 = vor.u32 %v6041_v27, %v5317_v26  ;;  %8420 = vst [vmem:[#allocation26_spill] sm:$0xff] %v6671_v21  ;;  %p6401_p1 = scmp.ne.s32.totalorder %s6399_s24, %s6400_s25 }
  0x64   : > { %v5818_v38 = vor.u32 %v6166_v34, %v5817_v33  ;;  %v5638_v50 = vor.u32 %v6121_v39, %v5637_v35  ;;  %8421 = vst [vmem:[#allocation27_spill] sm:$0xff] %v6673_v22  ;;  %v6029_v27 = vld [vmem:[#allocation6 + $0x234] sm:$0xf]  ;;  %v5599_v33 = vld [vmem:[#allocation6 + $0x4c4] sm:$0xf0]  ;;  %v5442_v34 = vor.u32 %v6069_v29, %v5439_v31  ;;  %v257_v39 = vld [vmem:[%s6591_s11 + $0x20] sm:$0xff] }
  0x65   : > { %2034 = vmatpush.bf16.msrb.mxu2 %v5398_v40  ;;  %v5797_v40 = vld [vmem:[#allocation6 + $0x640] sm:$0xf]  ;;  %v5282_v30 = vor.u32 %v6029_v27, %v5279_v28  ;;  %v276_v15 = vld [vmem:[%s6591_s11 + $0xb8] sm:$0xff]  ;;  %v6019_v27 = vld [vmem:[#allocation6 + $0x1e4] sm:$0xf]  ;;  %p6402_p4 = pnand %p6401_p1, %p6560_p5 }
  0x66   : > { %2083 = vmatpush.bf16.msrb.mxu3 %v5558_v41  ;;  %v6161_v41 = vld [vmem:[#allocation6 + $0x650] sm:$0xf0]  ;;  %v5239_v28 = vld [vmem:[#allocation6 + $0x1f4] sm:$0xf0]  ;;  %v6059_v29 = vld [vmem:[#allocation6 + $0x324] sm:$0xf] }
  0x67   : > { %2132 = vmatpush.bf16.msrb.mxu0 %v5718_v54  ;;  %2181 = vmatpush.bf16.msrb.mxu1 %v5878_v55  ;;  %v5798_v51 = vor.u32 %v6161_v41, %v5797_v40  ;;  %v6653_v54 = vpack.c.bf16 %v332_v47, %v326_v44  ;;  %v6655_v55 = vpack.c.bf16 %v284_v49, %v278_v48  ;;  %v263_v40 = vld [vmem:[%s6591_s11 + $0x50] sm:$0xff]  ;;  %v262_v41 = vld [vmem:[%s6591_s11 + $0x48] sm:$0xff]  ;;  %v5099_v49 = vld [vmem:[#allocation6 + $0xdc] sm:$0xf0]  ;;  %p6403_p8 = pneg %p6402_p4 }
  0x68   : > { %1966 = vmatmul.bf16.gmra.mxu2 %v6629_v63  ;;  %1946 = vmatmul.bf16.gmra.mxu0 %v6631_v0  ;;  %v6691_v45 = vpack.c.bf16 %v263_v40, %v257_v39  ;;  %v6695_v47 = vpack.c.bf16 %v264_v43, %v258_v42  ;;  %v5984_v48 = vld [vmem:[#allocation6 + $0xcc] sm:$0xf]  ;;  %v5399_v31 = vld [vmem:[#allocation6 + $0x334] sm:$0xf0]  ;;  %v281_v39 = vld [vmem:[%s6591_s11 + $0xe0] sm:$0xff] }
  0x69   : > { %2035 = vmatpush.bf16.msrb.mxu2 %v5378_v58  ;;  %2015 = vmatmul.bf16.gmra.mxu3 %v6633_v6  ;;  %8417 = vst [vmem:[#allocation23_spill] sm:$0xff] %v6653_v54  ;;  %v5142_v58 = vor.u32 %v5994_v56, %v5139_v57  ;;  %v5259_v56 = vld [vmem:[#allocation6 + $0x21c] sm:$0xf0]  ;;  %v6064_v57 = vld [vmem:[#allocation6 + $0x34c] sm:$0xf]  ;;  %v287_v40 = vld [vmem:[%s6591_s11 + $0x110] sm:$0xff] }
  0x6a   : > { %2084 = vmatpush.bf16.msrb.mxu3 %v5538_v59  ;;  %1995 = vmatmul.bf16.gmra.mxu1 %v6635_v7  ;;  %8418 = vst [vmem:[#allocation24_spill] sm:$0xff] %v6655_v55  ;;  %v6034_v59 = vld [vmem:[#allocation6 + $0x25c] sm:$0xf]  ;;  %v282_v42 = vld [vmem:[%s6591_s11 + $0xe8] sm:$0xff] }
  0x6b   : > { %2133 = vmatpush.bf16.msrb.mxu0 %v5698_v10  ;;  %2182 = vmatpush.bf16.msrb.mxu1 %v5858_v11  ;;  %v5302_v62 = vor.u32 %v6034_v59, %v5299_v60  ;;  %v5462_v10 = vor.u32 %v6074_v61, %v5459_v1  ;;  %v5622_v11 = vor.u32 %v6114_v2, %v5619_v5  ;;  %v5419_v59 = vld [vmem:[#allocation6 + $0x35c] sm:$0xf0]  ;;  %v6104_v60 = vld [vmem:[#allocation6 + $0x48c] sm:$0xf]  ;;  %v267_v2 = vld [vmem:[%s6591_s11 + $0x70] sm:$0xff] }
  0x6c   : > { %8424 = vst [vmem:[#allocation30_spill] sm:$0xff] %v6691_v45  ;;  %v5579_v61 = vld [vmem:[#allocation6 + $0x49c] sm:$0xf0]  ;;  %v288_v43 = vld [vmem:[%s6591_s11 + $0x118] sm:$0xff] }
  0x6d   : > { %2036 = vmatpush.bf16.msrb.mxu2 %v5358_v12  ;;  %v337_v12 = vld [vmem:[%s6591_s11 + $0x2a0] sm:$0xff]  ;;  %8426 = vst [vmem:[#allocation32_spill] sm:$0xff] %v6695_v47  ;;  %v5582_v1 = vor.u32 %v6104_v60, %v5579_v61  ;;  %v5219_v60 = vld [vmem:[#allocation6 + $0x1cc] sm:$0xf0] }
  0x6e   : > { %2085 = vmatpush.bf16.msrb.mxu3 %v5518_v13  ;;  %v343_v13 = vld [vmem:[%s6591_s11 + $0x2d0] sm:$0xff]  ;;  %v273_v5 = vld [vmem:[%s6591_s11 + $0xa0] sm:$0xff] }
  0x6f   : > { %2134 = vmatpush.bf16.msrb.mxu0 %v5678_v24  ;;  %2183 = vmatpush.bf16.msrb.mxu1 %v5838_v25  ;;  %v5989_v24 = vld [vmem:[#allocation6 + $0xf4] sm:$0xf]  ;;  %v5119_v25 = vld [vmem:[#allocation6 + $0x104] sm:$0xf0]  ;;  %v6709_v16 = vpack.c.bf16 %v273_v5, %v267_v2  ;;  %v297_v5 = vld [vmem:[%s6591_s11 + $0x160] sm:$0xff] }
  0x70   : > { %v5122_v26 = vor.u32 %v5989_v24, %v5119_v25  ;;  %v5979_v24 = vld [vmem:[#allocation6 + $0xa4] sm:$0xf]  ;;  %v5079_v25 = vld [vmem:[#allocation6 + $0xb4] sm:$0xf0]  ;;  %v291_v2 = vld [vmem:[%s6591_s11 + $0x130] sm:$0xff] }
  0x71   : > { %2037 = vmatpush.bf16.msrb.mxu2 %v5338_v19  ;;  %v296_v19 = vld [vmem:[%s6591_s11 + $0x158] sm:$0xff] }
  0x72   : > { %2086 = vmatpush.bf16.msrb.mxu3 %v5498_v20  ;;  %v6669_v20 = vpack.c.bf16 %v343_v13, %v337_v12  ;;  %v6675_v23 = vpack.c.bf16 %v296_v19, %v290_v18  ;;  %v275_v12 = vld [vmem:[%s6591_s11 + $0xb0] sm:$0xff]  ;;  %v274_v13 = vld [vmem:[%s6591_s11 + $0xa8] sm:$0xff]  ;;  %v6715_v19 = vpack.c.bf16 %v276_v15, %v270_v14 }
  0x73   : > { %2135 = vmatpush.bf16.msrb.mxu0 %v5658_v32  ;;  %2184 = vmatpush.bf16.msrb.mxu1 %v5818_v38  ;;  %v6109_v32 = vld [vmem:[#allocation6 + $0x4b4] sm:$0xf]  ;;  %v256_v38 = vld [vmem:[%s6591_s11 + $0x18] sm:$0xff]  ;;  %v298_v14 = vld [vmem:[%s6591_s11 + $0x168] sm:$0xff] }
  0x74   : > { %8419 = vst [vmem:[#allocation25_spill] sm:$0xff] %v6669_v20  ;;  %v5602_v35 = vor.u32 %v6109_v32, %v5599_v33  ;;  %v6693_v46 = vpack.c.bf16 %v262_v41, %v256_v38  ;;  %v6099_v32 = vld [vmem:[#allocation6 + $0x464] sm:$0xf]  ;;  %v5559_v33 = vld [vmem:[#allocation6 + $0x474] sm:$0xf0]  ;;  %v286_v41 = vld [vmem:[%s6591_s11 + $0x108] sm:$0xff] }
  0x75   : > { %2038 = vmatpush.bf16.msrb.mxu2 %v5318_v36  ;;  %8422 = vst [vmem:[#allocation28_spill] sm:$0xff] %v6675_v23  ;;  %v255_v36 = vld [vmem:[%s6591_s11 + $0x10] sm:$0xff]  ;;  %v280_v38 = vld [vmem:[%s6591_s11 + $0xd8] sm:$0xff]  ;;  %v294_v15 = vld [vmem:[%s6591_s11 + $0x148] sm:$0xff] }
  0x76   : > { %2087 = vmatpush.bf16.msrb.mxu3 %v5478_v37  ;;  %v261_v37 = vld [vmem:[%s6591_s11 + $0x40] sm:$0xff]  ;;  %8425 = vst [vmem:[#allocation31_spill] sm:$0xff] %v6693_v46 }
  0x77   : > { %2136 = vmatpush.bf16.msrb.mxu0 %v5638_v50  ;;  %2185 = vmatpush.bf16.msrb.mxu1 %v5798_v51  ;;  %v6689_v44 = vpack.c.bf16 %v261_v37, %v255_v36  ;;  %v5102_v50 = vor.u32 %v5984_v48, %v5099_v49  ;;  %v6024_v51 = vld [vmem:[#allocation6 + $0x20c] sm:$0xf]  ;;  %8429 = vst [vmem:[#allocation35_spill] sm:$0xff] %v6715_v19  ;;  %v279_v36 = vld [vmem:[%s6591_s11 + $0xd0] sm:$0xff]  ;;  %v285_v37 = vld [vmem:[%s6591_s11 + $0x100] sm:$0xff] }
  0x78   : > { %1971 = vmatmul.bf16.gmra.mxu2 %v6649_v52  ;;  %1951 = vmatmul.bf16.gmra.mxu0 %v6651_v53  ;;  %v6729_v48 = vpack.c.bf16 %v285_v37, %v279_v36  ;;  %v6731_v49 = vpack.c.bf16 %v287_v40, %v281_v39  ;;  %v5199_v36 = vld [vmem:[#allocation6 + $0x1a4] sm:$0xf0]  ;;  %v303_v40 = vld [vmem:[%s6591_s11 + $0x190] sm:$0xff] }
  0x79   : > { %2020 = vmatmul.bf16.gmra.mxu3 %v6653_v54  ;;  %2227 = vmatpush.bf16.msra.mxu2 %v5142_v58  ;;  %8423 = vst [vmem:[#allocation29_spill] sm:$0xff] %v6689_v44  ;;  %v5262_v58 = vor.u32 %v6024_v51, %v5259_v56  ;;  %v6735_v51 = vpack.c.bf16 %v288_v43, %v282_v42  ;;  %v5974_v56 = vld [vmem:[#allocation6 + $0x7c] sm:$0xf]  ;;  %v5359_v39 = vld [vmem:[#allocation6 + $0x2e4] sm:$0xf0] }
  0x7a   : > { %2000 = vmatmul.bf16.gmra.mxu1 %v6655_v55  ;;  %2276 = vmatpush.bf16.msra.mxu3 %v5302_v62  ;;  %v5422_v62 = vor.u32 %v6064_v57, %v5419_v59  ;;  %8430 = vst [vmem:[#allocation36_spill] sm:$0xff] %v6729_v48  ;;  %v5059_v57 = vld [vmem:[#allocation6 + $0x8c] sm:$0xf0]  ;;  %v6014_v59 = vld [vmem:[#allocation6 + $0x1bc] sm:$0xf] }
  0x7b   : > { %2325 = vmatpush.bf16.msra.mxu0 %v5462_v10  ;;  %2374 = vmatpush.bf16.msra.mxu1 %v5622_v11  ;;  %v268_v10 = vld [vmem:[%s6591_s11 + $0x78] sm:$0xff]  ;;  %v269_v11 = vld [vmem:[%s6591_s11 + $0x80] sm:$0xff]  ;;  %8431 = vst [vmem:[#allocation37_spill] sm:$0xff] %v6731_v49  ;;  %v5222_v61 = vor.u32 %v6014_v59, %v5219_v60  ;;  %v306_v59 = vld [vmem:[%s6591_s11 + $0x1a8] sm:$0xff] }
  0x7c   : > { %v6711_v17 = vpack.c.bf16 %v275_v12, %v269_v11  ;;  %v6713_v18 = vpack.c.bf16 %v274_v13, %v268_v10  ;;  %8433 = vst [vmem:[#allocation39_spill] sm:$0xff] %v6735_v51  ;;  %v292_v11 = vld [vmem:[%s6591_s11 + $0x138] sm:$0xff]  ;;  %v293_v12 = vld [vmem:[%s6591_s11 + $0x140] sm:$0xff]  ;;  %v299_v13 = vld [vmem:[%s6591_s11 + $0x170] sm:$0xff] }
  0x7d   : > { %2228 = vmatpush.bf16.msra.mxu2 %v5122_v26  ;;  %v5082_v26 = vor.u32 %v5979_v24, %v5079_v25  ;;  %v300_v24 = vld [vmem:[%s6591_s11 + $0x178] sm:$0xff]  ;;  %v6749_v25 = vpack.c.bf16 %v297_v5, %v291_v2 }
  0x7e   : > { %2277 = vmatpush.bf16.msra.mxu3 %v5282_v30  ;;  %8427 = vst [vmem:[#allocation33_spill] sm:$0xff] %v6711_v17  ;;  %v5242_v30 = vor.u32 %v6019_v27, %v5239_v28  ;;  %v6753_v27 = vpack.c.bf16 %v298_v14, %v292_v11  ;;  %v6755_v28 = vpack.c.bf16 %v300_v24, %v294_v15  ;;  %v304_v43 = vld [vmem:[%s6591_s11 + $0x198] sm:$0xff]  ;;  %v5519_v11 = vld [vmem:[#allocation6 + $0x424] sm:$0xf0]  ;;  %v5964_v14 = vld [vmem:[#allocation6 + $0x2c] sm:$0xf] }
  0x7f   : > { %2326 = vmatpush.bf16.msra.mxu0 %v5442_v34  ;;  %2375 = vmatpush.bf16.msra.mxu1 %v5602_v35  ;;  %8428 = vst [vmem:[#allocation34_spill] sm:$0xff] %v6713_v18  ;;  %v5402_v34 = vor.u32 %v6059_v29, %v5399_v31  ;;  %v5562_v35 = vor.u32 %v6099_v32, %v5559_v33  ;;  %v6094_v29 = vld [vmem:[#allocation6 + $0x43c] sm:$0xf]  ;;  %v5969_v32 = vld [vmem:[#allocation6 + $0x54] sm:$0xf] }
  0x80   : > { %8434 = vst [vmem:[#allocation40_spill] sm:$0xff] %v6749_v25  ;;  %v5039_v33 = vld [vmem:[#allocation6 + $0x64] sm:$0xf0]  ;;  %v312_v60 = vld [vmem:[%s6591_s11 + $0x1d8] sm:$0xff]  ;;  %v5019_v15 = vld [vmem:[#allocation6 + $0x3c] sm:$0xf0] }
  0x81   : > { %2229 = vmatpush.bf16.msra.mxu2 %v5102_v50  ;;  %v6733_v50 = vpack.c.bf16 %v286_v41, %v280_v38  ;;  %8436 = vst [vmem:[#allocation42_spill] sm:$0xff] %v6753_v27  ;;  %v6049_v38 = vld [vmem:[#allocation6 + $0x2d4] sm:$0xf]  ;;  %v309_v41 = vld [vmem:[%s6591_s11 + $0x1c0] sm:$0xff]  ;;  %v6777_v5 = vpack.c.bf16 %v312_v60, %v306_v59  ;;  %v5022_v24 = vor.u32 %v5964_v14, %v5019_v15  ;;  %v324_v59 = vld [vmem:[%s6591_s11 + $0x238] sm:$0xff] }
  0x82   : > { %2278 = vmatpush.bf16.msra.mxu3 %v5262_v58  ;;  %v5062_v58 = vor.u32 %v5974_v56, %v5059_v57  ;;  %8437 = vst [vmem:[#allocation43_spill] sm:$0xff] %v6755_v28  ;;  %v5362_v42 = vor.u32 %v6049_v38, %v5359_v39  ;;  %v305_v56 = vld [vmem:[%s6591_s11 + $0x1a0] sm:$0xff]  ;;  %v311_v57 = vld [vmem:[%s6591_s11 + $0x1d0] sm:$0xff] }
  0x83   : > { %2327 = vmatpush.bf16.msra.mxu0 %v5422_v62  ;;  %2376 = vmatpush.bf16.msra.mxu1 %v5582_v1  ;;  %8432 = vst [vmem:[#allocation38_spill] sm:$0xff] %v6733_v50  ;;  %v6054_v62 = vld [vmem:[#allocation6 + $0x2fc] sm:$0xf]  ;;  %v5379_v1 = vld [vmem:[#allocation6 + $0x30c] sm:$0xf0] }
  0x84   : > { %v5382_v10 = vor.u32 %v6054_v62, %v5379_v1  ;;  %v6771_v62 = vpack.c.bf16 %v311_v57, %v305_v56  ;;  %8441 = vst [vmem:[#allocation47_spill] sm:$0xff] %v6777_v5  ;;  %v5339_v38 = vld [vmem:[#allocation6 + $0x2bc] sm:$0xf0]  ;;  %v315_v39 = vld [vmem:[%s6591_s11 + $0x1f0] sm:$0xff]  ;;  %v322_v57 = vld [vmem:[%s6591_s11 + $0x228] sm:$0xff] }
  0x85   : > { %2230 = vmatpush.bf16.msra.mxu2 %v5082_v26  ;;  %v6751_v26 = vpack.c.bf16 %v299_v13, %v293_v12  ;;  %v323_v56 = vld [vmem:[%s6591_s11 + $0x230] sm:$0xff] }
  0x86   : > { %2279 = vmatpush.bf16.msra.mxu3 %v5242_v30  ;;  %v5539_v30 = vld [vmem:[#allocation6 + $0x44c] sm:$0xf0]  ;;  %8439 = vst [vmem:[#allocation45_spill] sm:$0xff] %v6771_v62 }
  0x87   : > { %2328 = vmatpush.bf16.msra.mxu0 %v5402_v34  ;;  %2377 = vmatpush.bf16.msra.mxu1 %v5562_v35  ;;  %8435 = vst [vmem:[#allocation41_spill] sm:$0xff] %v6751_v26  ;;  %v5542_v31 = vor.u32 %v6094_v29, %v5539_v30  ;;  %v5042_v34 = vor.u32 %v5969_v32, %v5039_v33  ;;  %v6009_v35 = vld [vmem:[#allocation6 + $0x194] sm:$0xf]  ;;  %v6004_v29 = vld [vmem:[#allocation6 + $0x16c] sm:$0xf] }
  0x88   : > { %1976 = vmatmul.bf16.gmra.mxu2 %v6669_v20  ;;  %1956 = vmatmul.bf16.gmra.mxu0 %v6671_v21  ;;  %v5202_v37 = vor.u32 %v6009_v35, %v5199_v36  ;;  %v5179_v30 = vld [vmem:[#allocation6 + $0x17c] sm:$0xf0] }
  0x89   : > { %2025 = vmatmul.bf16.gmra.mxu3 %v6673_v22  ;;  %2231 = vmatpush.bf16.msra.mxu2 %v5062_v58  ;;  %v310_v58 = vld [vmem:[%s6591_s11 + $0x1c8] sm:$0xff]  ;;  %v5182_v32 = vor.u32 %v6004_v29, %v5179_v30 }
  0x8a   : > { %2005 = vmatmul.bf16.gmra.mxu1 %v6675_v23  ;;  %2280 = vmatpush.bf16.msra.mxu3 %v5222_v61  ;;  %v6769_v61 = vpack.c.bf16 %v309_v41, %v303_v40  ;;  %v6775_v2 = vpack.c.bf16 %v310_v58, %v304_v43  ;;  %v321_v40 = vld [vmem:[%s6591_s11 + $0x220] sm:$0xff]  ;;  %v318_v58 = vld [vmem:[%s6591_s11 + $0x208] sm:$0xff] }
  0x8b   : > { %2329 = vmatpush.bf16.msra.mxu0 %v5382_v10  ;;  %2378 = vmatpush.bf16.msra.mxu1 %v5542_v31  ;;  %v6089_v10 = vld [vmem:[#allocation6 + $0x414] sm:$0xf]  ;;  %v317_v43 = vld [vmem:[%s6591_s11 + $0x200] sm:$0xff]  ;;  %v6809_v29 = vpack.c.bf16 %v324_v59, %v318_v58  ;;  %v6084_v30 = vld [vmem:[#allocation6 + $0x3ec] sm:$0xf] }
  0x8c   : > { %8438 = vst [vmem:[#allocation44_spill] sm:$0xff] %v6769_v61  ;;  %v5522_v13 = vor.u32 %v6089_v10, %v5519_v11  ;;  %v6799_v11 = vpack.c.bf16 %v321_v40, %v315_v39  ;;  %v5999_v40 = vld [vmem:[#allocation6 + $0x144] sm:$0xf] }
  0x8d   : > { %2232 = vmatpush.bf16.msra.mxu2 %v5042_v34  ;;  %8440 = vst [vmem:[#allocation46_spill] sm:$0xff] %v6775_v2 }
  0x8e   : > { %2281 = vmatpush.bf16.msra.mxu3 %v5202_v37  ;;  %v6044_v37 = vld [vmem:[#allocation6 + $0x2ac] sm:$0xf]  ;;  %8442 = vst [vmem:[#allocation48_spill] sm:$0xff] %v6799_v11 }
  0x8f   : > { %2330 = vmatpush.bf16.msra.mxu0 %v5362_v42  ;;  %2379 = vmatpush.bf16.msra.mxu1 %v5522_v13  ;;  %v5342_v41 = vor.u32 %v6044_v37, %v5339_v38  ;;  %v316_v42 = vld [vmem:[%s6591_s11 + $0x1f8] sm:$0xff]  ;;  %v6801_v13 = vpack.c.bf16 %v323_v56, %v317_v43  ;;  %8445 = vst [vmem:[#allocation51_spill] sm:$0xff] %v6809_v29  ;;  %v5959_v37 = vld [vmem:[#allocation6 + $0x4] sm:$0xf] }
  0x90   : > { %v4999_v38 = vld [vmem:[#allocation6 + $0x14] sm:$0xf0] }
  0x91   : > { %2233 = vmatpush.bf16.msra.mxu2 %v5022_v24  ;;  %8443 = vst [vmem:[#allocation49_spill] sm:$0xff] %v6801_v13  ;;  %v6807_v24 = vpack.c.bf16 %v322_v57, %v316_v42  ;;  %v5002_v39 = vor.u32 %v5959_v37, %v4999_v38  ;;  %v328_v37 = vld [vmem:[%s6591_s11 + $0x258] sm:$0xff]  ;;  %v329_v38 = vld [vmem:[%s6591_s11 + $0x260] sm:$0xff] }
  0x92   : > { %2282 = vmatpush.bf16.msra.mxu3 %v5182_v32 }
  0x93   : > { %2331 = vmatpush.bf16.msra.mxu0 %v5342_v41  ;;  %8444 = vst [vmem:[#allocation50_spill] sm:$0xff] %v6807_v24  ;;  %v5159_v41 = vld [vmem:[#allocation6 + $0x154] sm:$0xf0] }
  0x94   : > { %v5162_v43 = vor.u32 %v5999_v40, %v5159_v41  ;;  %v334_v40 = vld [vmem:[%s6591_s11 + $0x288] sm:$0xff] }
  0x95   : > { %2234 = vmatpush.bf16.msra.mxu2 %v5002_v39  ;;  %v330_v41 = vld [vmem:[%s6591_s11 + $0x268] sm:$0xff] }
  0x96   : > { %2283 = vmatpush.bf16.msra.mxu3 %v5162_v43 }
  0x98   : > { %2039 = vmatmul.bf16.vlgmr.msrb.gmra.mxu2 %v6689_v44  ;;  %2137 = vmatmul.bf16.vlgmr.msrb.gmra.mxu0 %v6691_v45 }
  0x99   : > { %2088 = vmatmul.bf16.vlgmr.msrb.gmra.mxu3 %v6693_v46 }
  0x9a   : > { %2186 = vmatmul.bf16.vlgmr.msrb.gmra.mxu1 %v6695_v47 }
  0xa8   : > { %2044 = vmatmul.bf16.gmra.mxu2 %v6709_v16  ;;  %2142 = vmatmul.bf16.gmra.mxu0 %v6711_v17 }
  0xa9   : > { %2093 = vmatmul.bf16.gmra.mxu3 %v6713_v18 }
  0xaa   : > { %2191 = vmatmul.bf16.gmra.mxu1 %v6715_v19  ;;  %v348_v19 = vld [vmem:[%s6591_s11 + $0x2f8] sm:$0xff] }
  0xb8   : > { %2049 = vmatmul.bf16.gmra.mxu2 %v6729_v48  ;;  %2147 = vmatmul.bf16.gmra.mxu0 %v6731_v49 }
  0xb9   : > { %2098 = vmatmul.bf16.gmra.mxu3 %v6733_v50 }
  0xba   : > { %2196 = vmatmul.bf16.gmra.mxu1 %v6735_v51 }
  0xc8   : > { %2054 = vmatmul.bf16.gmra.mxu2 %v6749_v25  ;;  %2152 = vmatmul.bf16.gmra.mxu0 %v6751_v26  ;;  %v5479_v26 = vld [vmem:[#allocation6 + $0x3d4] sm:$0xf0] }
  0xc9   : > { %2103 = vmatmul.bf16.gmra.mxu3 %v6753_v27 }
  0xca   : > { %2201 = vmatmul.bf16.gmra.mxu1 %v6755_v28  ;;  %v6839_v28 = vpack.c.bf16 %v334_v40, %v328_v37 }
  0xcc   : > { %8448 = vst [vmem:[#allocation54_spill] sm:$0xff] %v6839_v28 }
  0xd5   : > { %v6773_v1 = vpop.f32.mrf.mxu0 }
  0xd7   : > { %v6779_v12 = vpop.f32.mrf.mxu1 }
  0xd8   : > { %2059 = vmatmul.bf16.gmra.mxu2 %v6769_v61  ;;  %2157 = vmatmul.bf16.gmra.mxu0 %v6771_v62 }
  0xd9   : > { %2108 = vmatmul.bf16.gmra.mxu3 %v6775_v2 }
  0xda   : > { %2206 = vmatmul.bf16.gmra.mxu1 %v6777_v5 }
  0xdb   : > { %v1962_v31 = vpop.f32.mrf.mxu2 }
  0xdc   : > { %v2011_v33 = vpop.f32.mrf.mxu3 }
  0xdd   : > { %v6785_v34 = vadd.f32 %v2011_v33, %v1962_v31  ;;  %v6787_v35 = vpop.f32.mrf.mxu0  ;;  %v5499_v31 = vld [vmem:[#allocation6 + $0x3fc] sm:$0xf0] }
  0xde   : > { %v5502_v33 = vor.u32 %v6084_v30, %v5499_v31  ;;  %v327_v30 = vld [vmem:[%s6591_s11 + $0x250] sm:$0xff]  ;;  %v333_v31 = vld [vmem:[%s6591_s11 + $0x280] sm:$0xff] }
  0xdf   : > { %v6789_v36 = vpop.f32.mrf.mxu1 }
  0xe0   : > { %2380 = vmatpush.bf16.msra.mxu1 %v5502_v33 }
  0xe3   : > { %v1964_v60 = vpop.f32.mrf.mxu2 }
  0xe4   : > { %v2013_v10 = vpop.f32.mrf.mxu3 }
  0xe5   : > { %v6803_v14 = vadd.f32 %v2013_v10, %v1964_v60  ;;  %v6805_v15 = vpop.f32.mrf.mxu0  ;;  %v6039_v60 = vld [vmem:[#allocation6 + $0x284] sm:$0xf]  ;;  %v5319_v10 = vld [vmem:[#allocation6 + $0x294] sm:$0xf0] }
  0xe6   : > { %v5322_v33 = vor.u32 %v6039_v60, %v5319_v10  ;;  %v6079_v10 = vld [vmem:[#allocation6 + $0x3c4] sm:$0xf] }
  0xe7   : > { %v6811_v32 = vpop.f32.mrf.mxu1  ;;  %v5482_v49 = vor.u32 %v6079_v10, %v5479_v26  ;;  %v5939_v26 = vld [vmem:[#allocation6 + $0x76c] sm:$0xf0]  ;;  %v345_v10 = vld [vmem:[%s6591_s11 + $0x2e0] sm:$0xff] }
  0xe8   : > { %2064 = vmatmul.bf16.gmra.mxu2 %v6799_v11  ;;  %2162 = vmatmul.bf16.gmra.mxu0 %v6801_v13  ;;  %v336_v13 = vld [vmem:[%s6591_s11 + $0x298] sm:$0xff] }
  0xe9   : > { %2113 = vmatmul.bf16.gmra.mxu3 %v6807_v24  ;;  %2332 = vmatpush.bf16.msra.mxu0 %v5322_v33  ;;  %v6841_v60 = vpack.c.bf16 %v336_v13, %v330_v41  ;;  %v6194_v13 = vld [vmem:[#allocation6 + $0x75c] sm:$0xf] }
  0xea   : > { %2211 = vmatmul.bf16.gmra.mxu1 %v6809_v29  ;;  %v335_v29 = vld [vmem:[%s6591_s11 + $0x290] sm:$0xff]  ;;  %v5942_v37 = vor.u32 %v6194_v13, %v5939_v26  ;;  %v5145_v26 = vld [vmem:[#allocation6 + $0x120] sm:$0xf] }
  0xeb   : > { %v1967_v42 = vpop.f32.mrf.mxu2  ;;  %v6833_v5 = vpack.c.bf16 %v335_v29, %v329_v38  ;;  %8449 = vst [vmem:[#allocation55_spill] sm:$0xff] %v6841_v60  ;;  %v6154_v29 = vld [vmem:[#allocation6 + $0x61c] sm:$0xf]  ;;  %2381 = vmatpush.bf16.msra.mxu1 %v5482_v49  ;;  %v341_v49 = vld [vmem:[%s6591_s11 + $0x2c0] sm:$0xff] }
  0xec   : > { %v2016_v56 = vpop.f32.mrf.mxu3  ;;  %2472 = vmatpush.bf16.msrb.mxu3 %v5942_v37 }
  0xed   : > { %v6817_v57 = vadd.f32 %v2016_v56, %v1967_v42  ;;  %v6819_v58 = vpop.f32.mrf.mxu0  ;;  %v6831_v56 = vpack.c.bf16 %v333_v31, %v327_v30  ;;  %8447 = vst [vmem:[#allocation53_spill] sm:$0xff] %v6833_v5  ;;  %v5779_v30 = vld [vmem:[#allocation6 + $0x62c] sm:$0xf0] }
  0xee   : > { %v5782_v31 = vor.u32 %v6154_v29, %v5779_v30  ;;  %v346_v29 = vld [vmem:[%s6591_s11 + $0x2e8] sm:$0xff] }
  0xef   : > { %v6821_v59 = vpop.f32.mrf.mxu1  ;;  %8446 = vst [vmem:[#allocation52_spill] sm:$0xff] %v6831_v56  ;;  %v342_v30 = vld [vmem:[%s6591_s11 + $0x2c8] sm:$0xff] }
  0xf0   : > { %2423 = vmatpush.bf16.msrb.mxu2 %v5782_v31  ;;  %v6873_v22 = vpack.c.bf16 %v348_v19, %v342_v30  ;;  %v5919_v30 = vld [vmem:[#allocation6 + $0x744] sm:$0xf0] }
  0xf2   : > { %8455 = vst [vmem:[#allocation61_spill] sm:$0xff] %v6873_v22 }
  0xf3   : > { %v1969_v39 = vpop.f32.mrf.mxu2 }
  0xf4   : > { %v2018_v42 = vpop.f32.mrf.mxu3 }
  0xf5   : > { %v6835_v43 = vadd.f32 %v2018_v42, %v1969_v39  ;;  %v6837_v62 = vpop.f32.mrf.mxu0  ;;  %v339_v42 = vld [vmem:[%s6591_s11 + $0x2b0] sm:$0xff] }
  0xf6   : > { %v6863_v13 = vpack.c.bf16 %v345_v10, %v339_v42  ;;  %v6037_v42 = vld [vmem:[#allocation6 + $0x270] sm:$0xf0] }
  0xf7   : > { %v6843_v51 = vpop.f32.mrf.mxu1 }
  0xf8   : > { %2069 = vmatmul.bf16.gmra.mxu2 %v6831_v56  ;;  %2167 = vmatmul.bf16.gmra.mxu0 %v6833_v5  ;;  %v347_v5 = vld [vmem:[%s6591_s11 + $0x2f0] sm:$0xff]  ;;  %8451 = vst [vmem:[#allocation57_spill] sm:$0xff] %v6863_v13 }
  0xf9   : > { %2118 = vmatmul.bf16.gmra.mxu3 %v6839_v28  ;;  %v6865_v31 = vpack.c.bf16 %v347_v5, %v341_v49  ;;  %v5305_v5 = vld [vmem:[#allocation6 + $0x260] sm:$0xf] }
  0xfa   : > { %2216 = vmatmul.bf16.gmra.mxu1 %v6841_v60  ;;  %v340_v60 = vld [vmem:[%s6591_s11 + $0x2b8] sm:$0xff]  ;;  %v5306_v49 = vor.u32 %v6037_v42, %v5305_v5  ;;  %s6404_s11 = scalar_lea.hbm %s8290_s4, 16 }
  0xfb   : > { %v1972_v33 = vpop.f32.mrf.mxu2  ;;  %8452 = vst [vmem:[#allocation58_spill] sm:$0xff] %v6865_v31  ;;  %v6871_v45 = vpack.c.bf16 %v346_v29, %v340_v60  ;;  %v6149_v60 = vld [vmem:[#allocation6 + $0x5f4] sm:$0xf]  ;;  %v5759_v29 = vld [vmem:[#allocation6 + $0x604] sm:$0xf0]  ;;  %p6406_p9 = scmp.lt.s32.totalorder %s6404_s11, %s6400_s25 }
  0xfc   : > { %v2021_v38 = vpop.f32.mrf.mxu3  ;;  %2570 = vmatpush.bf16.msrb.mxu1 %v5306_v49  ;;  %v6144_v49 = vld [vmem:[#allocation6 + $0x5cc] sm:$0xf] }
  0xfd   : > { %v6849_v40 = vadd.f32 %v2021_v38, %v1972_v33  ;;  %v6851_v41 = vpop.f32.mrf.mxu0  ;;  %v5997_v33 = vld [vmem:[#allocation6 + $0x130] sm:$0xf0]  ;;  %8454 = vst [vmem:[#allocation60_spill] sm:$0xff] %v6871_v45  ;;  %p6407_p2 = por %p6406_p9, %p6405_p11 }
  0xfe   : > { %v5146_v20 = vor.u32 %v5997_v33, %v5145_v26  ;;  %v5762_v33 = vor.u32 %v6149_v60, %v5759_v29  ;;  %v5739_v29 = vld [vmem:[#allocation6 + $0x5dc] sm:$0xf0] }
  0xff   : > { %8450 = vst [vmem:[#allocation56_spill] sm:$0xff] %v6849_v40  ;;  %v6853_v39 = vpop.f32.mrf.mxu1  ;;  %p6408_p10 = pnand %p6407_p2, %p6403_p8 }
 0x100   : > { %2521 = vmatpush.bf16.msrb.mxu0 %v5146_v20  ;;  %v6189_v20 = vld [vmem:[#allocation6 + $0x734] sm:$0xf]  ;;  %2424 = vmatpush.bf16.msrb.mxu2 %v5762_v33 }
 0x103   : > { %v1974_v17 = vpop.f32.mrf.mxu2 }
 0x104   : > { %v2023_v47 = vpop.f32.mrf.mxu3 }
 0x105   : > { %v6867_v38 = vadd.f32 %v2023_v47, %v1974_v17  ;;  %v6869_v37 = vpop.f32.mrf.mxu0 }
 0x107   : > { %8453 = vst [vmem:[#allocation59_spill] sm:$0xff] %v6867_v38  ;;  %v6875_v40 = vpop.f32.mrf.mxu1  ;;  %v5992_v38 = vld [vmem:[#allocation6 + $0x108] sm:$0xf0] }
 0x108   : > { %2074 = vmatmul.bf16.gmra.mxu2 %v6863_v13  ;;  %2172 = vmatmul.bf16.gmra.mxu0 %v6865_v31  ;;  %v5922_v31 = vor.u32 %v6189_v20, %v5919_v30  ;;  %v5125_v13 = vld [vmem:[#allocation6 + $0xf8] sm:$0xf]  ;;  %v6184_v20 = vld [vmem:[#allocation6 + $0x70c] sm:$0xf]  ;;  %v5899_v30 = vld [vmem:[#allocation6 + $0x71c] sm:$0xf0] }
 0x109   : > { %2123 = vmatmul.bf16.gmra.mxu3 %v6871_v45 }
 0x10a   : > { %2221 = vmatmul.bf16.gmra.mxu1 %v6873_v22  ;;  %2473 = vmatpush.bf16.msrb.mxu3 %v5922_v31  ;;  %v1992_v31 = vadd.f32 %v6779_v12, %v6773_v1  ;;  %v1994_v1 = vadd.f32 %v6789_v36, %v6787_v35 }
 0x10b   : > { %v1977_v47 = vpop.f32.mrf.mxu2 }
 0x10c   : > { %v2026_v17 = vpop.f32.mrf.mxu3 }
 0x10d   : > { %v6881_v10 = vadd.f32 %v2026_v17, %v1977_v47  ;;  %v6883_v19 = vpop.f32.mrf.mxu0  ;;  %v5126_v17 = vor.u32 %v5992_v38, %v5125_v13 }
 0x10f   : > { %8456 = vst [vmem:[#allocation62_spill] sm:$0xff] %v6881_v10  ;;  %v6885_v26 = vpop.f32.mrf.mxu1  ;;  %2522 = vmatpush.bf16.msrb.mxu0 %v5126_v17 }
 0x113   : > { %v1979_v22 = vpop.f32.mrf.mxu2 }
 0x114   : > { %v2028_v45 = vpop.f32.mrf.mxu3 }
 0x115   : > { %v6887_v28 = vadd.f32 %v2028_v45, %v1979_v22  ;;  %v2138_v47 = vpop.f32.mrf.mxu0  ;;  %v5285_v22 = vld [vmem:[#allocation6 + $0x238] sm:$0xf]  ;;  %v6032_v45 = vld [vmem:[#allocation6 + $0x248] sm:$0xf0] }
 0x116   : > { %v5286_v38 = vor.u32 %v6032_v45, %v5285_v22  ;;  %v5105_v22 = vld [vmem:[#allocation6 + $0xd0] sm:$0xf]  ;;  %v5987_v45 = vld [vmem:[#allocation6 + $0xe0] sm:$0xf0] }
 0x117   : > { %8457 = vst [vmem:[#allocation63_spill] sm:$0xff] %v6887_v28  ;;  %v2187_v10 = vpop.f32.mrf.mxu1  ;;  %v5106_v54 = vor.u32 %v5987_v45, %v5105_v22  ;;  %v5085_v45 = vld [vmem:[#allocation6 + $0xa8] sm:$0xf] }
 0x118   : > { %2235 = vmatmul.bf16.vlgmr.msra.gmra.mxu2 %v6611_v4  ;;  %2333 = vmatmul.bf16.vlgmr.msra.gmra.mxu0 %v6689_v44  ;;  %v5742_v44 = vor.u32 %v6144_v49, %v5739_v29  ;;  %v6179_v29 = vld [vmem:[#allocation6 + $0x6e4] sm:$0xf] }
 0x119   : > { %2284 = vmatmul.bf16.vlgmr.msra.gmra.mxu3 %v6615_v9  ;;  %v5902_v9 = vor.u32 %v6184_v20, %v5899_v30  ;;  %2571 = vmatpush.bf16.msrb.mxu1 %v5286_v38  ;;  %v5719_v38 = vld [vmem:[#allocation6 + $0x5b4] sm:$0xf0] }
 0x11a   : > { %2382 = vmatmul.bf16.vlgmr.msra.gmra.mxu1 %v6693_v46  ;;  %2425 = vmatpush.bf16.msrb.mxu2 %v5742_v44 }
 0x11b   : > { %v2040_v5 = vpop.f32.mrf.mxu2  ;;  %2474 = vmatpush.bf16.msrb.mxu3 %v5902_v9  ;;  %2523 = vmatpush.bf16.msrb.mxu0 %v5106_v54  ;;  %v1997_v9 = vadd.f32 %v6811_v32, %v6805_v15  ;;  %v1999_v15 = vadd.f32 %v6821_v59, %v6819_v58 }
 0x11c   : > { %v2041_v42 = vadd.f32 %v2040_v5, %v1992_v31  ;;  %v2089_v60 = vpop.f32.mrf.mxu3 }
 0x11d   : > { %v2140_v13 = vpop.f32.mrf.mxu0 }
 0x11e   : > { %v2090_v33 = vadd.f32 %v2089_v60, %v2041_v42 }
 0x11f   : > { %v2189_v17 = vpop.f32.mrf.mxu1 }
 0x120   : > { %v2139_v46 = vadd.f32 %v2138_v47, %v2090_v33 }
 0x122   : > { %v2188_v12 = vadd.f32 %v2187_v10, %v2139_v46  ;;  %v6027_v10 = vld [vmem:[#allocation6 + $0x220] sm:$0xf0] }
 0x123   : > { %v2042_v31 = vpop.f32.mrf.mxu2 }
 0x124   : > { %3403 = vst [vmem:[#allocation2 + $0xc8] sm:$0xff] %v2188_v12  ;;  %v2043_v5 = vadd.f32 %v2042_v31, %v1994_v1  ;;  %v2091_v4 = vpop.f32.mrf.mxu3  ;;  %v5879_v1 = vld [vmem:[#allocation6 + $0x6f4] sm:$0xf0] }
 0x125   : > { %v2143_v28 = vpop.f32.mrf.mxu0  ;;  %v5882_v12 = vor.u32 %v6179_v29, %v5879_v1  ;;  %v6174_v29 = vld [vmem:[#allocation6 + $0x6bc] sm:$0xf] }
 0x126   : > { %v2092_v42 = vadd.f32 %v2091_v4, %v2043_v5  ;;  %v5265_v4 = vld [vmem:[#allocation6 + $0x210] sm:$0xf] }
 0x127   : > { %v2192_v60 = vpop.f32.mrf.mxu1  ;;  %v5266_v47 = vor.u32 %v6027_v10, %v5265_v4  ;;  %2475 = vmatpush.bf16.msrb.mxu3 %v5882_v12  ;;  %v5245_v4 = vld [vmem:[#allocation6 + $0x1e8] sm:$0xf]  ;;  %v6022_v10 = vld [vmem:[#allocation6 + $0x1f8] sm:$0xf0]  ;;  %v5859_v12 = vld [vmem:[#allocation6 + $0x6cc] sm:$0xf0] }
 0x128   : > { %v2141_v49 = vadd.f32 %v2140_v13, %v2092_v42  ;;  %2240 = vmatmul.bf16.gmra.mxu2 %v6631_v0  ;;  %2338 = vmatmul.bf16.gmra.mxu0 %v6709_v16  ;;  %v6139_v13 = vld [vmem:[#allocation6 + $0x5a4] sm:$0xf]  ;;  %v5982_v42 = vld [vmem:[#allocation6 + $0xb8] sm:$0xf0] }
 0x129   : > { %2289 = vmatmul.bf16.gmra.mxu3 %v6635_v7  ;;  %v5722_v33 = vor.u32 %v6139_v13, %v5719_v38  ;;  %2572 = vmatpush.bf16.msrb.mxu1 %v5266_v47  ;;  %v6134_v13 = vld [vmem:[#allocation6 + $0x57c] sm:$0xf]  ;;  %v5699_v38 = vld [vmem:[#allocation6 + $0x58c] sm:$0xf0] }
 0x12a   : > { %2387 = vmatmul.bf16.gmra.mxu1 %v6713_v18  ;;  %v2190_v44 = vadd.f32 %v2189_v17, %v2141_v49  ;;  %v5702_v1 = vor.u32 %v6134_v13, %v5699_v38 }
 0x12b   : > { %v2045_v46 = vpop.f32.mrf.mxu2  ;;  %2426 = vmatpush.bf16.msrb.mxu2 %v5722_v33 }
 0x12c   : > { %3408 = vst [vmem:[#allocation2 + $0xf0] sm:$0xff] %v2190_v44  ;;  %v2046_v35 = vadd.f32 %v2045_v46, %v1997_v9  ;;  %v2094_v36 = vpop.f32.mrf.mxu3  ;;  %v5086_v9 = vor.u32 %v5982_v42, %v5085_v45 }
 0x12d   : > { %v2145_v54 = vpop.f32.mrf.mxu0 }
 0x12e   : > { %v2095_v20 = vadd.f32 %v2094_v36, %v2046_v35  ;;  %2524 = vmatpush.bf16.msrb.mxu0 %v5086_v9 }
 0x12f   : > { %v2194_v30 = vpop.f32.mrf.mxu1  ;;  %2427 = vmatpush.bf16.msrb.mxu2 %v5702_v1 }
 0x130   : > { %v2144_v31 = vadd.f32 %v2143_v28, %v2095_v20  ;;  %v2002_v28 = vadd.f32 %v6843_v51, %v6837_v62  ;;  %v2004_v51 = vadd.f32 %v6853_v39, %v6851_v41  ;;  %v2007_v41 = vadd.f32 %v6875_v40, %v6869_v37 }
 0x131   : > { %v2009_v40 = vadd.f32 %v6885_v26, %v6883_v19 }
 0x132   : > { %v2193_v32 = vadd.f32 %v2192_v60, %v2144_v31  ;;  %v5862_v31 = vor.u32 %v6174_v29, %v5859_v12  ;;  %v5839_v29 = vld [vmem:[#allocation6 + $0x6a4] sm:$0xf0] }
 0x133   : > { %v2047_v17 = vpop.f32.mrf.mxu2 }
 0x134   : > { %3413 = vst [vmem:[#allocation2 + $0x150] sm:$0xff] %v2193_v32  ;;  %v2048_v5 = vadd.f32 %v2047_v17, %v1999_v15  ;;  %v2096_v22 = vpop.f32.mrf.mxu3  ;;  %2476 = vmatpush.bf16.msrb.mxu3 %v5862_v31 }
 0x135   : > { %v2148_v49 = vpop.f32.mrf.mxu0 }
 0x136   : > { %v2097_v44 = vadd.f32 %v2096_v22, %v2048_v5  ;;  %v5065_v5 = vld [vmem:[#allocation6 + $0x80] sm:$0xf]  ;;  %v5977_v22 = vld [vmem:[#allocation6 + $0x90] sm:$0xf0] }
 0x137   : > { %v2197_v46 = vpop.f32.mrf.mxu1  ;;  %v5066_v42 = vor.u32 %v5977_v22, %v5065_v5 }
 0x138   : > { %v2146_v35 = vadd.f32 %v2145_v54, %v2097_v44  ;;  %2245 = vmatmul.bf16.gmra.mxu2 %v6651_v53  ;;  %2343 = vmatmul.bf16.gmra.mxu0 %v6729_v48  ;;  %v5246_v54 = vor.u32 %v6022_v10, %v5245_v4  ;;  %v6129_v4 = vld [vmem:[#allocation6 + $0x554] sm:$0xf]  ;;  %v5679_v10 = vld [vmem:[#allocation6 + $0x564] sm:$0xf0] }
 0x139   : > { %2294 = vmatmul.bf16.gmra.mxu3 %v6655_v55  ;;  %2525 = vmatpush.bf16.msrb.mxu0 %v5066_v42  ;;  %v5682_v38 = vor.u32 %v6129_v4, %v5679_v10  ;;  %v5205_v42 = vld [vmem:[#allocation6 + $0x198] sm:$0xf] }
 0x13a   : > { %2392 = vmatmul.bf16.gmra.mxu1 %v6733_v50  ;;  %v2195_v58 = vadd.f32 %v2194_v30, %v2146_v35 }
 0x13b   : > { %v2050_v59 = vpop.f32.mrf.mxu2  ;;  %2573 = vmatpush.bf16.msrb.mxu1 %v5246_v54  ;;  %2428 = vmatpush.bf16.msrb.mxu2 %v5682_v38 }
 0x13c   : > { %3418 = vst [vmem:[#allocation2 + $0xd0] sm:$0xff] %v2195_v58  ;;  %v2051_v60 = vadd.f32 %v2050_v59, %v2002_v28  ;;  %v2099_v36 = vpop.f32.mrf.mxu3  ;;  %v5225_v58 = vld [vmem:[#allocation6 + $0x1c0] sm:$0xf]  ;;  %v6017_v59 = vld [vmem:[#allocation6 + $0x1d0] sm:$0xf0] }
 0x13d   : > { %v2150_v47 = vpop.f32.mrf.mxu0 }
 0x13e   : > { %v2100_v20 = vadd.f32 %v2099_v36, %v2051_v60  ;;  %v5226_v36 = vor.u32 %v6017_v59, %v5225_v58  ;;  %v5819_v59 = vld [vmem:[#allocation6 + $0x67c] sm:$0xf0] }
 0x13f   : > { %v2199_v33 = vpop.f32.mrf.mxu1 }
 0x140   : > { %v2149_v15 = vadd.f32 %v2148_v49, %v2100_v20  ;;  %2574 = vmatpush.bf16.msrb.mxu1 %v5226_v36 }
 0x142   : > { %v2198_v62 = vadd.f32 %v2197_v46, %v2149_v15  ;;  %v5045_v15 = vld [vmem:[#allocation6 + $0x58] sm:$0xf] }
 0x143   : > { %v2052_v30 = vpop.f32.mrf.mxu2 }
 0x144   : > { %3423 = vst [vmem:[#allocation2 + $0x198] sm:$0xff] %v2198_v62  ;;  %v2053_v32 = vadd.f32 %v2052_v30, %v2004_v51  ;;  %v2101_v17 = vpop.f32.mrf.mxu3  ;;  %v5972_v51 = vld [vmem:[#allocation6 + $0x68] sm:$0xf0] }
 0x145   : > { %v2153_v45 = vpop.f32.mrf.mxu0  ;;  %v5046_v30 = vor.u32 %v5972_v51, %v5045_v15  ;;  %v6007_v15 = vld [vmem:[#allocation6 + $0x180] sm:$0xf0] }
 0x146   : > { %v2102_v9 = vadd.f32 %v2101_v17, %v2053_v32 }
 0x147   : > { %v2202_v44 = vpop.f32.mrf.mxu1  ;;  %2526 = vmatpush.bf16.msrb.mxu0 %v5046_v30  ;;  %v6119_v30 = vld [vmem:[#allocation6 + $0x504] sm:$0xf] }
 0x148   : > { %v2151_v35 = vadd.f32 %v2150_v47, %v2102_v9  ;;  %2250 = vmatmul.bf16.gmra.mxu2 %v6671_v21  ;;  %2348 = vmatmul.bf16.gmra.mxu0 %v6749_v25  ;;  %v6169_v47 = vld [vmem:[#allocation6 + $0x694] sm:$0xf]  ;;  %v6012_v9 = vld [vmem:[#allocation6 + $0x1a8] sm:$0xf0] }
 0x149   : > { %2299 = vmatmul.bf16.gmra.mxu3 %v6675_v23  ;;  %v5842_v20 = vor.u32 %v6169_v47, %v5839_v29 }
 0x14a   : > { %2397 = vmatmul.bf16.gmra.mxu1 %v6753_v27  ;;  %v2200_v39 = vadd.f32 %v2199_v33, %v2151_v35  ;;  %v5206_v35 = vor.u32 %v6012_v9, %v5205_v42 }
 0x14b   : > { %v2055_v49 = vpop.f32.mrf.mxu2  ;;  %2477 = vmatpush.bf16.msrb.mxu3 %v5842_v20 }
 0x14c   : > { %3428 = vst [vmem:[#allocation2 + $0x148] sm:$0xff] %v2200_v39  ;;  %v2056_v46 = vadd.f32 %v2055_v49, %v2007_v41  ;;  %v2104_v28 = vpop.f32.mrf.mxu3  ;;  %v6124_v41 = vld [vmem:[#allocation6 + $0x52c] sm:$0xf]  ;;  %v5659_v39 = vld [vmem:[#allocation6 + $0x53c] sm:$0xf0]  ;;  %2575 = vmatpush.bf16.msrb.mxu1 %v5206_v35 }
 0x14d   : > { %v2155_v60 = vpop.f32.mrf.mxu0  ;;  %v6164_v49 = vld [vmem:[#allocation6 + $0x66c] sm:$0xf]  ;;  %v5662_v58 = vor.u32 %v6124_v41, %v5659_v39  ;;  %v5005_v41 = vld [vmem:[#allocation6 + $0x8] sm:$0xf]  ;;  %v5962_v39 = vld [vmem:[#allocation6 + $0x18] sm:$0xf0] }
 0x14e   : > { %v2105_v54 = vadd.f32 %v2104_v28, %v2056_v46 }
 0x14f   : > { %v2204_v13 = vpop.f32.mrf.mxu1  ;;  %2429 = vmatpush.bf16.msrb.mxu2 %v5662_v58  ;;  %v6002_v58 = vld [vmem:[#allocation6 + $0x158] sm:$0xf0] }
 0x150   : > { %v2154_v1 = vadd.f32 %v2153_v45, %v2105_v54  ;;  %v5025_v54 = vld [vmem:[#allocation6 + $0x30] sm:$0xf] }
 0x152   : > { %v2203_v37 = vadd.f32 %v2202_v44, %v2154_v1 }
 0x153   : > { %v2057_v33 = vpop.f32.mrf.mxu2 }
 0x154   : > { %3433 = vst [vmem:[#allocation2 + $0x218] sm:$0xff] %v2203_v37  ;;  %v2058_v12 = vadd.f32 %v2057_v33, %v2009_v40  ;;  %v2106_v31 = vpop.f32.mrf.mxu3 }
 0x155   : > { %v2158_v62 = vpop.f32.mrf.mxu0 }
 0x156   : > { %v2107_v32 = vadd.f32 %v2106_v31, %v2058_v12  ;;  %v5185_v31 = vld [vmem:[#allocation6 + $0x170] sm:$0xf] }
 0x157   : > { %v2207_v17 = vpop.f32.mrf.mxu1 }
 0x158   : > { %v2156_v5 = vadd.f32 %v2155_v60, %v2107_v32  ;;  %2255 = vmatmul.bf16.gmra.mxu2 %v6609_v3  ;;  %2353 = vmatmul.bf16.gmra.mxu0 %v6769_v61  ;;  %v5822_v60 = vor.u32 %v6164_v49, %v5819_v59  ;;  %v5639_v32 = vld [vmem:[#allocation6 + $0x514] sm:$0xf0] }
 0x159   : > { %2304 = vmatmul.bf16.gmra.mxu3 %v6613_v8 }
 0x15a   : > { %2402 = vmatmul.bf16.gmra.mxu1 %v6775_v2  ;;  %v2205_v19 = vadd.f32 %v2204_v13, %v2156_v5  ;;  %2478 = vmatpush.bf16.msrb.mxu3 %v5822_v60  ;;  %v5967_v13 = vld [vmem:[#allocation6 + $0x40] sm:$0xf0] }
 0x15b   : > { %v2060_v26 = vpop.f32.mrf.mxu2  ;;  %v5026_v29 = vor.u32 %v5967_v13, %v5025_v54  ;;  %v8460_v54 = vld [vmem:[#allocation56_spill] sm:$0xff] }
 0x15c   : > { %3438 = vst [vmem:[#allocation2 + $0x78] sm:$0xff] %v2205_v19  ;;  %v2061_v22 = vadd.f32 %v2060_v26, %v6785_v34  ;;  %v2109_v45 = vpop.f32.mrf.mxu3  ;;  %v5642_v26 = vor.u32 %v6119_v30, %v5639_v32 }
 0x15d   : > { %v2160_v44 = vpop.f32.mrf.mxu0  ;;  %2527 = vmatpush.bf16.msrb.mxu0 %v5026_v29  ;;  %v5465_v29 = vld [vmem:[#allocation6 + $0x3a0] sm:$0xf] }
 0x15e   : > { %v2110_v46 = vadd.f32 %v2109_v45, %v2061_v22  ;;  %v5799_v22 = vld [vmem:[#allocation6 + $0x654] sm:$0xf0]  ;;  %2430 = vmatpush.bf16.msrb.mxu2 %v5642_v26 }
 0x15f   : > { %v2209_v28 = vpop.f32.mrf.mxu1 }
 0x160   : > { %v2159_v36 = vadd.f32 %v2158_v62, %v2110_v46  ;;  %v5186_v62 = vor.u32 %v6007_v15, %v5185_v31  ;;  %v5006_v46 = vor.u32 %v5962_v39, %v5005_v41  ;;  %v5785_v15 = vld [vmem:[#allocation6 + $0x620] sm:$0xf] }
 0x161   : > { %v8463_v41 = vld [vmem:[#allocation57_spill] sm:$0xff] }
 0x162   : > { %v2208_v4 = vadd.f32 %v2207_v17, %v2159_v36  ;;  %v6159_v17 = vld [vmem:[#allocation6 + $0x644] sm:$0xf]  ;;  %2576 = vmatpush.bf16.msrb.mxu1 %v5186_v62  ;;  %2528 = vmatpush.bf16.msrb.mxu0 %v5006_v46  ;;  %v8465_v46 = vld [vmem:[#allocation60_spill] sm:$0xff] }
 0x163   : > { %v2062_v10 = vpop.f32.mrf.mxu2  ;;  %v5802_v45 = vor.u32 %v6159_v17, %v5799_v22 }
 0x164   : > { %3443 = vst [vmem:[#allocation2 + $0x30] sm:$0xff] %v2208_v4  ;;  %v2063_v34 = vadd.f32 %v2062_v10, %v6803_v14  ;;  %v2111_v47 = vpop.f32.mrf.mxu3  ;;  %v8458_v10 = vld [vmem:[#allocation23_spill] sm:$0xff] }
 0x165   : > { %v2163_v38 = vpop.f32.mrf.mxu0  ;;  %2479 = vmatpush.bf16.msrb.mxu3 %v5802_v45 }
 0x166   : > { %v2112_v20 = vadd.f32 %v2111_v47, %v2063_v34  ;;  %v8459_v34 = vld [vmem:[#allocation54_spill] sm:$0xff] }
 0x167   : > { %v2212_v1 = vpop.f32.mrf.mxu1 }
 0x168   : > { %v2161_v40 = vadd.f32 %v2160_v44, %v2112_v20  ;;  %2260 = vmatmul.bf16.gmra.mxu2 %v6629_v63  ;;  %2358 = vmatmul.bf16.gmra.mxu0 %v6799_v11  ;;  %v6077_v20 = vld [vmem:[#allocation6 + $0x3b0] sm:$0xf0] }
 0x169   : > { %2309 = vmatmul.bf16.gmra.mxu3 %v6633_v6 }
 0x16a   : > { %2407 = vmatmul.bf16.gmra.mxu1 %v6807_v24  ;;  %v2210_v37 = vadd.f32 %v2209_v28, %v2161_v40  ;;  %v5165_v28 = vld [vmem:[#allocation6 + $0x148] sm:$0xf]  ;;  %v5466_v40 = vor.u32 %v6077_v20, %v5465_v29 }
 0x16b   : > { %v2065_v33 = vpop.f32.mrf.mxu2  ;;  %v5166_v36 = vor.u32 %v6002_v58, %v5165_v28  ;;  %v5445_v28 = vld [vmem:[#allocation6 + $0x378] sm:$0xf]  ;;  %v6072_v58 = vld [vmem:[#allocation6 + $0x388] sm:$0xf0] }
 0x16c   : > { %3448 = vst [vmem:[#allocation2 + $0x1f0] sm:$0xff] %v2210_v37  ;;  %v2066_v14 = vadd.f32 %v2065_v33, %v6817_v57  ;;  %v2114_v12 = vpop.f32.mrf.mxu3  ;;  %v5625_v37 = vld [vmem:[#allocation6 + $0x4e0] sm:$0xf]  ;;  %v6117_v33 = vld [vmem:[#allocation6 + $0x4f0] sm:$0xf0]  ;;  %2619 = vmatpush.bf16.msra.mxu2 %v5466_v40 }
 0x16d   : > { %v2165_v51 = vpop.f32.mrf.mxu0  ;;  %2577 = vmatpush.bf16.msrb.mxu1 %v5166_v36  ;;  %v5626_v31 = vor.u32 %v6117_v33, %v5625_v37  ;;  %v5446_v36 = vor.u32 %v6072_v58, %v5445_v28  ;;  %v5765_v40 = vld [vmem:[#allocation6 + $0x5f8] sm:$0xf]  ;;  %v6152_v37 = vld [vmem:[#allocation6 + $0x608] sm:$0xf0]  ;;  %v5585_v28 = vld [vmem:[#allocation6 + $0x490] sm:$0xf] }
 0x16e   : > { %v2115_v5 = vadd.f32 %v2114_v12, %v2066_v14 }
 0x16f   : > { %v2214_v19 = vpop.f32.mrf.mxu1  ;;  %2668 = vmatpush.bf16.msra.mxu3 %v5626_v31 }
 0x170   : > { %v2164_v42 = vadd.f32 %v2163_v38, %v2115_v5  ;;  %v8461_v5 = vld [vmem:[#allocation59_spill] sm:$0xff]  ;;  %2620 = vmatpush.bf16.msra.mxu2 %v5446_v36 }
 0x172   : > { %v2213_v9 = vadd.f32 %v2212_v1, %v2164_v42 }
 0x173   : > { %v2067_v44 = vpop.f32.mrf.mxu2 }
 0x174   : > { %3453 = vst [vmem:[#allocation2 + $0x98] sm:$0xff] %v2213_v9  ;;  %v2068_v57 = vadd.f32 %v2067_v44, %v6835_v43  ;;  %v2116_v35 = vpop.f32.mrf.mxu3  ;;  %v5945_v9 = vld [vmem:[#allocation6 + $0x760] sm:$0xf]  ;;  %v6197_v44 = vld [vmem:[#allocation6 + $0x770] sm:$0xf0] }
 0x175   : > { %v2168_v49 = vpop.f32.mrf.mxu0  ;;  %v5946_v39 = vor.u32 %v6197_v44, %v5945_v9  ;;  %v8469_v9 = vld [vmem:[#allocation14_spill] sm:$0xff] }
 0x176   : > { %v2117_v59 = vadd.f32 %v2116_v35, %v2068_v57  ;;  %v8462_v35 = vld [vmem:[#allocation25_spill] sm:$0xff] }
 0x177   : > { %v2217_v60 = vpop.f32.mrf.mxu1  ;;  %2766 = vmatpush.bf16.msra.mxu1 %v5946_v39  ;;  %v6067_v39 = vld [vmem:[#allocation6 + $0x360] sm:$0xf0] }
 0x178   : > { %v2166_v4 = vadd.f32 %v2165_v51, %v2117_v59  ;;  %2265 = vmatmul.bf16.gmra.mxu2 %v6649_v52  ;;  %2363 = vmatmul.bf16.gmra.mxu0 %v6831_v56  ;;  %v6157_v51 = vld [vmem:[#allocation6 + $0x630] sm:$0xf0]  ;;  %v5605_v59 = vld [vmem:[#allocation6 + $0x4b8] sm:$0xf] }
 0x179   : > { %2314 = vmatmul.bf16.gmra.mxu3 %v8458_v10  ;;  %v5786_v30 = vor.u32 %v6157_v51, %v5785_v15  ;;  %v8467_v15 = vld [vmem:[#allocation63_spill] sm:$0xff] }
 0x17a   : > { %2412 = vmatmul.bf16.gmra.mxu1 %v8459_v34  ;;  %v2215_v43 = vadd.f32 %v2214_v19, %v2166_v4  ;;  %v6112_v4 = vld [vmem:[#allocation6 + $0x4c8] sm:$0xf0] }
 0x17b   : > { %v2070_v47 = vpop.f32.mrf.mxu2  ;;  %2717 = vmatpush.bf16.msra.mxu0 %v5786_v30 }
 0x17c   : > { %3458 = vst [vmem:[#allocation2 + $0x1c0] sm:$0xff] %v2215_v43  ;;  %v2071_v13 = vadd.f32 %v2070_v47, %v8460_v54  ;;  %v2119_v38 = vpop.f32.mrf.mxu3  ;;  %v5606_v47 = vor.u32 %v6112_v4, %v5605_v59  ;;  %v8466_v54 = vld [vmem:[#allocation62_spill] sm:$0xff] }
 0x17d   : > { %v2170_v1 = vpop.f32.mrf.mxu0 }
 0x17e   : > { %v2120_v14 = vadd.f32 %v2119_v38, %v2071_v13  ;;  %2669 = vmatpush.bf16.msra.mxu3 %v5606_v47 }
 0x17f   : > { %v2219_v12 = vpop.f32.mrf.mxu1 }
 0x180   : > { %v2169_v62 = vadd.f32 %v2168_v49, %v2120_v14  ;;  %v8464_v49 = vld [vmem:[#allocation27_spill] sm:$0xff]  ;;  %v5766_v14 = vor.u32 %v6152_v37, %v5765_v40 }
 0x182   : > { %v2218_v32 = vadd.f32 %v2217_v60, %v2169_v62  ;;  %2718 = vmatpush.bf16.msra.mxu0 %v5766_v14 }
 0x183   : > { %v2072_v17 = vpop.f32.mrf.mxu2 }
 0x184   : > { %3463 = vst [vmem:[#allocation2 + $0x1f8] sm:$0xff] %v2218_v32  ;;  %v2073_v19 = vadd.f32 %v2072_v17, %v8461_v5  ;;  %v2121_v26 = vpop.f32.mrf.mxu3  ;;  %v5925_v5 = vld [vmem:[#allocation6 + $0x738] sm:$0xf] }
 0x185   : > { %v2173_v22 = vpop.f32.mrf.mxu0 }
 0x186   : > { %v2122_v45 = vadd.f32 %v2121_v26, %v2073_v19  ;;  %v6192_v19 = vld [vmem:[#allocation6 + $0x748] sm:$0xf0] }
 0x187   : > { %v2222_v42 = vpop.f32.mrf.mxu1  ;;  %v5926_v44 = vor.u32 %v6192_v19, %v5925_v5  ;;  %v6062_v19 = vld [vmem:[#allocation6 + $0x338] sm:$0xf0] }
 0x188   : > { %v2171_v57 = vadd.f32 %v2170_v1, %v2122_v45  ;;  %2270 = vmatmul.bf16.gmra.mxu2 %v8462_v35  ;;  %2368 = vmatmul.bf16.gmra.mxu0 %v8463_v41  ;;  %v8468_v45 = vld [vmem:[#allocation30_spill] sm:$0xff] }
 0x189   : > { %2319 = vmatmul.bf16.gmra.mxu3 %v8464_v49  ;;  %2767 = vmatpush.bf16.msra.mxu1 %v5926_v44 }
 0x18a   : > { %2417 = vmatmul.bf16.gmra.mxu1 %v8465_v46  ;;  %v2220_v60 = vadd.f32 %v2219_v12, %v2171_v57  ;;  %v5425_v57 = vld [vmem:[#allocation6 + $0x350] sm:$0xf] }
 0x18b   : > { %v2075_v43 = vpop.f32.mrf.mxu2  ;;  %v5426_v59 = vor.u32 %v6067_v39, %v5425_v57  ;;  %v6102_v39 = vld [vmem:[#allocation6 + $0x478] sm:$0xf0] }
 0x18c   : > { %3468 = vst [vmem:[#allocation2 + $0x2a0] sm:$0xff] %v2220_v60  ;;  %v2076_v13 = vadd.f32 %v2075_v43, %v8466_v54  ;;  %v2124_v38 = vpop.f32.mrf.mxu3  ;;  %v6107_v60 = vld [vmem:[#allocation6 + $0x4a0] sm:$0xf0] }
 0x18d   : > { %v2175_v29 = vpop.f32.mrf.mxu0  ;;  %v5586_v4 = vor.u32 %v6107_v60, %v5585_v28  ;;  %2621 = vmatpush.bf16.msra.mxu2 %v5426_v59 }
 0x18e   : > { %v2125_v20 = vadd.f32 %v2124_v38, %v2076_v13 }
 0x18f   : > { %v2224_v1 = vpop.f32.mrf.mxu1  ;;  %2670 = vmatpush.bf16.msra.mxu3 %v5586_v4 }
 0x190   : > { %v2174_v33 = vadd.f32 %v2173_v22, %v2125_v20  ;;  %v8470_v22 = vld [vmem:[#allocation32_spill] sm:$0xff]  ;;  %v6147_v20 = vld [vmem:[#allocation6 + $0x5e0] sm:$0xf0] }
 0x192   : > { %v2223_v31 = vadd.f32 %v2222_v42, %v2174_v33  ;;  %v8471_v42 = vld [vmem:[#allocation16_spill] sm:$0xff] }
 0x193   : > { %v2077_v12 = vpop.f32.mrf.mxu2 }
 0x194   : > { %3473 = vst [vmem:[#allocation2] sm:$0xff] %v2223_v31  ;;  %v2078_v51 = vadd.f32 %v2077_v12, %v8467_v15  ;;  %v2126_v62 = vpop.f32.mrf.mxu3 }
 0x195   : > { %v2334_v30 = vpop.f32.mrf.mxu0 }
 0x196   : > { %v2127_v32 = vadd.f32 %v2126_v62, %v2078_v51  ;;  %v5905_v51 = vld [vmem:[#allocation6 + $0x710] sm:$0xf]  ;;  %v6187_v62 = vld [vmem:[#allocation6 + $0x720] sm:$0xf0] }
 0x197   : > { %v2383_v17 = vpop.f32.mrf.mxu1  ;;  %v5906_v5 = vor.u32 %v6187_v62, %v5905_v51  ;;  %v6182_v51 = vld [vmem:[#allocation6 + $0x6f8] sm:$0xf0]  ;;  %v8474_v62 = vld [vmem:[#allocation37_spill] sm:$0xff] }
 0x198   : > { %v2176_v26 = vadd.f32 %v2175_v29, %v2127_v32  ;;  %2431 = vmatmul.bf16.vlgmr.msrb.gmra.mxu2 %v8468_v45  ;;  %2529 = vmatmul.bf16.vlgmr.msrb.gmra.mxu0 %v8469_v9  ;;  %v5745_v29 = vld [vmem:[#allocation6 + $0x5d0] sm:$0xf]  ;;  %v8472_v32 = vld [vmem:[#allocation33_spill] sm:$0xff] }
 0x199   : > { %2480 = vmatmul.bf16.vlgmr.msrb.gmra.mxu3 %v8470_v22  ;;  %v5746_v40 = vor.u32 %v6147_v20, %v5745_v29  ;;  %2768 = vmatpush.bf16.msra.mxu1 %v5906_v5 }
 0x19a   : > { %2578 = vmatmul.bf16.vlgmr.msrb.gmra.mxu1 %v8471_v42  ;;  %v2225_v58 = vadd.f32 %v2224_v1, %v2176_v26  ;;  %v5565_v26 = vld [vmem:[#allocation6 + $0x468] sm:$0xf] }
 0x19b   : > { %v2236_v36 = vpop.f32.mrf.mxu2  ;;  %2719 = vmatpush.bf16.msra.mxu0 %v5746_v40 }
 0x19c   : > { %3478 = vst [vmem:[#allocation2 + $0xb0] sm:$0xff] %v2225_v58  ;;  %v2285_v43 = vpop.f32.mrf.mxu3  ;;  %v5566_v58 = vor.u32 %v6102_v39, %v5565_v26  ;;  %v6097_v39 = vld [vmem:[#allocation6 + $0x450] sm:$0xf0] }
 0x19d   : > { %v2286_v47 = vadd.f32 %v2285_v43, %v2236_v36  ;;  %v2336_v54 = vpop.f32.mrf.mxu0 }
 0x19e   : > { %2671 = vmatpush.bf16.msra.mxu3 %v5566_v58 }
 0x19f   : > { %v2385_v13 = vpop.f32.mrf.mxu1  ;;  %v2335_v38 = vadd.f32 %v2334_v30, %v2286_v47  ;;  %v8473_v30 = vld [vmem:[#allocation35_spill] sm:$0xff]  ;;  %v5725_v47 = vld [vmem:[#allocation6 + $0x5a8] sm:$0xf] }
 0x1a1   : > { %v6949_v37 = vadd.f32 %v2383_v17, %v2335_v38  ;;  %v5405_v17 = vld [vmem:[#allocation6 + $0x328] sm:$0xf] }
 0x1a2   : > { %v5406_v57 = vor.u32 %v6062_v19, %v5405_v17  ;;  %v6057_v17 = vld [vmem:[#allocation6 + $0x310] sm:$0xf0]  ;;  %v5545_v19 = vld [vmem:[#allocation6 + $0x440] sm:$0xf] }
 0x1a3   : > { %v2238_v1 = vpop.f32.mrf.mxu2  ;;  %v5546_v58 = vor.u32 %v6097_v39, %v5545_v19  ;;  %v8476_v19 = vld [vmem:[#allocation41_spill] sm:$0xff]  ;;  %v6052_v39 = vld [vmem:[#allocation6 + $0x2e8] sm:$0xf0] }
 0x1a4   : > { %v2287_v33 = vpop.f32.mrf.mxu3  ;;  %2622 = vmatpush.bf16.msra.mxu2 %v5406_v57 }
 0x1a5   : > { %v2288_v14 = vadd.f32 %v2287_v33, %v2238_v1  ;;  %v2339_v31 = vpop.f32.mrf.mxu0  ;;  %2672 = vmatpush.bf16.msra.mxu3 %v5546_v58 }
 0x1a7   : > { %v2388_v12 = vpop.f32.mrf.mxu1  ;;  %v2337_v15 = vadd.f32 %v2336_v54, %v2288_v14  ;;  %v6142_v54 = vld [vmem:[#allocation6 + $0x5b8] sm:$0xf0] }
 0x1a8   : > { %2436 = vmatmul.bf16.gmra.mxu2 %v8472_v32  ;;  %2534 = vmatmul.bf16.gmra.mxu0 %v6631_v0  ;;  %v5726_v38 = vor.u32 %v6142_v54, %v5725_v47  ;;  %v5705_v54 = vld [vmem:[#allocation6 + $0x580] sm:$0xf]  ;;  %v6162_v0 = vld [vmem:[#allocation6 + $0x658] sm:$0xf0] }
 0x1a9   : > { %2485 = vmatmul.bf16.gmra.mxu3 %v8473_v30  ;;  %v6955_v44 = vadd.f32 %v2385_v13, %v2337_v15  ;;  %v5885_v15 = vld [vmem:[#allocation6 + $0x6e8] sm:$0xf] }
 0x1aa   : > { %2583 = vmatmul.bf16.gmra.mxu1 %v6635_v7  ;;  %2720 = vmatpush.bf16.msra.mxu0 %v5726_v38  ;;  %v5886_v5 = vor.u32 %v6182_v51, %v5885_v15  ;;  %v6137_v38 = vld [vmem:[#allocation6 + $0x590] sm:$0xf0] }
 0x1ab   : > { %v2241_v28 = vpop.f32.mrf.mxu2 }
 0x1ac   : > { %v2290_v59 = vpop.f32.mrf.mxu3  ;;  %2769 = vmatpush.bf16.msra.mxu1 %v5886_v5 }
 0x1ad   : > { %v2291_v60 = vadd.f32 %v2290_v59, %v2241_v28  ;;  %v2341_v36 = vpop.f32.mrf.mxu0 }
 0x1af   : > { %v2390_v4 = vpop.f32.mrf.mxu1  ;;  %v2340_v43 = vadd.f32 %v2339_v31, %v2291_v60  ;;  %v8475_v31 = vld [vmem:[#allocation39_spill] sm:$0xff] }
 0x1b1   : > { %v6957_v29 = vadd.f32 %v2388_v12, %v2340_v43  ;;  %v5385_v12 = vld [vmem:[#allocation6 + $0x300] sm:$0xf] }
 0x1b2   : > { %v5386_v57 = vor.u32 %v6057_v17, %v5385_v12  ;;  %v5865_v12 = vld [vmem:[#allocation6 + $0x6c0] sm:$0xf]  ;;  %v6177_v17 = vld [vmem:[#allocation6 + $0x6d0] sm:$0xf0] }
 0x1b3   : > { %v2243_v13 = vpop.f32.mrf.mxu2 }
 0x1b4   : > { %v2292_v20 = vpop.f32.mrf.mxu3  ;;  %2623 = vmatpush.bf16.msra.mxu2 %v5386_v57  ;;  %v5866_v57 = vor.u32 %v6177_v17, %v5865_v12  ;;  %v6132_v12 = vld [vmem:[#allocation6 + $0x568] sm:$0xf0] }
 0x1b5   : > { %v2293_v40 = vadd.f32 %v2292_v20, %v2243_v13  ;;  %v2344_v1 = vpop.f32.mrf.mxu0  ;;  %v5706_v13 = vor.u32 %v6137_v38, %v5705_v54 }
 0x1b6   : > { %2770 = vmatpush.bf16.msra.mxu1 %v5866_v57 }
 0x1b7   : > { %v2393_v33 = vpop.f32.mrf.mxu1  ;;  %v2342_v14 = vadd.f32 %v2341_v36, %v2293_v40  ;;  %2721 = vmatpush.bf16.msra.mxu0 %v5706_v13 }
 0x1b8   : > { %2441 = vmatmul.bf16.gmra.mxu2 %v8474_v62  ;;  %2539 = vmatmul.bf16.gmra.mxu0 %v6651_v53 }
 0x1b9   : > { %2490 = vmatmul.bf16.gmra.mxu3 %v8475_v31  ;;  %v6963_v26 = vadd.f32 %v2390_v4, %v2342_v14 }
 0x1ba   : > { %2588 = vmatmul.bf16.gmra.mxu1 %v6655_v55 }
 0x1bb   : > { %v2246_v28 = vpop.f32.mrf.mxu2 }
 0x1bc   : > { %v2295_v59 = vpop.f32.mrf.mxu3 }
 0x1bd   : > { %v2296_v60 = vadd.f32 %v2295_v59, %v2246_v28  ;;  %v2346_v36 = vpop.f32.mrf.mxu0  ;;  %v5525_v28 = vld [vmem:[#allocation6 + $0x418] sm:$0xf] }
 0x1bf   : > { %v2395_v43 = vpop.f32.mrf.mxu1  ;;  %v2345_v47 = vadd.f32 %v2344_v1, %v2296_v60  ;;  %v8477_v1 = vld [vmem:[#allocation43_spill] sm:$0xff]  ;;  %v6092_v60 = vld [vmem:[#allocation6 + $0x428] sm:$0xf0] }
 0x1c1   : > { %v6965_v20 = vadd.f32 %v2393_v33, %v2345_v47  ;;  %v5365_v33 = vld [vmem:[#allocation6 + $0x2d8] sm:$0xf]  ;;  %v5526_v47 = vor.u32 %v6092_v60, %v5525_v28  ;;  %v6172_v60 = vld [vmem:[#allocation6 + $0x6a8] sm:$0xf0] }
 0x1c2   : > { %v5366_v59 = vor.u32 %v6052_v39, %v5365_v33  ;;  %v5845_v28 = vld [vmem:[#allocation6 + $0x698] sm:$0xf] }
 0x1c3   : > { %v2248_v4 = vpop.f32.mrf.mxu2  ;;  %2673 = vmatpush.bf16.msra.mxu3 %v5526_v47  ;;  %v6047_v47 = vld [vmem:[#allocation6 + $0x2c0] sm:$0xf0] }
 0x1c4   : > { %v2297_v40 = vpop.f32.mrf.mxu3  ;;  %2624 = vmatpush.bf16.msra.mxu2 %v5366_v59  ;;  %v8478_v59 = vld [vmem:[#allocation45_spill] sm:$0xff] }
 0x1c5   : > { %v2298_v14 = vadd.f32 %v2297_v40, %v2248_v4  ;;  %v2349_v15 = vpop.f32.mrf.mxu0 }
 0x1c7   : > { %v2398_v51 = vpop.f32.mrf.mxu1  ;;  %v2347_v5 = vadd.f32 %v2346_v36, %v2298_v14  ;;  %v5685_v14 = vld [vmem:[#allocation6 + $0x558] sm:$0xf] }
 0x1c8   : > { %2446 = vmatmul.bf16.gmra.mxu2 %v8476_v19  ;;  %2544 = vmatmul.bf16.gmra.mxu0 %v6671_v21  ;;  %v5686_v17 = vor.u32 %v6132_v12, %v5685_v14  ;;  %v6087_v14 = vld [vmem:[#allocation6 + $0x400] sm:$0xf0] }
 0x1c9   : > { %2495 = vmatmul.bf16.gmra.mxu3 %v8477_v1  ;;  %v6971_v58 = vadd.f32 %v2395_v43, %v2347_v5 }
 0x1ca   : > { %2593 = vmatmul.bf16.gmra.mxu1 %v6675_v23  ;;  %2722 = vmatpush.bf16.msra.mxu0 %v5686_v17 }
 0x1cb   : > { %v2251_v36 = vpop.f32.mrf.mxu2 }
 0x1cc   : > { %v2300_v54 = vpop.f32.mrf.mxu3 }
 0x1cd   : > { %v2301_v38 = vadd.f32 %v2300_v54, %v2251_v36  ;;  %v2351_v13 = vpop.f32.mrf.mxu0  ;;  %v5846_v36 = vor.u32 %v6172_v60, %v5845_v28  ;;  %v5505_v54 = vld [vmem:[#allocation6 + $0x3f0] sm:$0xf] }
 0x1ce   : > { %v5506_v12 = vor.u32 %v6087_v14, %v5505_v54  ;;  %v5665_v60 = vld [vmem:[#allocation6 + $0x530] sm:$0xf]  ;;  %v6167_v14 = vld [vmem:[#allocation6 + $0x680] sm:$0xf0] }
 0x1cf   : > { %v2400_v4 = vpop.f32.mrf.mxu1  ;;  %v2350_v40 = vadd.f32 %v2349_v15, %v2301_v38  ;;  %v8479_v15 = vld [vmem:[#allocation47_spill] sm:$0xff]  ;;  %2771 = vmatpush.bf16.msra.mxu1 %v5846_v36 }
 0x1d0   : > { %2674 = vmatpush.bf16.msra.mxu3 %v5506_v12  ;;  %v5825_v54 = vld [vmem:[#allocation6 + $0x670] sm:$0xf] }
 0x1d1   : > { %v6973_v23 = vadd.f32 %v2398_v51, %v2350_v40  ;;  %v5345_v51 = vld [vmem:[#allocation6 + $0x2b0] sm:$0xf] }
 0x1d2   : > { %v5346_v40 = vor.u32 %v6047_v47, %v5345_v51 }
 0x1d3   : > { %v2253_v43 = vpop.f32.mrf.mxu2 }
 0x1d4   : > { %v2302_v5 = vpop.f32.mrf.mxu3  ;;  %2625 = vmatpush.bf16.msra.mxu2 %v5346_v40  ;;  %v8480_v40 = vld [vmem:[#allocation49_spill] sm:$0xff] }
 0x1d5   : > { %v2303_v57 = vadd.f32 %v2302_v5, %v2253_v43  ;;  %v2354_v33 = vpop.f32.mrf.mxu0 }
 0x1d7   : > { %v2403_v39 = vpop.f32.mrf.mxu1  ;;  %v2352_v21 = vadd.f32 %v2351_v13, %v2303_v57 }
 0x1d8   : > { %2451 = vmatmul.bf16.gmra.mxu2 %v8478_v59  ;;  %2549 = vmatmul.bf16.gmra.mxu0 %v6609_v3  ;;  %v6127_v3 = vld [vmem:[#allocation6 + $0x540] sm:$0xf0] }
 0x1d9   : > { %2500 = vmatmul.bf16.gmra.mxu3 %v8479_v15  ;;  %v6979_v38 = vadd.f32 %v2400_v4, %v2352_v21 }
 0x1da   : > { %2598 = vmatmul.bf16.gmra.mxu1 %v6613_v8  ;;  %v5666_v8 = vor.u32 %v6127_v3, %v5665_v60  ;;  %v5325_v3 = vld [vmem:[#allocation6 + $0x288] sm:$0xf] }
 0x1db   : > { %v2256_v13 = vpop.f32.mrf.mxu2 }
 0x1dc   : > { %v2305_v17 = vpop.f32.mrf.mxu3  ;;  %2723 = vmatpush.bf16.msra.mxu0 %v5666_v8  ;;  %v5485_v8 = vld [vmem:[#allocation6 + $0x3c8] sm:$0xf] }
 0x1dd   : > { %v2306_v43 = vadd.f32 %v2305_v17, %v2256_v13  ;;  %v2356_v5 = vpop.f32.mrf.mxu0  ;;  %v5826_v13 = vor.u32 %v6167_v14, %v5825_v54  ;;  %v5645_v14 = vld [vmem:[#allocation6 + $0x508] sm:$0xf] }
 0x1df   : > { %v2405_v57 = vpop.f32.mrf.mxu1  ;;  %v2355_v28 = vadd.f32 %v2354_v33, %v2306_v43  ;;  %v8481_v33 = vld [vmem:[#allocation51_spill] sm:$0xff]  ;;  %2772 = vmatpush.bf16.msra.mxu1 %v5826_v13  ;;  %v6082_v43 = vld [vmem:[#allocation6 + $0x3d8] sm:$0xf0] }
 0x1e1   : > { %v6981_v55 = vadd.f32 %v2403_v39, %v2355_v28  ;;  %v6042_v39 = vld [vmem:[#allocation6 + $0x298] sm:$0xf0]  ;;  %v5486_v28 = vor.u32 %v6082_v43, %v5485_v8 }
 0x1e2   : > { %v5326_v17 = vor.u32 %v6042_v39, %v5325_v3  ;;  %v5805_v39 = vld [vmem:[#allocation6 + $0x648] sm:$0xf] }
 0x1e3   : > { %v2258_v21 = vpop.f32.mrf.mxu2  ;;  %2675 = vmatpush.bf16.msra.mxu3 %v5486_v28  ;;  %v5806_v43 = vor.u32 %v6162_v0, %v5805_v39  ;;  %v6075_v39 = vld [vmem:[#allocation6 + $0x3a4] sm:$0xf] }
 0x1e4   : > { %v2307_v4 = vpop.f32.mrf.mxu3  ;;  %2626 = vmatpush.bf16.msra.mxu2 %v5326_v17 }
 0x1e5   : > { %v2308_v36 = vadd.f32 %v2307_v4, %v2258_v21  ;;  %v2359_v51 = vpop.f32.mrf.mxu0  ;;  %2773 = vmatpush.bf16.msra.mxu1 %v5806_v43 }
 0x1e7   : > { %v2408_v47 = vpop.f32.mrf.mxu1  ;;  %v2357_v53 = vadd.f32 %v2356_v5, %v2308_v36 }
 0x1e8   : > { %2456 = vmatmul.bf16.gmra.mxu2 %v8480_v40  ;;  %2554 = vmatmul.bf16.gmra.mxu0 %v6629_v63  ;;  %v6122_v63 = vld [vmem:[#allocation6 + $0x518] sm:$0xf0] }
 0x1e9   : > { %2505 = vmatmul.bf16.gmra.mxu3 %v8481_v33  ;;  %v6987_v12 = vadd.f32 %v2405_v57, %v2357_v53 }
 0x1ea   : > { %2603 = vmatmul.bf16.gmra.mxu1 %v6633_v6  ;;  %v5646_v6 = vor.u32 %v6122_v63, %v5645_v14  ;;  %v5995_v63 = vld [vmem:[#allocation6 + $0x124] sm:$0xf] }
 0x1eb   : > { %v2261_v5 = vpop.f32.mrf.mxu2 }
 0x1ec   : > { %v2310_v60 = vpop.f32.mrf.mxu3  ;;  %2724 = vmatpush.bf16.msra.mxu0 %v5646_v6  ;;  %v6035_v6 = vld [vmem:[#allocation6 + $0x264] sm:$0xf] }
 0x1ed   : > { %v2311_v21 = vadd.f32 %v2310_v60, %v2261_v5  ;;  %v2361_v4 = vpop.f32.mrf.mxu0  ;;  %v8482_v5 = vld [vmem:[#allocation53_spill] sm:$0xff] }
 0x1ef   : > { %v2410_v36 = vpop.f32.mrf.mxu1  ;;  %v2360_v54 = vadd.f32 %v2359_v51, %v2311_v21  ;;  %v8483_v51 = vld [vmem:[#allocation55_spill] sm:$0xff]  ;;  %v5307_v21 = vld [vmem:[#allocation6 + $0x274] sm:$0xf0] }
 0x1f0   : > { %v5310_v14 = vor.u32 %v6035_v6, %v5307_v21  ;;  %v8484_v6 = vld [vmem:[#allocation58_spill] sm:$0xff]  ;;  %v5627_v21 = vld [vmem:[#allocation6 + $0x4f4] sm:$0xf0] }
 0x1f1   : > { %v6989_v7 = vadd.f32 %v2408_v47, %v2360_v54  ;;  %v5147_v47 = vld [vmem:[#allocation6 + $0x134] sm:$0xf0] }
 0x1f2   : > { %v5150_v60 = vor.u32 %v5995_v63, %v5147_v47  ;;  %2864 = vmatpush.bf16.msrb.mxu3 %v5310_v14  ;;  %v6030_v14 = vld [vmem:[#allocation6 + $0x23c] sm:$0xf] }
 0x1f3   : > { %v2263_v53 = vpop.f32.mrf.mxu2 }
 0x1f4   : > { %v2312_v57 = vpop.f32.mrf.mxu3  ;;  %2815 = vmatpush.bf16.msrb.mxu2 %v5150_v60  ;;  %v6115_v60 = vld [vmem:[#allocation6 + $0x4e4] sm:$0xf] }
 0x1f5   : > { %v2313_v13 = vadd.f32 %v2312_v57, %v2263_v53  ;;  %v2364_v3 = vpop.f32.mrf.mxu0 }
 0x1f7   : > { %v2413_v8 = vpop.f32.mrf.mxu1  ;;  %v2362_v17 = vadd.f32 %v2361_v4, %v2313_v13 }
 0x1f8   : > { %2461 = vmatmul.bf16.gmra.mxu2 %v8482_v5  ;;  %2559 = vmatmul.bf16.gmra.mxu0 %v6649_v52  ;;  %v5467_v52 = vld [vmem:[#allocation6 + $0x3b4] sm:$0xf0] }
 0x1f9   : > { %2510 = vmatmul.bf16.gmra.mxu3 %v8483_v51  ;;  %v6995_v28 = vadd.f32 %v2410_v36, %v2362_v17 }
 0x1fa   : > { %2608 = vmatmul.bf16.gmra.mxu1 %v8458_v10  ;;  %v5470_v10 = vor.u32 %v6075_v39, %v5467_v52  ;;  %v5630_v52 = vor.u32 %v6115_v60, %v5627_v21 }
 0x1fb   : > { %v2266_v54 = vpop.f32.mrf.mxu2 }
 0x1fc   : > { %v2315_v0 = vpop.f32.mrf.mxu3  ;;  %2913 = vmatpush.bf16.msrb.mxu0 %v5470_v10  ;;  %2962 = vmatpush.bf16.msrb.mxu1 %v5630_v52 }
 0x1fd   : > { %v2316_v4 = vadd.f32 %v2315_v0, %v2266_v54  ;;  %v2366_v53 = vpop.f32.mrf.mxu0  ;;  %v8485_v54 = vld [vmem:[#allocation61_spill] sm:$0xff]  ;;  %v5287_v0 = vld [vmem:[#allocation6 + $0x24c] sm:$0xf0] }
 0x1ff   : > { %v2415_v57 = vpop.f32.mrf.mxu1  ;;  %v2365_v13 = vadd.f32 %v2364_v3, %v2316_v4  ;;  %v5990_v3 = vld [vmem:[#allocation6 + $0xfc] sm:$0xf] }
 0x201   : > { %v6997_v42 = vadd.f32 %v2413_v8, %v2365_v13  ;;  %v5127_v8 = vld [vmem:[#allocation6 + $0x10c] sm:$0xf0] }
 0x203   : > { %v2268_v9 = vpop.f32.mrf.mxu2 }
 0x204   : > { %v2317_v36 = vpop.f32.mrf.mxu3 }
 0x205   : > { %v2318_v43 = vadd.f32 %v2317_v36, %v2268_v9  ;;  %v2369_v17 = vpop.f32.mrf.mxu0  ;;  %v5130_v9 = vor.u32 %v5990_v3, %v5127_v8 }
 0x207   : > { %v2418_v63 = vpop.f32.mrf.mxu1  ;;  %v2367_v47 = vadd.f32 %v2366_v53, %v2318_v43  ;;  %v5290_v53 = vor.u32 %v6030_v14, %v5287_v0  ;;  %2816 = vmatpush.bf16.msrb.mxu2 %v5130_v9  ;;  %v8486_v9 = vld [vmem:[#allocation29_spill] sm:$0xff]  ;;  %v6110_v0 = vld [vmem:[#allocation6 + $0x4bc] sm:$0xf] }
 0x208   : > { %2466 = vmatmul.bf16.gmra.mxu2 %v8484_v6  ;;  %2564 = vmatmul.bf16.gmra.mxu0 %v8462_v35 }
 0x209   : > { %2515 = vmatmul.bf16.gmra.mxu3 %v8485_v54  ;;  %v7003_v10 = vadd.f32 %v2415_v57, %v2367_v47  ;;  %v6070_v54 = vld [vmem:[#allocation6 + $0x37c] sm:$0xf] }
 0x20a   : > { %2613 = vmatmul.bf16.gmra.mxu1 %v8464_v49  ;;  %2865 = vmatpush.bf16.msrb.mxu3 %v5290_v53  ;;  %v5447_v49 = vld [vmem:[#allocation6 + $0x38c] sm:$0xf0] }
 0x20b   : > { %v2271_v4 = vpop.f32.mrf.mxu2  ;;  %v5450_v60 = vor.u32 %v6070_v54, %v5447_v49  ;;  %v5985_v49 = vld [vmem:[#allocation6 + $0xd4] sm:$0xf] }
 0x20c   : > { %v2320_v13 = vpop.f32.mrf.mxu3  ;;  %v6025_v54 = vld [vmem:[#allocation6 + $0x214] sm:$0xf] }
 0x20d   : > { %v2321_v39 = vadd.f32 %v2320_v13, %v2271_v4  ;;  %v2371_v36 = vpop.f32.mrf.mxu0  ;;  %2914 = vmatpush.bf16.msrb.mxu0 %v5450_v60  ;;  %v8487_v4 = vld [vmem:[#allocation31_spill] sm:$0xff]  ;;  %v5267_v13 = vld [vmem:[#allocation6 + $0x224] sm:$0xf0] }
 0x20f   : > { %v2420_v43 = vpop.f32.mrf.mxu1  ;;  %v2370_v35 = vadd.f32 %v2369_v17, %v2321_v39  ;;  %v5607_v17 = vld [vmem:[#allocation6 + $0x4cc] sm:$0xf0] }
 0x211   : > { %v7005_v21 = vadd.f32 %v2418_v63, %v2370_v35  ;;  %v5610_v35 = vor.u32 %v6110_v0, %v5607_v17  ;;  %v5107_v63 = vld [vmem:[#allocation6 + $0xe4] sm:$0xf0]  ;;  %v6065_v0 = vld [vmem:[#allocation6 + $0x354] sm:$0xf] }
 0x212   : > { %v5110_v53 = vor.u32 %v5985_v49, %v5107_v63  ;;  %v5427_v17 = vld [vmem:[#allocation6 + $0x364] sm:$0xf0] }
 0x213   : > { %v2273_v46 = vpop.f32.mrf.mxu2  ;;  %2963 = vmatpush.bf16.msrb.mxu1 %v5610_v35 }
 0x214   : > { %v2322_v57 = vpop.f32.mrf.mxu3  ;;  %2817 = vmatpush.bf16.msrb.mxu2 %v5110_v53  ;;  %v6105_v53 = vld [vmem:[#allocation6 + $0x494] sm:$0xf] }
 0x215   : > { %v2323_v47 = vadd.f32 %v2322_v57, %v2273_v46  ;;  %v2530_v3 = vpop.f32.mrf.mxu0 }
 0x217   : > { %v2579_v8 = vpop.f32.mrf.mxu1  ;;  %v2372_v52 = vadd.f32 %v2371_v36, %v2323_v47  ;;  %v5270_v36 = vor.u32 %v6025_v54, %v5267_v13 }
 0x218   : > { %v7007_v14 = vadd.f32 %v2579_v8, %v2530_v3  ;;  %2627 = vmatmul.bf16.vlgmr.msra.gmra.mxu2 %v8486_v9  ;;  %2725 = vmatmul.bf16.vlgmr.msra.gmra.mxu0 %v8468_v45 }
 0x219   : > { %2676 = vmatmul.bf16.vlgmr.msra.gmra.mxu3 %v8487_v4  ;;  %v7013_v46 = vadd.f32 %v2420_v43, %v2372_v52  ;;  %v5430_v43 = vor.u32 %v6065_v0, %v5427_v17 }
 0x21a   : > { %2774 = vmatmul.bf16.vlgmr.msra.gmra.mxu1 %v8470_v22  ;;  %2866 = vmatpush.bf16.msrb.mxu3 %v5270_v36 }
 0x21b   : > { %v2432_v39 = vpop.f32.mrf.mxu2  ;;  %2915 = vmatpush.bf16.msrb.mxu0 %v5430_v43 }
 0x21c   : > { %v2433_v60 = vadd.f32 %v2432_v39, %v6949_v37  ;;  %v2481_v57 = vpop.f32.mrf.mxu3  ;;  %v5587_v39 = vld [vmem:[#allocation6 + $0x4a4] sm:$0xf0] }
 0x21d   : > { %v2532_v47 = vpop.f32.mrf.mxu0  ;;  %v5590_v36 = vor.u32 %v6105_v53, %v5587_v39 }
 0x21e   : > { %v2482_v3 = vadd.f32 %v2481_v57, %v2433_v60  ;;  %v5980_v60 = vld [vmem:[#allocation6 + $0xac] sm:$0xf] }
 0x21f   : > { %v2581_v8 = vpop.f32.mrf.mxu1  ;;  %v6020_v57 = vld [vmem:[#allocation6 + $0x1ec] sm:$0xf]  ;;  %2964 = vmatpush.bf16.msrb.mxu1 %v5590_v36 }
 0x220   : > { %v7016_v22 = vadd.f32 %v2581_v8, %v2532_v47  ;;  %3404 = vst [vmem:[#allocation2 + $0x8] sm:$0xff] %v2482_v3  ;;  %v5247_v3 = vld [vmem:[#allocation6 + $0x1fc] sm:$0xf0] }
 0x221   : > { %v5250_v0 = vor.u32 %v6020_v57, %v5247_v3 }
 0x223   : > { %v2434_v52 = vpop.f32.mrf.mxu2  ;;  %2867 = vmatpush.bf16.msrb.mxu3 %v5250_v0 }
 0x224   : > { %v2435_v49 = vadd.f32 %v2434_v52, %v6955_v44  ;;  %v2483_v35 = vpop.f32.mrf.mxu3  ;;  %v5087_v44 = vld [vmem:[#allocation6 + $0xbc] sm:$0xf0] }
 0x225   : > { %v2535_v63 = vpop.f32.mrf.mxu0  ;;  %v5090_v47 = vor.u32 %v5980_v60, %v5087_v44 }
 0x226   : > { %v2484_v54 = vadd.f32 %v2483_v35, %v2435_v49 }
 0x227   : > { %v2584_v37 = vpop.f32.mrf.mxu1  ;;  %2818 = vmatpush.bf16.msrb.mxu2 %v5090_v47  ;;  %v6100_v47 = vld [vmem:[#allocation6 + $0x46c] sm:$0xf] }
 0x228   : > { %v7019_v13 = vadd.f32 %v2584_v37, %v2535_v63  ;;  %3409 = vst [vmem:[#allocation2 + $0x70] sm:$0xff] %v2484_v54  ;;  %2632 = vmatmul.bf16.gmra.mxu2 %v6709_v16  ;;  %2730 = vmatmul.bf16.gmra.mxu0 %v8472_v32  ;;  %v6060_v54 = vld [vmem:[#allocation6 + $0x32c] sm:$0xf]  ;;  %v5407_v37 = vld [vmem:[#allocation6 + $0x33c] sm:$0xf0] }
 0x229   : > { %2681 = vmatmul.bf16.gmra.mxu3 %v6713_v18  ;;  %v5410_v53 = vor.u32 %v6060_v54, %v5407_v37 }
 0x22a   : > { %2779 = vmatmul.bf16.gmra.mxu1 %v8473_v30 }
 0x22b   : > { %v2437_v8 = vpop.f32.mrf.mxu2  ;;  %2916 = vmatpush.bf16.msrb.mxu0 %v5410_v53 }
 0x22c   : > { %v2438_v17 = vadd.f32 %v2437_v8, %v6957_v29  ;;  %v2486_v43 = vpop.f32.mrf.mxu3  ;;  %v5567_v8 = vld [vmem:[#allocation6 + $0x47c] sm:$0xf0] }
 0x22d   : > { %v2537_v52 = vpop.f32.mrf.mxu0  ;;  %v5570_v0 = vor.u32 %v6100_v47, %v5567_v8 }
 0x22e   : > { %v2487_v49 = vadd.f32 %v2486_v43, %v2438_v17  ;;  %v5975_v17 = vld [vmem:[#allocation6 + $0x84] sm:$0xf] }
 0x22f   : > { %v2586_v35 = vpop.f32.mrf.mxu1  ;;  %v6015_v43 = vld [vmem:[#allocation6 + $0x1c4] sm:$0xf]  ;;  %2965 = vmatpush.bf16.msrb.mxu1 %v5570_v0 }
 0x230   : > { %v7026_v63 = vadd.f32 %v2586_v35, %v2537_v52  ;;  %3414 = vst [vmem:[#allocation2 + $0x160] sm:$0xff] %v2487_v49  ;;  %v5227_v49 = vld [vmem:[#allocation6 + $0x1d4] sm:$0xf0] }
 0x231   : > { %v5230_v54 = vor.u32 %v6015_v43, %v5227_v49 }
 0x233   : > { %v2439_v39 = vpop.f32.mrf.mxu2  ;;  %2868 = vmatpush.bf16.msrb.mxu3 %v5230_v54 }
 0x234   : > { %v2440_v60 = vadd.f32 %v2439_v39, %v6963_v26  ;;  %v2488_v36 = vpop.f32.mrf.mxu3  ;;  %v5067_v26 = vld [vmem:[#allocation6 + $0x94] sm:$0xf0] }
 0x235   : > { %v2540_v44 = vpop.f32.mrf.mxu0  ;;  %v5070_v52 = vor.u32 %v5975_v17, %v5067_v26 }
 0x236   : > { %v2489_v57 = vadd.f32 %v2488_v36, %v2440_v60 }
 0x237   : > { %v2589_v29 = vpop.f32.mrf.mxu1  ;;  %2819 = vmatpush.bf16.msrb.mxu2 %v5070_v52  ;;  %v6095_v52 = vld [vmem:[#allocation6 + $0x444] sm:$0xf] }
 0x238   : > { %v7029_v3 = vadd.f32 %v2589_v29, %v2540_v44  ;;  %3419 = vst [vmem:[#allocation2 + $0x50] sm:$0xff] %v2489_v57  ;;  %2637 = vmatmul.bf16.gmra.mxu2 %v6729_v48  ;;  %2735 = vmatmul.bf16.gmra.mxu0 %v8474_v62  ;;  %v6055_v57 = vld [vmem:[#allocation6 + $0x304] sm:$0xf]  ;;  %v5387_v29 = vld [vmem:[#allocation6 + $0x314] sm:$0xf0] }
 0x239   : > { %2686 = vmatmul.bf16.gmra.mxu3 %v6733_v50  ;;  %v5390_v47 = vor.u32 %v6055_v57, %v5387_v29 }
 0x23a   : > { %2784 = vmatmul.bf16.gmra.mxu1 %v8475_v31 }
 0x23b   : > { %v2442_v35 = vpop.f32.mrf.mxu2  ;;  %2917 = vmatpush.bf16.msrb.mxu0 %v5390_v47 }
 0x23c   : > { %v2443_v37 = vadd.f32 %v2442_v35, %v6965_v20  ;;  %v2491_v53 = vpop.f32.mrf.mxu3  ;;  %v5547_v35 = vld [vmem:[#allocation6 + $0x454] sm:$0xf0] }
 0x23d   : > { %v2542_v39 = vpop.f32.mrf.mxu0  ;;  %v5550_v54 = vor.u32 %v6095_v52, %v5547_v35 }
 0x23e   : > { %v2492_v60 = vadd.f32 %v2491_v53, %v2443_v37  ;;  %v5970_v37 = vld [vmem:[#allocation6 + $0x5c] sm:$0xf] }
 0x23f   : > { %v2591_v36 = vpop.f32.mrf.mxu1  ;;  %v6010_v53 = vld [vmem:[#allocation6 + $0x19c] sm:$0xf]  ;;  %2966 = vmatpush.bf16.msrb.mxu1 %v5550_v54 }
 0x240   : > { %v7036_v44 = vadd.f32 %v2591_v36, %v2542_v39  ;;  %3424 = vst [vmem:[#allocation2 + $0x240] sm:$0xff] %v2492_v60  ;;  %v5207_v60 = vld [vmem:[#allocation6 + $0x1ac] sm:$0xf0] }
 0x241   : > { %v5210_v57 = vor.u32 %v6010_v53, %v5207_v60 }
 0x243   : > { %v2444_v8 = vpop.f32.mrf.mxu2  ;;  %2869 = vmatpush.bf16.msrb.mxu3 %v5210_v57 }
 0x244   : > { %v2445_v17 = vadd.f32 %v2444_v8, %v6971_v58  ;;  %v2493_v0 = vpop.f32.mrf.mxu3  ;;  %v5047_v58 = vld [vmem:[#allocation6 + $0x6c] sm:$0xf0] }
 0x245   : > { %v2545_v26 = vpop.f32.mrf.mxu0  ;;  %v5050_v39 = vor.u32 %v5970_v37, %v5047_v58 }
 0x246   : > { %v2494_v43 = vadd.f32 %v2493_v0, %v2445_v17 }
 0x247   : > { %v2594_v20 = vpop.f32.mrf.mxu1  ;;  %2820 = vmatpush.bf16.msrb.mxu2 %v5050_v39  ;;  %v6090_v39 = vld [vmem:[#allocation6 + $0x41c] sm:$0xf] }
 0x248   : > { %v7039_v49 = vadd.f32 %v2594_v20, %v2545_v26  ;;  %3429 = vst [vmem:[#allocation2 + $0x190] sm:$0xff] %v2494_v43  ;;  %2642 = vmatmul.bf16.gmra.mxu2 %v6749_v25  ;;  %2740 = vmatmul.bf16.gmra.mxu0 %v8476_v19  ;;  %v6050_v43 = vld [vmem:[#allocation6 + $0x2dc] sm:$0xf]  ;;  %v5367_v20 = vld [vmem:[#allocation6 + $0x2ec] sm:$0xf0] }
 0x249   : > { %2691 = vmatmul.bf16.gmra.mxu3 %v6753_v27  ;;  %v5370_v52 = vor.u32 %v6050_v43, %v5367_v20 }
 0x24a   : > { %2789 = vmatmul.bf16.gmra.mxu1 %v8477_v1 }
 0x24b   : > { %v2447_v36 = vpop.f32.mrf.mxu2  ;;  %2918 = vmatpush.bf16.msrb.mxu0 %v5370_v52 }
 0x24c   : > { %v2448_v29 = vadd.f32 %v2447_v36, %v6973_v23  ;;  %v2496_v47 = vpop.f32.mrf.mxu3  ;;  %v5527_v36 = vld [vmem:[#allocation6 + $0x42c] sm:$0xf0] }
 0x24d   : > { %v2547_v8 = vpop.f32.mrf.mxu0  ;;  %v5530_v57 = vor.u32 %v6090_v39, %v5527_v36 }
 0x24e   : > { %v2497_v17 = vadd.f32 %v2496_v47, %v2448_v29  ;;  %v5965_v29 = vld [vmem:[#allocation6 + $0x34] sm:$0xf] }
 0x24f   : > { %v2596_v0 = vpop.f32.mrf.mxu1  ;;  %v6005_v47 = vld [vmem:[#allocation6 + $0x174] sm:$0xf]  ;;  %2967 = vmatpush.bf16.msrb.mxu1 %v5530_v57 }
 0x250   : > { %v7046_v26 = vadd.f32 %v2596_v0, %v2547_v8  ;;  %3434 = vst [vmem:[#allocation2 + $0x268] sm:$0xff] %v2497_v17  ;;  %v5187_v17 = vld [vmem:[#allocation6 + $0x184] sm:$0xf0] }
 0x251   : > { %v5190_v43 = vor.u32 %v6005_v47, %v5187_v17 }
 0x253   : > { %v2449_v35 = vpop.f32.mrf.mxu2  ;;  %2870 = vmatpush.bf16.msrb.mxu3 %v5190_v43 }
 0x254   : > { %v2450_v37 = vadd.f32 %v2449_v35, %v6979_v38  ;;  %v2498_v54 = vpop.f32.mrf.mxu3  ;;  %v5027_v38 = vld [vmem:[#allocation6 + $0x44] sm:$0xf0] }
 0x255   : > { %v2550_v58 = vpop.f32.mrf.mxu0  ;;  %v5030_v8 = vor.u32 %v5965_v29, %v5027_v38 }
 0x256   : > { %v2499_v53 = vadd.f32 %v2498_v54, %v2450_v37 }
 0x257   : > { %v2599_v23 = vpop.f32.mrf.mxu1  ;;  %2821 = vmatpush.bf16.msrb.mxu2 %v5030_v8  ;;  %v6085_v8 = vld [vmem:[#allocation6 + $0x3f4] sm:$0xf] }
 0x258   : > { %v7049_v60 = vadd.f32 %v2599_v23, %v2550_v58  ;;  %3439 = vst [vmem:[#allocation2 + $0x1a0] sm:$0xff] %v2499_v53  ;;  %2647 = vmatmul.bf16.gmra.mxu2 %v6769_v61  ;;  %2745 = vmatmul.bf16.gmra.mxu0 %v8478_v59  ;;  %v6045_v53 = vld [vmem:[#allocation6 + $0x2b4] sm:$0xf]  ;;  %v5347_v23 = vld [vmem:[#allocation6 + $0x2c4] sm:$0xf0] }
 0x259   : > { %2696 = vmatmul.bf16.gmra.mxu3 %v6775_v2  ;;  %v5350_v39 = vor.u32 %v6045_v53, %v5347_v23 }
 0x25a   : > { %2794 = vmatmul.bf16.gmra.mxu1 %v8479_v15 }
 0x25b   : > { %v2452_v0 = vpop.f32.mrf.mxu2  ;;  %2919 = vmatpush.bf16.msrb.mxu0 %v5350_v39 }
 0x25c   : > { %v2453_v20 = vadd.f32 %v2452_v0, %v6981_v55  ;;  %v2501_v52 = vpop.f32.mrf.mxu3  ;;  %v5507_v0 = vld [vmem:[#allocation6 + $0x404] sm:$0xf0] }
 0x25d   : > { %v2552_v35 = vpop.f32.mrf.mxu0  ;;  %v5510_v43 = vor.u32 %v6085_v8, %v5507_v0 }
 0x25e   : > { %v2502_v37 = vadd.f32 %v2501_v52, %v2453_v20  ;;  %v5960_v20 = vld [vmem:[#allocation6 + $0xc] sm:$0xf] }
 0x25f   : > { %v2601_v54 = vpop.f32.mrf.mxu1  ;;  %v6000_v52 = vld [vmem:[#allocation6 + $0x14c] sm:$0xf]  ;;  %2968 = vmatpush.bf16.msrb.mxu1 %v5510_v43 }
 0x260   : > { %v7056_v58 = vadd.f32 %v2601_v54, %v2552_v35  ;;  %3444 = vst [vmem:[#allocation2 + $0x80] sm:$0xff] %v2502_v37  ;;  %v5167_v37 = vld [vmem:[#allocation6 + $0x15c] sm:$0xf0] }
 0x261   : > { %v5170_v53 = vor.u32 %v6000_v52, %v5167_v37  ;;  %v6080_v52 = vld [vmem:[#allocation6 + $0x3cc] sm:$0xf] }
 0x263   : > { %v2454_v36 = vpop.f32.mrf.mxu2  ;;  %2871 = vmatpush.bf16.msrb.mxu3 %v5170_v53 }
 0x264   : > { %v2455_v29 = vadd.f32 %v2454_v36, %v6987_v12  ;;  %v2503_v57 = vpop.f32.mrf.mxu3  ;;  %v5007_v12 = vld [vmem:[#allocation6 + $0x1c] sm:$0xf0] }
 0x265   : > { %v2555_v38 = vpop.f32.mrf.mxu0  ;;  %v5010_v35 = vor.u32 %v5960_v20, %v5007_v12 }
 0x266   : > { %v2504_v47 = vadd.f32 %v2503_v57, %v2455_v29 }
 0x267   : > { %v2604_v55 = vpop.f32.mrf.mxu1  ;;  %2822 = vmatpush.bf16.msrb.mxu2 %v5010_v35 }
 0x268   : > { %v7059_v17 = vadd.f32 %v2604_v55, %v2555_v38  ;;  %3449 = vst [vmem:[#allocation2 + $0x128] sm:$0xff] %v2504_v47  ;;  %2652 = vmatmul.bf16.gmra.mxu2 %v6799_v11  ;;  %2750 = vmatmul.bf16.gmra.mxu0 %v8480_v40  ;;  %v6040_v47 = vld [vmem:[#allocation6 + $0x28c] sm:$0xf]  ;;  %v5327_v55 = vld [vmem:[#allocation6 + $0x29c] sm:$0xf0] }
 0x269   : > { %2701 = vmatmul.bf16.gmra.mxu3 %v6807_v24  ;;  %v5330_v8 = vor.u32 %v6040_v47, %v5327_v55  ;;  %v6464_v55 = vmov 0.0  }
 0x26a   : > { %2799 = vmatmul.bf16.gmra.mxu1 %v8481_v33  ;;  %3485 = vst [vmem:[#allocation2 + $0x158] sm:$0xff] %v6464_v55 }
 0x26b   : > { %v2457_v54 = vpop.f32.mrf.mxu2  ;;  %2920 = vmatpush.bf16.msrb.mxu0 %v5330_v8  ;;  %3484 = vst [vmem:[#allocation2 + $0x108] sm:$0xff] %v6464_v55 }
 0x26c   : > { %v2458_v23 = vadd.f32 %v2457_v54, %v6989_v7  ;;  %v2506_v39 = vpop.f32.mrf.mxu3  ;;  %v5487_v7 = vld [vmem:[#allocation6 + $0x3dc] sm:$0xf0]  ;;  %3486 = vst [vmem:[#allocation2 + $0x180] sm:$0xff] %v6464_v55 }
 0x26d   : > { %v2557_v36 = vpop.f32.mrf.mxu0  ;;  %v5490_v54 = vor.u32 %v6080_v52, %v5487_v7  ;;  %3487 = vst [vmem:[#allocation2 + $0x260] sm:$0xff] %v6464_v55 }
 0x26e   : > { %v2507_v29 = vadd.f32 %v2506_v39, %v2458_v23  ;;  %v6155_v23 = vld [vmem:[#allocation6 + $0x624] sm:$0xf] }
 0x26f   : > { %v2606_v57 = vpop.f32.mrf.mxu1  ;;  %v6195_v39 = vld [vmem:[#allocation6 + $0x764] sm:$0xf]  ;;  %2969 = vmatpush.bf16.msrb.mxu1 %v5490_v54  ;;  %v5153_v54 = vld [vmem:[#allocation6 + $0x128] sm:$0xf] }
 0x270   : > { %v7066_v38 = vadd.f32 %v2606_v57, %v2557_v36  ;;  %3454 = vst [vmem:[#allocation2 + $0x248] sm:$0xff] %v2507_v29  ;;  %v5947_v29 = vld [vmem:[#allocation6 + $0x774] sm:$0xf0] }
 0x271   : > { %v5950_v47 = vor.u32 %v6195_v39, %v5947_v29 }
 0x273   : > { %v2459_v0 = vpop.f32.mrf.mxu2  ;;  %3060 = vmatpush.bf16.msra.mxu3 %v5950_v47  ;;  %v8489_v47 = vld [vmem:[#allocation61_spill] sm:$0xff] }
 0x274   : > { %v2460_v20 = vadd.f32 %v2459_v0, %v6995_v28  ;;  %v2508_v43 = vpop.f32.mrf.mxu3  ;;  %v5787_v28 = vld [vmem:[#allocation6 + $0x634] sm:$0xf0] }
 0x275   : > { %v2560_v12 = vpop.f32.mrf.mxu0  ;;  %v5790_v36 = vor.u32 %v6155_v23, %v5787_v28  ;;  %v5998_v23 = vld [vmem:[#allocation6 + $0x138] sm:$0xf0] }
 0x276   : > { %v2509_v37 = vadd.f32 %v2508_v43, %v2460_v20 }
 0x277   : > { %v2609_v35 = vpop.f32.mrf.mxu1  ;;  %3011 = vmatpush.bf16.msra.mxu2 %v5790_v36 }
 0x278   : > { %v7069_v53 = vadd.f32 %v2609_v35, %v2560_v12  ;;  %3459 = vst [vmem:[#allocation2 + $0x1c8] sm:$0xff] %v2509_v37  ;;  %2657 = vmatmul.bf16.gmra.mxu2 %v6831_v56  ;;  %2755 = vmatmul.bf16.gmra.mxu0 %v8482_v5 }
 0x279   : > { %2706 = vmatmul.bf16.gmra.mxu3 %v8459_v34 }
 0x27a   : > { %2804 = vmatmul.bf16.gmra.mxu1 %v8483_v51  ;;  %v5993_v51 = vld [vmem:[#allocation6 + $0x110] sm:$0xf0] }
 0x27b   : > { %v2462_v57 = vpop.f32.mrf.mxu2 }
 0x27c   : > { %v2463_v8 = vadd.f32 %v2462_v57, %v6997_v42  ;;  %v2511_v0 = vpop.f32.mrf.mxu3  ;;  %v5154_v42 = vor.u32 %v5998_v23, %v5153_v54  ;;  %v8488_v57 = vld [vmem:[#allocation60_spill] sm:$0xff]  ;;  %v5927_v54 = vld [vmem:[#allocation6 + $0x74c] sm:$0xf0] }
 0x27d   : > { %v2562_v20 = vpop.f32.mrf.mxu0 }
 0x27e   : > { %v2512_v43 = vadd.f32 %v2511_v0, %v2463_v8  ;;  %3109 = vmatpush.bf16.msra.mxu0 %v5154_v42  ;;  %v5313_v0 = vld [vmem:[#allocation6 + $0x268] sm:$0xf] }
 0x27f   : > { %v2611_v12 = vpop.f32.mrf.mxu1 }
 0x280   : > { %v7076_v52 = vadd.f32 %v2611_v12, %v2562_v20  ;;  %3464 = vst [vmem:[#allocation2 + $0x38] sm:$0xff] %v2512_v43  ;;  %v6038_v20 = vld [vmem:[#allocation6 + $0x278] sm:$0xf0] }
 0x281   : > { %v6150_v43 = vld [vmem:[#allocation6 + $0x5fc] sm:$0xf] }
 0x283   : > { %v2464_v7 = vpop.f32.mrf.mxu2 }
 0x284   : > { %v2465_v37 = vadd.f32 %v2464_v7, %v7003_v10  ;;  %v2513_v35 = vpop.f32.mrf.mxu3  ;;  %v5314_v7 = vor.u32 %v6038_v20, %v5313_v0 }
 0x285   : > { %v2565_v28 = vpop.f32.mrf.mxu0 }
 0x286   : > { %v2514_v39 = vadd.f32 %v2513_v35, %v2465_v37  ;;  %v5767_v37 = vld [vmem:[#allocation6 + $0x60c] sm:$0xf0]  ;;  %v6190_v35 = vld [vmem:[#allocation6 + $0x73c] sm:$0xf]  ;;  %3158 = vmatpush.bf16.msra.mxu1 %v5314_v7  ;;  %v5293_v7 = vld [vmem:[#allocation6 + $0x240] sm:$0xf] }
 0x287   : > { %v2614_v36 = vpop.f32.mrf.mxu1  ;;  %v5770_v42 = vor.u32 %v6150_v43, %v5767_v37  ;;  %v6033_v37 = vld [vmem:[#allocation6 + $0x250] sm:$0xf0] }
 0x288   : > { %v7079_v29 = vadd.f32 %v2614_v36, %v2565_v28  ;;  %3469 = vst [vmem:[#allocation2 + $0x280] sm:$0xff] %v2514_v39  ;;  %2662 = vmatmul.bf16.gmra.mxu2 %v8463_v41  ;;  %2760 = vmatmul.bf16.gmra.mxu0 %v8484_v6  ;;  %v5930_v39 = vor.u32 %v6190_v35, %v5927_v54  ;;  %v5133_v6 = vld [vmem:[#allocation6 + $0x100] sm:$0xf]  ;;  %v6145_v35 = vld [vmem:[#allocation6 + $0x5d4] sm:$0xf] }
 0x289   : > { %2711 = vmatmul.bf16.gmra.mxu3 %v8488_v57  ;;  %3012 = vmatpush.bf16.msra.mxu2 %v5770_v42  ;;  %v5134_v20 = vor.u32 %v5993_v51, %v5133_v6  ;;  %v5294_v6 = vor.u32 %v6033_v37, %v5293_v7  ;;  %v6185_v54 = vld [vmem:[#allocation6 + $0x714] sm:$0xf]  ;;  %v5988_v7 = vld [vmem:[#allocation6 + $0xe8] sm:$0xf0] }
 0x28a   : > { %2809 = vmatmul.bf16.gmra.mxu1 %v8489_v47  ;;  %3061 = vmatpush.bf16.msra.mxu3 %v5930_v39 }
 0x28b   : > { %v2467_v10 = vpop.f32.mrf.mxu2  ;;  %3110 = vmatpush.bf16.msra.mxu0 %v5134_v20  ;;  %3159 = vmatpush.bf16.msra.mxu1 %v5294_v6 }
 0x28c   : > { %v2468_v55 = vadd.f32 %v2467_v10, %v7005_v21  ;;  %v2516_v8 = vpop.f32.mrf.mxu3 }
 0x28d   : > { %v2567_v12 = vpop.f32.mrf.mxu0 }
 0x28e   : > { %v2517_v23 = vadd.f32 %v2516_v8, %v2468_v55  ;;  %v8490_v55 = vld [vmem:[#allocation14_spill] sm:$0xff]  ;;  %v8491_v8 = vld [vmem:[#allocation16_spill] sm:$0xff] }
 0x28f   : > { %v2616_v28 = vpop.f32.mrf.mxu1 }
 0x290   : > { %v7086_v36 = vadd.f32 %v2616_v28, %v2567_v12  ;;  %3474 = vst [vmem:[#allocation2 + $0x170] sm:$0xff] %v2517_v23 }
 0x293   : > { %v2469_v21 = vpop.f32.mrf.mxu2 }
 0x294   : > { %v2470_v10 = vadd.f32 %v2469_v21, %v7013_v46  ;;  %v2518_v47 = vpop.f32.mrf.mxu3 }
 0x295   : > { %v2726_v0 = vpop.f32.mrf.mxu0 }
 0x296   : > { %v2519_v5 = vadd.f32 %v2518_v47, %v2470_v10  ;;  %v5747_v47 = vld [vmem:[#allocation6 + $0x5e4] sm:$0xf0] }
 0x297   : > { %v2775_v33 = vpop.f32.mrf.mxu1  ;;  %v5750_v42 = vor.u32 %v6145_v35, %v5747_v47 }
 0x298   : > { %3479 = vst [vmem:[#allocation2 + $0x200] sm:$0xff] %v2519_v5  ;;  %2823 = vmatmul.bf16.vlgmr.msrb.gmra.mxu2 %v8490_v55  ;;  %2921 = vmatmul.bf16.vlgmr.msrb.gmra.mxu0 %v8486_v9  ;;  %v5907_v5 = vld [vmem:[#allocation6 + $0x724] sm:$0xf0]  ;;  %v5113_v9 = vld [vmem:[#allocation6 + $0xd8] sm:$0xf] }
 0x299   : > { %2872 = vmatmul.bf16.vlgmr.msrb.gmra.mxu3 %v8491_v8  ;;  %v5910_v39 = vor.u32 %v6185_v54, %v5907_v5  ;;  %3013 = vmatpush.bf16.msra.mxu2 %v5750_v42  ;;  %v5114_v40 = vor.u32 %v5988_v7, %v5113_v9  ;;  %v6140_v42 = vld [vmem:[#allocation6 + $0x5ac] sm:$0xf] }
 0x29a   : > { %2970 = vmatmul.bf16.vlgmr.msrb.gmra.mxu1 %v8487_v4 }
 0x29b   : > { %v2628_v43 = vpop.f32.mrf.mxu2  ;;  %3062 = vmatpush.bf16.msra.mxu3 %v5910_v39  ;;  %3111 = vmatpush.bf16.msra.mxu0 %v5114_v40  ;;  %v5727_v39 = vld [vmem:[#allocation6 + $0x5bc] sm:$0xf0] }
 0x29c   : > { %v2629_v46 = vadd.f32 %v2628_v43, %v7007_v14  ;;  %v2677_v12 = vpop.f32.mrf.mxu3  ;;  %v3488_v14 = vlaneseq }
 0x29d   : > { %v2728_v51 = vpop.f32.mrf.mxu0 }
 0x29e   : > { %v2678_v23 = vadd.f32 %v2677_v12, %v2629_v46  ;;  %v7095_v12 = vand.u32 127, %v3488_v14 }
 0x29f   : > { %v2777_v28 = vpop.f32.mrf.mxu1 }
 0x2a0   : > { %v2727_v21 = vadd.f32 %v2726_v0, %v2678_v23  ;;  %v8492_v0 = vld [vmem:[#allocation18_spill] sm:$0xff]  ;;  %vm3490_vm0 = vcmp.ge.s32.totalorder %v7095_v12, 64 }
 0x2a1   : > { %v6028_v23 = vld [vmem:[#allocation6 + $0x228] sm:$0xf0] }
 0x2a2   : > { %v2776_v10 = vadd.f32 %v2775_v33, %v2727_v21  ;;  %v8493_v33 = vld [vmem:[#allocation20_spill] sm:$0xff] }
 0x2a3   : > { %v2630_v20 = vpop.f32.mrf.mxu2 }
 0x2a4   : > { %3405 = vst [vmem:[#allocation2 + $0x40] sm:$0xff] %v2776_v10  ;;  %v2631_v43 = vadd.f32 %v2630_v20, %v7016_v22  ;;  %v2679_v4 = vpop.f32.mrf.mxu3 }
 0x2a5   : > { %v2731_v37 = vpop.f32.mrf.mxu0 }
 0x2a6   : > { %v2680_v15 = vadd.f32 %v2679_v4, %v2631_v43  ;;  %v6180_v43 = vld [vmem:[#allocation6 + $0x6ec] sm:$0xf] }
 0x2a7   : > { %v2780_v46 = vpop.f32.mrf.mxu1 }
 0x2a8   : > { %v2729_v35 = vadd.f32 %v2728_v51, %v2680_v15  ;;  %2828 = vmatmul.bf16.gmra.mxu2 %v8492_v0  ;;  %2926 = vmatmul.bf16.gmra.mxu0 %v6709_v16  ;;  %v5273_v51 = vld [vmem:[#allocation6 + $0x218] sm:$0xf] }
 0x2a9   : > { %2877 = vmatmul.bf16.gmra.mxu3 %v8493_v33  ;;  %v5274_v14 = vor.u32 %v6028_v23, %v5273_v51 }
 0x2aa   : > { %2975 = vmatmul.bf16.gmra.mxu1 %v6713_v18  ;;  %v2778_v22 = vadd.f32 %v2777_v28, %v2729_v35 }
 0x2ab   : > { %v2633_v6 = vpop.f32.mrf.mxu2  ;;  %v3607_v47 = vld [vmem:[#allocation2 + $0x40] sm:$0xfc]  ;;  %3160 = vmatpush.bf16.msra.mxu1 %v5274_v14 }
 0x2ac   : > { %v3624_v9 = vld [vmem:[#allocation2 + $0x40] sm:$0xf8]  ;;  %v2634_v4 = vadd.f32 %v2633_v6, %v7019_v13  ;;  %v2682_v54 = vpop.f32.mrf.mxu3  ;;  %v3644_v40 = vrot.slane %v3607_v47, 7  ;;  %v3645_v15 = vrot.slane %v2778_v22, 7  ;;  %v5887_v13 = vld [vmem:[#allocation6 + $0x6fc] sm:$0xf0]  ;;  %v5730_v6 = vor.u32 %v6140_v42, %v5727_v39 }
 0x2ad   : > { %v2733_v5 = vpop.f32.mrf.mxu0  ;;  %v5890_v47 = vor.u32 %v6180_v43, %v5887_v13  ;;  %v5983_v42 = vld [vmem:[#allocation6 + $0xc0] sm:$0xf0]  ;;  %v8494_v13 = vld [vmem:[#allocation22_spill] sm:$0xff] }
 0x2ae   : > { %v2683_v21 = vadd.f32 %v2682_v54, %v2634_v4  ;;  %v3646_v28 = vsel %vm3643_vm1, %v3644_v40, %v3645_v15  ;;  %v7106_v20 = vsel %vm3490_vm0, %v3624_v9, %v3644_v40  ;;  %3014 = vmatpush.bf16.msra.mxu2 %v5730_v6 }
 0x2af   : > { %v2782_v10 = vpop.f32.mrf.mxu1  ;;  %v7110_v7 = vsel %vm3490_vm0, %v2778_v22, %v3646_v28  ;;  %v3729_v35 = vrot.slane %v7106_v20, 3  ;;  %3063 = vmatpush.bf16.msra.mxu3 %v5890_v47  ;;  %v5093_v28 = vld [vmem:[#allocation6 + $0xb0] sm:$0xf] }
 0x2b0   : > { %v2732_v18 = vadd.f32 %v2731_v37, %v2683_v21  ;;  %v3730_v4 = vrot.slane %v7110_v7, 3  ;;  %v5094_v37 = vor.u32 %v5983_v42, %v5093_v28  ;;  %v6135_v42 = vld [vmem:[#allocation6 + $0x584] sm:$0xf] }
 0x2b2   : > { %v2781_v54 = vadd.f32 %v2780_v46, %v2732_v18  ;;  %v3731_v9 = vsel %vm3728_vm2, %v3729_v35, %v3730_v4  ;;  %3112 = vmatpush.bf16.msra.mxu0 %v5094_v37  ;;  %v8495_v35 = vld [vmem:[#allocation24_spill] sm:$0xff] }
 0x2b3   : > { %v2635_v40 = vpop.f32.mrf.mxu2  ;;  %3778 = vrot.lane.b32.xlu0 %v3731_v9, %s6465_s21  ;;  %v5707_v37 = vld [vmem:[#allocation6 + $0x594] sm:$0xf0] }
 0x2b4   : > { %v2636_v22 = vadd.f32 %v2635_v40, %v7026_v63  ;;  %v2684_v51 = vpop.f32.mrf.mxu3  ;;  %v3647_v23 = vrot.slane %v2781_v54, 7  ;;  %v5253_v40 = vld [vmem:[#allocation6 + $0x1f0] sm:$0xf] }
 0x2b5   : > { %v2736_v39 = vpop.f32.mrf.mxu0 }
 0x2b6   : > { %v2685_v21 = vadd.f32 %v2684_v51, %v2636_v22  ;;  %v3648_v14 = vsel %vm3643_vm1, %v3645_v15, %v3647_v23  ;;  %v6023_v22 = vld [vmem:[#allocation6 + $0x200] sm:$0xf0] }
 0x2b7   : > { %v2785_v43 = vpop.f32.mrf.mxu1  ;;  %v7120_v18 = vsel %vm3490_vm0, %v2781_v54, %v3648_v14  ;;  %v5254_v28 = vor.u32 %v6023_v22, %v5253_v40 }
 0x2b8   : > { %v2734_v46 = vadd.f32 %v2733_v5, %v2685_v21  ;;  %2833 = vmatmul.bf16.gmra.mxu2 %v8494_v13  ;;  %2931 = vmatmul.bf16.gmra.mxu0 %v6729_v48  ;;  %v3732_v63 = vrot.slane %v7120_v18, 3  ;;  %v6175_v21 = vld [vmem:[#allocation6 + $0x6c4] sm:$0xf] }
 0x2b9   : > { %2882 = vmatmul.bf16.gmra.mxu3 %v8495_v35  ;;  %3161 = vmatpush.bf16.msra.mxu1 %v5254_v28 }
 0x2ba   : > { %2980 = vmatmul.bf16.gmra.mxu1 %v6733_v50  ;;  %v2783_v6 = vadd.f32 %v2782_v10, %v2734_v46  ;;  %v3733_v47 = vsel %vm3728_vm2, %v3730_v4, %v3732_v63  ;;  %v5710_v46 = vor.u32 %v6135_v42, %v5707_v37  ;;  %v5867_v4 = vld [vmem:[#allocation6 + $0x6d4] sm:$0xf0]  ;;  %v5073_v37 = vld [vmem:[#allocation6 + $0x88] sm:$0xf] }
 0x2bb   : > { %v2638_v15 = vpop.f32.mrf.mxu2  ;;  %3780 = vrot.lane.b32.xlu0 %v3733_v47, %s6465_s21 }
 0x2bc   : > { %v2639_v54 = vadd.f32 %v2638_v15, %v7029_v3  ;;  %v2687_v9 = vpop.f32.mrf.mxu3  ;;  %v3649_v5 = vrot.slane %v2783_v6, 7  ;;  %v5870_v3 = vor.u32 %v6175_v21, %v5867_v4  ;;  %3015 = vmatpush.bf16.msra.mxu2 %v5710_v46  ;;  %v8496_v46 = vld [vmem:[#allocation26_spill] sm:$0xff]  ;;  %v8497_v4 = vld [vmem:[#allocation28_spill] sm:$0xff] }
 0x2bd   : > { %v2738_v51 = vpop.f32.mrf.mxu0 }
 0x2be   : > { %v2688_v14 = vadd.f32 %v2687_v9, %v2639_v54  ;;  %v3650_v10 = vsel %vm3643_vm1, %v3647_v23, %v3649_v5  ;;  %3064 = vmatpush.bf16.msra.mxu3 %v5870_v3 }
 0x2bf   : > { %v2787_v48 = vpop.f32.mrf.mxu1  ;;  %v7133_v47 = vsel %vm3490_vm0, %v2783_v6, %v3650_v10  ;;  %v5978_v6 = vld [vmem:[#allocation6 + $0x98] sm:$0xf0] }
 0x2c0   : > { %v2737_v15 = vadd.f32 %v2736_v39, %v2688_v14  ;;  %v3734_v50 = vrot.slane %v7133_v47, 3  ;;  %v5074_v28 = vor.u32 %v5978_v6, %v5073_v37  ;;  %v6130_v6 = vld [vmem:[#allocation6 + $0x55c] sm:$0xf] }
 0x2c2   : > { %v2786_v40 = vadd.f32 %v2785_v43, %v2737_v15  ;;  %v3735_v22 = vsel %vm3728_vm2, %v3732_v63, %v3734_v50  ;;  %3113 = vmatpush.bf16.msra.mxu0 %v5074_v28  ;;  %v5687_v28 = vld [vmem:[#allocation6 + $0x56c] sm:$0xf0] }
 0x2c3   : > { %v2640_v54 = vpop.f32.mrf.mxu2  ;;  %3782 = vrot.lane.b32.xlu1 %v3735_v22, %s6465_s21 }
 0x2c4   : > { %v2641_v23 = vadd.f32 %v2640_v54, %v7036_v44  ;;  %v2689_v9 = vpop.f32.mrf.mxu3  ;;  %v3651_v42 = vrot.slane %v2786_v40, 7  ;;  %v5233_v54 = vld [vmem:[#allocation6 + $0x1c8] sm:$0xf] }
 0x2c5   : > { %v2741_v10 = vpop.f32.mrf.mxu0 }
 0x2c6   : > { %v2690_v21 = vadd.f32 %v2689_v9, %v2641_v23  ;;  %v3652_v14 = vsel %vm3643_vm1, %v3649_v5, %v3651_v42  ;;  %v6018_v23 = vld [vmem:[#allocation6 + $0x1d8] sm:$0xf0] }
 0x2c7   : > { %v2790_v39 = vpop.f32.mrf.mxu1  ;;  %v7142_v43 = vsel %vm3490_vm0, %v2786_v40, %v3652_v14  ;;  %v5234_v37 = vor.u32 %v6018_v23, %v5233_v54 }
 0x2c8   : > { %v2739_v63 = vadd.f32 %v2738_v51, %v2690_v21  ;;  %2838 = vmatmul.bf16.gmra.mxu2 %v8496_v46  ;;  %2936 = vmatmul.bf16.gmra.mxu0 %v6749_v25  ;;  %v3736_v44 = vrot.slane %v7142_v43, 3  ;;  %v6170_v21 = vld [vmem:[#allocation6 + $0x69c] sm:$0xf] }
 0x2c9   : > { %2887 = vmatmul.bf16.gmra.mxu3 %v8497_v4  ;;  %3162 = vmatpush.bf16.msra.mxu1 %v5234_v37 }
 0x2ca   : > { %2985 = vmatmul.bf16.gmra.mxu1 %v6753_v27  ;;  %v2788_v3 = vadd.f32 %v2787_v48, %v2739_v63  ;;  %v3737_v15 = vsel %vm3728_vm2, %v3734_v50, %v3736_v44  ;;  %v5690_v63 = vor.u32 %v6130_v6, %v5687_v28  ;;  %v5847_v50 = vld [vmem:[#allocation6 + $0x6ac] sm:$0xf0]  ;;  %v5053_v28 = vld [vmem:[#allocation6 + $0x60] sm:$0xf] }
 0x2cb   : > { %v2643_v5 = vpop.f32.mrf.mxu2  ;;  %3784 = vrot.lane.b32.xlu1 %v3737_v15, %s6465_s21 }
 0x2cc   : > { %v2644_v40 = vadd.f32 %v2643_v5, %v7039_v49  ;;  %v2692_v22 = vpop.f32.mrf.mxu3  ;;  %v3653_v51 = vrot.slane %v2788_v3, 7  ;;  %v5850_v49 = vor.u32 %v6170_v21, %v5847_v50  ;;  %3016 = vmatpush.bf16.msra.mxu2 %v5690_v63  ;;  %v8498_v63 = vld [vmem:[#allocation13_spill] sm:$0xff]  ;;  %v8499_v50 = vld [vmem:[#allocation15_spill] sm:$0xff] }
 0x2cd   : > { %v2743_v9 = vpop.f32.mrf.mxu0 }
 0x2ce   : > { %v2693_v14 = vadd.f32 %v2692_v22, %v2644_v40  ;;  %v3654_v48 = vsel %vm3643_vm1, %v3651_v42, %v3653_v51  ;;  %3065 = vmatpush.bf16.msra.mxu3 %v5850_v49 }
 0x2cf   : > { %v2792_v25 = vpop.f32.mrf.mxu1  ;;  %v7155_v15 = vsel %vm3490_vm0, %v2788_v3, %v3654_v48  ;;  %v5973_v3 = vld [vmem:[#allocation6 + $0x70] sm:$0xf0] }
 0x2d0   : > { %v2742_v5 = vadd.f32 %v2741_v10, %v2693_v14  ;;  %v3738_v27 = vrot.slane %v7155_v15, 3  ;;  %v5054_v37 = vor.u32 %v5973_v3, %v5053_v28  ;;  %v6125_v3 = vld [vmem:[#allocation6 + $0x534] sm:$0xf] }
 0x2d2   : > { %v2791_v54 = vadd.f32 %v2790_v39, %v2742_v5  ;;  %v3739_v23 = vsel %vm3728_vm2, %v3736_v44, %v3738_v27  ;;  %3114 = vmatpush.bf16.msra.mxu0 %v5054_v37  ;;  %v5667_v37 = vld [vmem:[#allocation6 + $0x544] sm:$0xf0] }
 0x2d3   : > { %v2645_v40 = vpop.f32.mrf.mxu2  ;;  %3786 = vrot.lane.b32.xlu2 %v3739_v23, %s6465_s21 }
 0x2d4   : > { %v2646_v42 = vadd.f32 %v2645_v40, %v7046_v26  ;;  %v2694_v22 = vpop.f32.mrf.mxu3  ;;  %v3655_v6 = vrot.slane %v2791_v54, 7  ;;  %v5213_v40 = vld [vmem:[#allocation6 + $0x1a0] sm:$0xf] }
 0x2d5   : > { %v2746_v48 = vpop.f32.mrf.mxu0 }
 0x2d6   : > { %v2695_v21 = vadd.f32 %v2694_v22, %v2646_v42  ;;  %v3656_v14 = vsel %vm3643_vm1, %v3653_v51, %v3655_v6  ;;  %v6013_v42 = vld [vmem:[#allocation6 + $0x1b0] sm:$0xf0] }
 0x2d7   : > { %v2795_v10 = vpop.f32.mrf.mxu1  ;;  %v7164_v39 = vsel %vm3490_vm0, %v2791_v54, %v3656_v14  ;;  %v5214_v28 = vor.u32 %v6013_v42, %v5213_v40 }
 0x2d8   : > { %v2744_v44 = vadd.f32 %v2743_v9, %v2695_v21  ;;  %2843 = vmatmul.bf16.gmra.mxu2 %v8498_v63  ;;  %2941 = vmatmul.bf16.gmra.mxu0 %v6769_v61  ;;  %v3740_v26 = vrot.slane %v7164_v39, 3  ;;  %v6165_v21 = vld [vmem:[#allocation6 + $0x674] sm:$0xf] }
 0x2d9   : > { %2892 = vmatmul.bf16.gmra.mxu3 %v8499_v50  ;;  %3163 = vmatpush.bf16.msra.mxu1 %v5214_v28 }
 0x2da   : > { %2990 = vmatmul.bf16.gmra.mxu1 %v6775_v2  ;;  %v2793_v49 = vadd.f32 %v2792_v25, %v2744_v44  ;;  %v3741_v5 = vsel %vm3728_vm2, %v3738_v27, %v3740_v26  ;;  %v5670_v44 = vor.u32 %v6125_v3, %v5667_v37  ;;  %v5827_v27 = vld [vmem:[#allocation6 + $0x684] sm:$0xf0]  ;;  %v5033_v37 = vld [vmem:[#allocation6 + $0x38] sm:$0xf] }
 0x2db   : > { %v2648_v51 = vpop.f32.mrf.mxu2  ;;  %3788 = vrot.lane.b32.xlu2 %v3741_v5, %s6465_s21 }
 0x2dc   : > { %v2649_v54 = vadd.f32 %v2648_v51, %v7049_v60  ;;  %v2697_v23 = vpop.f32.mrf.mxu3  ;;  %v3657_v9 = vrot.slane %v2793_v49, 7  ;;  %v5830_v60 = vor.u32 %v6165_v21, %v5827_v27  ;;  %3017 = vmatpush.bf16.msra.mxu2 %v5670_v44  ;;  %v8500_v44 = vld [vmem:[#allocation17_spill] sm:$0xff]  ;;  %v8501_v27 = vld [vmem:[#allocation19_spill] sm:$0xff] }
 0x2dd   : > { %v2748_v22 = vpop.f32.mrf.mxu0 }
 0x2de   : > { %v2698_v14 = vadd.f32 %v2697_v23, %v2649_v54  ;;  %v3658_v25 = vsel %vm3643_vm1, %v3655_v6, %v3657_v9  ;;  %3066 = vmatpush.bf16.msra.mxu3 %v5830_v60 }
 0x2df   : > { %v2797_v61 = vpop.f32.mrf.mxu1  ;;  %v7177_v5 = vsel %vm3490_vm0, %v2793_v49, %v3658_v25  ;;  %v5968_v49 = vld [vmem:[#allocation6 + $0x48] sm:$0xf0] }
 0x2e0   : > { %v2747_v51 = vadd.f32 %v2746_v48, %v2698_v14  ;;  %v3742_v2 = vrot.slane %v7177_v5, 3  ;;  %v5034_v28 = vor.u32 %v5968_v49, %v5033_v37  ;;  %v6120_v49 = vld [vmem:[#allocation6 + $0x50c] sm:$0xf] }
 0x2e2   : > { %v2796_v40 = vadd.f32 %v2795_v10, %v2747_v51  ;;  %v3743_v42 = vsel %vm3728_vm2, %v3740_v26, %v3742_v2  ;;  %3115 = vmatpush.bf16.msra.mxu0 %v5034_v28  ;;  %v5647_v28 = vld [vmem:[#allocation6 + $0x51c] sm:$0xf0] }
 0x2e3   : > { %v2650_v54 = vpop.f32.mrf.mxu2  ;;  %3790 = vrot.lane.b32.xlu0 %v3743_v42, %s6465_s21 }
 0x2e4   : > { %v2651_v6 = vadd.f32 %v2650_v54, %v7056_v58  ;;  %v2699_v23 = vpop.f32.mrf.mxu3  ;;  %v3659_v3 = vrot.slane %v2796_v40, 7  ;;  %v5193_v54 = vld [vmem:[#allocation6 + $0x178] sm:$0xf] }
 0x2e5   : > { %v2751_v25 = vpop.f32.mrf.mxu0 }
 0x2e6   : > { %v2700_v21 = vadd.f32 %v2699_v23, %v2651_v6  ;;  %v3660_v14 = vsel %vm3643_vm1, %v3657_v9, %v3659_v3  ;;  %v6008_v6 = vld [vmem:[#allocation6 + $0x188] sm:$0xf0] }
 0x2e7   : > { %v2800_v48 = vpop.f32.mrf.mxu1  ;;  %v7186_v10 = vsel %vm3490_vm0, %v2796_v40, %v3660_v14  ;;  %v5194_v37 = vor.u32 %v6008_v6, %v5193_v54 }
 0x2e8   : > { %v2749_v26 = vadd.f32 %v2748_v22, %v2700_v21  ;;  %2848 = vmatmul.bf16.gmra.mxu2 %v8500_v44  ;;  %2946 = vmatmul.bf16.gmra.mxu0 %v6799_v11  ;;  %v3744_v58 = vrot.slane %v7186_v10, 3  ;;  %v6160_v21 = vld [vmem:[#allocation6 + $0x64c] sm:$0xf] }
 0x2e9   : > { %2897 = vmatmul.bf16.gmra.mxu3 %v8501_v27  ;;  %3164 = vmatpush.bf16.msra.mxu1 %v5194_v37 }
 0x2ea   : > { %2995 = vmatmul.bf16.gmra.mxu1 %v6807_v24  ;;  %v2798_v60 = vadd.f32 %v2797_v61, %v2749_v26  ;;  %v3745_v51 = vsel %vm3728_vm2, %v3742_v2, %v3744_v58  ;;  %v5650_v26 = vor.u32 %v6120_v49, %v5647_v28  ;;  %v5807_v2 = vld [vmem:[#allocation6 + $0x65c] sm:$0xf0]  ;;  %v5013_v28 = vld [vmem:[#allocation6 + $0x10] sm:$0xf] }
 0x2eb   : > { %v2653_v9 = vpop.f32.mrf.mxu2  ;;  %3792 = vrot.lane.b32.xlu1 %v3745_v51, %s6465_s21 }
 0x2ec   : > { %v2654_v40 = vadd.f32 %v2653_v9, %v7059_v17  ;;  %v2702_v42 = vpop.f32.mrf.mxu3  ;;  %v3661_v22 = vrot.slane %v2798_v60, 7  ;;  %v5810_v17 = vor.u32 %v6160_v21, %v5807_v2  ;;  %3018 = vmatpush.bf16.msra.mxu2 %v5650_v26  ;;  %v5173_v21 = vld [vmem:[#allocation6 + $0x150] sm:$0xf] }
 0x2ed   : > { %v2753_v23 = vpop.f32.mrf.mxu0 }
 0x2ee   : > { %v2703_v14 = vadd.f32 %v2702_v42, %v2654_v40  ;;  %v3662_v61 = vsel %vm3643_vm1, %v3659_v3, %v3661_v22  ;;  %3067 = vmatpush.bf16.msra.mxu3 %v5810_v17 }
 0x2ef   : > { %v2802_v11 = vpop.f32.mrf.mxu1  ;;  %v7199_v51 = vsel %vm3490_vm0, %v2798_v60, %v3662_v61  ;;  %v5963_v60 = vld [vmem:[#allocation6 + $0x20] sm:$0xf0] }
 0x2f0   : > { %v2752_v9 = vadd.f32 %v2751_v25, %v2703_v14  ;;  %v3746_v24 = vrot.slane %v7199_v51, 3  ;;  %v5014_v37 = vor.u32 %v5963_v60, %v5013_v28  ;;  %v6003_v25 = vld [vmem:[#allocation6 + $0x160] sm:$0xf0]  ;;  %v5473_v28 = vld [vmem:[#allocation6 + $0x3a8] sm:$0xf] }
 0x2f1   : > { %v6078_v60 = vld [vmem:[#allocation6 + $0x3b8] sm:$0xf0] }
 0x2f2   : > { %v2801_v54 = vadd.f32 %v2800_v48, %v2752_v9  ;;  %v3747_v6 = vsel %vm3728_vm2, %v3744_v58, %v3746_v24  ;;  %v5174_v48 = vor.u32 %v6003_v25, %v5173_v21  ;;  %3116 = vmatpush.bf16.msra.mxu0 %v5014_v37  ;;  %v5474_v21 = vor.u32 %v6078_v60, %v5473_v28  ;;  %v5633_v25 = vld [vmem:[#allocation6 + $0x4e8] sm:$0xf] }
 0x2f3   : > { %v2655_v40 = vpop.f32.mrf.mxu2  ;;  %3794 = vrot.lane.b32.xlu2 %v3747_v6, %s6465_s21  ;;  %v8503_v6 = vld [vmem:[#allocation23_spill] sm:$0xff] }
 0x2f4   : > { %v2656_v3 = vadd.f32 %v2655_v40, %v7066_v38  ;;  %v2704_v42 = vpop.f32.mrf.mxu3  ;;  %v3663_v49 = vrot.slane %v2801_v54, 7  ;;  %v8502_v38 = vld [vmem:[#allocation21_spill] sm:$0xff]  ;;  %3165 = vmatpush.bf16.msra.mxu1 %v5174_v48  ;;  %3207 = vmatpush.bf16.msrb.mxu2 %v5474_v21  ;;  %v5793_v48 = vld [vmem:[#allocation6 + $0x628] sm:$0xf] }
 0x2f5   : > { %v2756_v61 = vpop.f32.mrf.mxu0 }
 0x2f6   : > { %v2705_v14 = vadd.f32 %v2704_v42, %v2656_v3  ;;  %v3664_v26 = vsel %vm3643_vm1, %v3661_v22, %v3663_v49 }
 0x2f7   : > { %v2805_v2 = vpop.f32.mrf.mxu1  ;;  %v7208_v58 = vsel %vm3490_vm0, %v2801_v54, %v3664_v26 }
 0x2f8   : > { %v2754_v17 = vadd.f32 %v2753_v23, %v2705_v14  ;;  %2853 = vmatmul.bf16.gmra.mxu2 %v8502_v38  ;;  %2951 = vmatmul.bf16.gmra.mxu0 %v6831_v56  ;;  %v3748_v9 = vrot.slane %v7208_v58, 3  ;;  %v6118_v14 = vld [vmem:[#allocation6 + $0x4f8] sm:$0xf0] }
 0x2f9   : > { %2902 = vmatmul.bf16.gmra.mxu3 %v8503_v6 }
 0x2fa   : > { %3000 = vmatmul.bf16.gmra.mxu1 %v8459_v34  ;;  %v2803_v40 = vadd.f32 %v2802_v11, %v2754_v17  ;;  %v3749_v22 = vsel %vm3728_vm2, %v3746_v24, %v3748_v9  ;;  %v5634_v17 = vor.u32 %v6118_v14, %v5633_v25 }
 0x2fb   : > { %v2658_v3 = vpop.f32.mrf.mxu2  ;;  %3796 = vrot.lane.b32.xlu0 %v3749_v22, %s6465_s21 }
 0x2fc   : > { %v2659_v54 = vadd.f32 %v2658_v3, %v7069_v53  ;;  %v2707_v23 = vpop.f32.mrf.mxu3  ;;  %v3665_v42 = vrot.slane %v2803_v40, 7  ;;  %v6158_v53 = vld [vmem:[#allocation6 + $0x638] sm:$0xf0]  ;;  %3256 = vmatpush.bf16.msrb.mxu3 %v5634_v17 }
 0x2fd   : > { %v2758_v37 = vpop.f32.mrf.mxu0  ;;  %v5794_v34 = vor.u32 %v6158_v53, %v5793_v48  ;;  %v8505_v48 = vld [vmem:[#allocation27_spill] sm:$0xff]  ;;  %v5453_v53 = vld [vmem:[#allocation6 + $0x380] sm:$0xf] }
 0x2fe   : > { %v2708_v26 = vadd.f32 %v2707_v23, %v2659_v54  ;;  %v3666_v11 = vsel %vm3643_vm1, %v3663_v49, %v3665_v42 }
 0x2ff   : > { %v2807_v56 = vpop.f32.mrf.mxu1  ;;  %v7221_v24 = vsel %vm3490_vm0, %v2803_v40, %v3666_v11  ;;  %3305 = vmatpush.bf16.msrb.mxu0 %v5794_v34  ;;  %v6198_v11 = vld [vmem:[#allocation6 + $0x778] sm:$0xf0]  ;;  %v8504_v34 = vld [vmem:[#allocation25_spill] sm:$0xff] }
 0x300   : > { %v2757_v22 = vadd.f32 %v2756_v61, %v2708_v26  ;;  %v3750_v3 = vrot.slane %v7221_v24, 3 }
 0x302   : > { %v2806_v28 = vadd.f32 %v2805_v2, %v2757_v22  ;;  %v3751_v60 = vsel %vm3728_vm2, %v3748_v9, %v3750_v3  ;;  %v5953_v2 = vld [vmem:[#allocation6 + $0x768] sm:$0xf]  ;;  %v5613_v22 = vld [vmem:[#allocation6 + $0x4c0] sm:$0xf] }
 0x303   : > { %v2660_v54 = vpop.f32.mrf.mxu2  ;;  %3798 = vrot.lane.b32.xlu1 %v3751_v60, %s6465_s21  ;;  %v5954_v17 = vor.u32 %v6198_v11, %v5953_v2 }
 0x304   : > { %v2661_v49 = vadd.f32 %v2660_v54, %v7076_v52  ;;  %v2709_v23 = vpop.f32.mrf.mxu3  ;;  %v3667_v40 = vrot.slane %v2806_v28, 7 }
 0x305   : > { %v2761_v25 = vpop.f32.mrf.mxu0  ;;  %3354 = vmatpush.bf16.msrb.mxu1 %v5954_v17  ;;  %v6153_v17 = vld [vmem:[#allocation6 + $0x610] sm:$0xf0] }
 0x306   : > { %v2710_v21 = vadd.f32 %v2709_v23, %v2661_v49  ;;  %v3668_v61 = vsel %vm3643_vm1, %v3665_v42, %v3667_v40  ;;  %v6073_v42 = vld [vmem:[#allocation6 + $0x390] sm:$0xf0] }
 0x307   : > { %v2810_v14 = vpop.f32.mrf.mxu1  ;;  %v7230_v26 = vsel %vm3490_vm0, %v2806_v28, %v3668_v61  ;;  %v5454_v54 = vor.u32 %v6073_v42, %v5453_v53 }
 0x308   : > { %v2759_v9 = vadd.f32 %v2758_v37, %v2710_v21  ;;  %2858 = vmatmul.bf16.gmra.mxu2 %v8504_v34  ;;  %2956 = vmatmul.bf16.gmra.mxu0 %v8463_v41  ;;  %v3752_v52 = vrot.slane %v7230_v26, 3  ;;  %v6113_v37 = vld [vmem:[#allocation6 + $0x4d0] sm:$0xf0] }
 0x309   : > { %2907 = vmatmul.bf16.gmra.mxu3 %v8505_v48  ;;  %v5614_v23 = vor.u32 %v6113_v37, %v5613_v22  ;;  %3208 = vmatpush.bf16.msrb.mxu2 %v5454_v54 }
 0x30a   : > { %3005 = vmatmul.bf16.gmra.mxu1 %v8488_v57  ;;  %v2808_v60 = vadd.f32 %v2807_v56, %v2759_v9  ;;  %v3753_v28 = vsel %vm3728_vm2, %v3750_v3, %v3752_v52  ;;  %v5773_v9 = vld [vmem:[#allocation6 + $0x600] sm:$0xf] }
 0x30b   : > { %v2663_v49 = vpop.f32.mrf.mxu2  ;;  %3800 = vrot.lane.b32.xlu2 %v3753_v28, %s6465_s21  ;;  %3257 = vmatpush.bf16.msrb.mxu3 %v5614_v23  ;;  %v5774_v22 = vor.u32 %v6153_v17, %v5773_v9  ;;  %v8507_v17 = vld [vmem:[#allocation32_spill] sm:$0xff] }
 0x30c   : > { %v2664_v21 = vadd.f32 %v2663_v49, %v7079_v29  ;;  %v2712_v61 = vpop.f32.mrf.mxu3  ;;  %v3669_v2 = vrot.slane %v2808_v60, 7 }
 0x30d   : > { %v2763_v11 = vpop.f32.mrf.mxu0  ;;  %3306 = vmatpush.bf16.msrb.mxu0 %v5774_v22  ;;  %v5593_v22 = vld [vmem:[#allocation6 + $0x498] sm:$0xf] }
 0x30e   : > { %v2713_v57 = vadd.f32 %v2712_v61, %v2664_v21  ;;  %v3670_v56 = vsel %vm3643_vm1, %v3667_v40, %v3669_v2 }
 0x30f   : > { %v2812_v41 = vpop.f32.mrf.mxu1  ;;  %v7243_v3 = vsel %vm3490_vm0, %v2808_v60, %v3670_v56 }
 0x310   : > { %v2762_v53 = vadd.f32 %v2761_v25, %v2713_v57  ;;  %v3754_v42 = vrot.slane %v7243_v3, 3  ;;  %v3623_v25 = vld [vmem:[#allocation2 + $0x158] sm:$0x3] }
 0x312   : > { %v2811_v29 = vadd.f32 %v2810_v14, %v2762_v53  ;;  %v3755_v28 = vsel %vm3728_vm2, %v3752_v52, %v3754_v42  ;;  %v5933_v14 = vld [vmem:[#allocation6 + $0x740] sm:$0xf]  ;;  %v6193_v52 = vld [vmem:[#allocation6 + $0x750] sm:$0xf0]  ;;  %v6068_v53 = vld [vmem:[#allocation6 + $0x368] sm:$0xf0] }
 0x313   : > { %v2665_v54 = vpop.f32.mrf.mxu2  ;;  %3802 = vrot.lane.b32.xlu0 %v3755_v28, %s6465_s21  ;;  %v5934_v9 = vor.u32 %v6193_v52, %v5933_v14 }
 0x314   : > { %v2666_v37 = vadd.f32 %v2665_v54, %v7086_v36  ;;  %v2714_v40 = vpop.f32.mrf.mxu3  ;;  %v3671_v49 = vrot.slane %v2811_v29, 7  ;;  %v3675_v54 = vrot.slane %v3623_v25, 7 }
 0x315   : > { %v2922_v23 = vpop.f32.mrf.mxu0  ;;  %3355 = vmatpush.bf16.msrb.mxu1 %v5934_v9 }
 0x316   : > { %v2715_v60 = vadd.f32 %v2714_v40, %v2666_v37  ;;  %v3672_v61 = vsel %vm3643_vm1, %v3669_v2, %v3671_v49  ;;  %v5433_v2 = vld [vmem:[#allocation6 + $0x358] sm:$0xf]  ;;  %v6108_v37 = vld [vmem:[#allocation6 + $0x4a8] sm:$0xf0] }
 0x317   : > { %v2971_v21 = vpop.f32.mrf.mxu1  ;;  %v7252_v57 = vsel %vm3490_vm0, %v2811_v29, %v3672_v61  ;;  %v3625_v61 = vld [vmem:[#allocation2 + $0x158] sm:$0x7] }
 0x318   : > { %8506 = vst [vmem:[#allocation56_spill] sm:$0xff] %v7252_v57  ;;  %v2764_v56 = vadd.f32 %v2763_v11, %v2715_v60  ;;  %3019 = vmatmul.bf16.vlgmr.msra.gmra.mxu2 %v8468_v45  ;;  %3117 = vmatmul.bf16.vlgmr.msra.gmra.mxu0 %v8490_v55  ;;  %v3756_v36 = vrot.slane %v7252_v57, 3  ;;  %v5434_v11 = vor.u32 %v6068_v53, %v5433_v2 }
 0x319   : > { %3068 = vmatmul.bf16.vlgmr.msra.gmra.mxu3 %v8507_v17  ;;  %v5594_v55 = vor.u32 %v6108_v37, %v5593_v22  ;;  %v5753_v22 = vld [vmem:[#allocation6 + $0x5d8] sm:$0xf] }
 0x31a   : > { %3166 = vmatmul.bf16.vlgmr.msra.gmra.mxu1 %v8491_v8  ;;  %v2813_v29 = vadd.f32 %v2812_v41, %v2764_v56  ;;  %v3757_v28 = vsel %vm3728_vm2, %v3754_v42, %v3756_v36  ;;  %3209 = vmatpush.bf16.msrb.mxu2 %v5434_v11 }
 0x31b   : > { %v2824_v40 = vpop.f32.mrf.mxu2  ;;  %3804 = vrot.lane.b32.xlu1 %v3757_v28, %s6465_s21  ;;  %3258 = vmatpush.bf16.msrb.mxu3 %v5594_v55  ;;  %v6148_v28 = vld [vmem:[#allocation6 + $0x5e8] sm:$0xf0] }
 0x31c   : > { %v2873_v60 = vpop.f32.mrf.mxu3  ;;  %v3673_v14 = vrot.slane %v2813_v29, 7  ;;  %v5754_v11 = vor.u32 %v6148_v28, %v5753_v22 }
 0x31d   : > { %v2874_v52 = vadd.f32 %v2873_v60, %v2824_v40  ;;  %v2924_v8 = vpop.f32.mrf.mxu0 }
 0x31e   : > { %v3674_v41 = vsel %vm3643_vm1, %v3671_v49, %v3673_v14  ;;  %v3676_v42 = vsel %vm3643_vm1, %v3673_v14, %v3675_v54  ;;  %3307 = vmatpush.bf16.msrb.mxu0 %v5754_v11 }
 0x31f   : > { %v2973_v57 = vpop.f32.mrf.mxu1  ;;  %v2923_v25 = vadd.f32 %v2922_v23, %v2874_v52  ;;  %v7265_v56 = vsel %vm3490_vm0, %v2813_v29, %v3674_v41  ;;  %v7269_v9 = vsel %vm3490_vm0, %v3625_v61, %v3676_v42  ;;  %v5913_v52 = vld [vmem:[#allocation6 + $0x718] sm:$0xf]  ;;  %v6188_v41 = vld [vmem:[#allocation6 + $0x728] sm:$0xf0]  ;;  %v6063_v42 = vld [vmem:[#allocation6 + $0x340] sm:$0xf0] }
 0x320   : > { %8508 = vst [vmem:[#allocation59_spill] sm:$0xff] %v7265_v56  ;;  %v3758_v2 = vrot.slane %v7265_v56, 3  ;;  %v3760_v53 = vrot.slane %v7269_v9, 3 }
 0x321   : > { %8509 = vst [vmem:[#allocation62_spill] sm:$0xff] %v7269_v9  ;;  %v7273_v37 = vadd.f32 %v2971_v21, %v2923_v25  ;;  %v5914_v21 = vor.u32 %v6188_v41, %v5913_v52  ;;  %v5573_v25 = vld [vmem:[#allocation6 + $0x470] sm:$0xf]  ;;  %v6143_v52 = vld [vmem:[#allocation6 + $0x5c0] sm:$0xf0] }
 0x322   : > { %v3761_v49 = vsel %vm3728_vm2, %v3758_v2, %v3760_v53  ;;  %v3759_v23 = vsel %vm3728_vm2, %v3756_v36, %v3758_v2  ;;  %v5413_v36 = vld [vmem:[#allocation6 + $0x330] sm:$0xf] }
 0x323   : > { %v2826_v54 = vpop.f32.mrf.mxu2  ;;  %3808 = vrot.lane.b32.xlu0 %v3761_v49, %s6465_s21  ;;  %3806 = vrot.lane.b32.xlu2 %v3759_v23, %s6465_s21  ;;  %v5414_v22 = vor.u32 %v6063_v42, %v5413_v36 }
 0x324   : > { %v2875_v29 = vpop.f32.mrf.mxu3  ;;  %3356 = vmatpush.bf16.msrb.mxu1 %v5914_v21 }
 0x325   : > { %v2876_v40 = vadd.f32 %v2875_v29, %v2826_v54  ;;  %v2927_v55 = vpop.f32.mrf.mxu0  ;;  %v3779_v60 = vpop.permute.xlu0 %3778  ;;  %3210 = vmatpush.bf16.msrb.mxu2 %v5414_v22 }
 0x326   : > { %v3827_v53 = vrot.slane %v3779_v60, 5  ;;  %v5733_v60 = vld [vmem:[#allocation6 + $0x5b0] sm:$0xf] }
 0x327   : > { %v2976_v61 = vpop.f32.mrf.mxu1  ;;  %v2925_v14 = vadd.f32 %v2924_v8, %v2876_v40  ;;  %v6103_v8 = vld [vmem:[#allocation6 + $0x480] sm:$0xf0]  ;;  %v5734_v41 = vor.u32 %v6143_v52, %v5733_v60  ;;  %v5893_v52 = vld [vmem:[#allocation6 + $0x6f0] sm:$0xf] }
 0x328   : > { %3024 = vmatmul.bf16.gmra.mxu2 %v8472_v32  ;;  %3122 = vmatmul.bf16.gmra.mxu0 %v8492_v0  ;;  %v5574_v11 = vor.u32 %v6103_v8, %v5573_v25 }
 0x329   : > { %3073 = vmatmul.bf16.gmra.mxu3 %v8473_v30  ;;  %v7283_v2 = vadd.f32 %v2973_v57, %v2925_v14  ;;  %3308 = vmatpush.bf16.msrb.mxu0 %v5734_v41  ;;  %v6183_v41 = vld [vmem:[#allocation6 + $0x700] sm:$0xf0] }
 0x32a   : > { %3171 = vmatmul.bf16.gmra.mxu1 %v8493_v33  ;;  %3259 = vmatpush.bf16.msrb.mxu3 %v5574_v11  ;;  %v3875_v33 = vadd.f32 %v3827_v53, %v7106_v20 }
 0x32b   : > { %v2829_v28 = vpop.f32.mrf.mxu2 }
 0x32c   : > { %v2878_v49 = vpop.f32.mrf.mxu3  ;;  %v3892_v42 = vsel %vm3490_vm0, %v3875_v33, 0.0 }
 0x32d   : > { %v2879_v23 = vadd.f32 %v2878_v49, %v2829_v28  ;;  %v2929_v0 = vpop.f32.mrf.mxu0  ;;  %v7285_v54 = vpop.permute.xlu2 %3786 }
 0x32e   : > { %v3781_v40 = vpop.permute.xlu0 %3780 }
 0x32f   : > { %v2978_v29 = vpop.f32.mrf.mxu1  ;;  %v2928_v57 = vadd.f32 %v2927_v55, %v2879_v23  ;;  %v3828_v14 = vrot.slane %v3781_v40, 5  ;;  %v3926_v55 = vrot.slane %v3892_v42, 3  ;;  %v5393_v42 = vld [vmem:[#allocation6 + $0x308] sm:$0xf] }
 0x331   : > { %v3829_v21 = vsel %vm3826_vm3, %v3827_v53, %v3828_v14  ;;  %v7289_v36 = vadd.f32 %v2976_v61, %v2928_v57  ;;  %v3834_v61 = vrot.slane %v7285_v54, 5  ;;  %v5894_v54 = vor.u32 %v6183_v41, %v5893_v52 }
 0x332   : > { %v3876_v25 = vadd.f32 %v3829_v21, %v7110_v7 }
 0x333   : > { %v2831_v22 = vpop.f32.mrf.mxu2  ;;  %3357 = vmatpush.bf16.msrb.mxu1 %v5894_v54 }
 0x334   : > { %v2880_v20 = vpop.f32.mrf.mxu3  ;;  %v3893_v8 = vsel %vm3490_vm0, %v3876_v25, 0.0  ;;  %v6058_v25 = vld [vmem:[#allocation6 + $0x318] sm:$0xf0] }
 0x335   : > { %v2881_v28 = vadd.f32 %v2880_v20, %v2831_v22  ;;  %v3927_v11 = vrot.slane %v3893_v8, 3  ;;  %v2932_v49 = vpop.f32.mrf.mxu0  ;;  %v7296_v23 = vpop.permute.xlu2 %3788  ;;  %v5553_v22 = vld [vmem:[#allocation6 + $0x448] sm:$0xf] }
 0x336   : > { %v8391_v40 = vrot.slane %v7296_v23, 5  ;;  %v3783_v33 = vpop.permute.xlu1 %3782 }
 0x337   : > { %v2981_v53 = vpop.f32.mrf.mxu1  ;;  %v2930_v57 = vadd.f32 %v2929_v0, %v2881_v28  ;;  %v7301_v7 = vsel %vm3728_vm2, %v3926_v55, %v3927_v11  ;;  %v3830_v60 = vrot.slane %v3783_v33, 5  ;;  %v6098_v55 = vld [vmem:[#allocation6 + $0x458] sm:$0xf0] }
 0x338   : > { %3029 = vmatmul.bf16.gmra.mxu2 %v8474_v62  ;;  %3127 = vmatmul.bf16.gmra.mxu0 %v8494_v13  ;;  %v3837_v21 = vsel %vm3826_vm3, %v3834_v61, %v8391_v40  ;;  %v5394_v13 = vor.u32 %v6058_v25, %v5393_v42  ;;  %v5554_v33 = vor.u32 %v6098_v55, %v5553_v22  ;;  %v6138_v42 = vld [vmem:[#allocation6 + $0x598] sm:$0xf0] }
 0x339   : > { %3078 = vmatmul.bf16.gmra.mxu3 %v8475_v31  ;;  %v3831_v0 = vsel %vm3826_vm3, %v3828_v14, %v3830_v60  ;;  %v7311_v20 = vadd.f32 %v2978_v29, %v2930_v57  ;;  %v3880_v56 = vadd.f32 %v3837_v21, %v7155_v15 }
 0x33a   : > { %3176 = vmatmul.bf16.gmra.mxu1 %v8495_v35  ;;  %v3877_v8 = vadd.f32 %v3831_v0, %v7120_v18  ;;  %3211 = vmatpush.bf16.msrb.mxu2 %v5394_v13  ;;  %v5713_v0 = vld [vmem:[#allocation6 + $0x588] sm:$0xf] }
 0x33b   : > { %v2834_v28 = vpop.f32.mrf.mxu2  ;;  %3260 = vmatpush.bf16.msrb.mxu3 %v5554_v33  ;;  %v5714_v25 = vor.u32 %v6138_v42, %v5713_v0  ;;  %v7326_v13 = vsel %vm3490_vm0, %v3880_v56, 0.0  ;;  %v6053_v0 = vld [vmem:[#allocation6 + $0x2f0] sm:$0xf0]  ;;  %v5533_v42 = vld [vmem:[#allocation6 + $0x420] sm:$0xf] }
 0x33c   : > { %v2883_v40 = vpop.f32.mrf.mxu3  ;;  %v3894_v52 = vsel %vm3490_vm0, %v3877_v8, 0.0 }
 0x33d   : > { %v2884_v35 = vadd.f32 %v2883_v40, %v2834_v28  ;;  %v3929_v41 = vrot.slane %v3894_v52, 3  ;;  %v2934_v14 = vpop.f32.mrf.mxu0  ;;  %3309 = vmatpush.bf16.msrb.mxu0 %v5714_v25 }
 0x33e   : > { %v3785_v57 = vpop.permute.xlu1 %3784 }
 0x33f   : > { %v2983_v29 = vpop.f32.mrf.mxu1  ;;  %v2933_v9 = vadd.f32 %v2932_v49, %v2884_v35  ;;  %v7318_v18 = vsel %vm3728_vm2, %v3927_v11, %v3929_v41  ;;  %v3832_v54 = vrot.slane %v3785_v57, 5  ;;  %v5873_v57 = vld [vmem:[#allocation6 + $0x6c8] sm:$0xf] }
 0x341   : > { %v3833_v22 = vsel %vm3826_vm3, %v3830_v60, %v3832_v54  ;;  %v3835_v8 = vsel %vm3826_vm3, %v3832_v54, %v3834_v61  ;;  %v7322_v40 = vadd.f32 %v2981_v53, %v2933_v9  ;;  %v3935_v9 = vrot.slane %v7326_v13, 3  ;;  %v6178_v54 = vld [vmem:[#allocation6 + $0x6d8] sm:$0xf0] }
 0x342   : > { %v3878_v15 = vadd.f32 %v3833_v22, %v7133_v47  ;;  %v3879_v49 = vadd.f32 %v3835_v8, %v7142_v43  ;;  %v6093_v8 = vld [vmem:[#allocation6 + $0x430] sm:$0xf0] }
 0x343   : > { %v2836_v11 = vpop.f32.mrf.mxu2 }
 0x344   : > { %v2885_v21 = vpop.f32.mrf.mxu3  ;;  %v3895_v55 = vsel %vm3490_vm0, %v3878_v15, 0.0  ;;  %v3896_v60 = vsel %vm3490_vm0, %v3879_v49, 0.0  ;;  %v5534_v49 = vor.u32 %v6093_v8, %v5533_v42  ;;  %v6173_v8 = vld [vmem:[#allocation6 + $0x6b0] sm:$0xf0] }
 0x345   : > { %v2886_v61 = vadd.f32 %v2885_v21, %v2836_v11  ;;  %v3931_v53 = vrot.slane %v3895_v55, 3  ;;  %v3933_v28 = vrot.slane %v3896_v60, 3  ;;  %v2937_v56 = vpop.f32.mrf.mxu0 }
 0x346   : > { %3261 = vmatpush.bf16.msrb.mxu3 %v5534_v49  ;;  %v8511_v49 = vld [vmem:[#allocation47_spill] sm:$0xff] }
 0x347   : > { %v2986_v33 = vpop.f32.mrf.mxu1  ;;  %v2935_v52 = vadd.f32 %v2934_v14, %v2886_v61  ;;  %v7336_v47 = vsel %vm3728_vm2, %v3929_v41, %v3931_v53  ;;  %v7339_v43 = vsel %vm3728_vm2, %v3931_v53, %v3933_v28  ;;  %v7344_v35 = vsel %vm3728_vm2, %v3933_v28, %v3935_v9  ;;  %v5373_v14 = vld [vmem:[#allocation6 + $0x2e0] sm:$0xf] }
 0x348   : > { %3034 = vmatmul.bf16.gmra.mxu2 %v8476_v19  ;;  %3132 = vmatmul.bf16.gmra.mxu0 %v8496_v46  ;;  %v5874_v41 = vor.u32 %v6178_v54, %v5873_v57  ;;  %v5374_v22 = vor.u32 %v6053_v0, %v5373_v14  ;;  %v5693_v61 = vld [vmem:[#allocation6 + $0x560] sm:$0xf] }
 0x349   : > { %3083 = vmatmul.bf16.gmra.mxu3 %v8477_v1  ;;  %v7350_v25 = vadd.f32 %v2983_v29, %v2935_v52 }
 0x34a   : > { %3181 = vmatmul.bf16.gmra.mxu1 %v8497_v4  ;;  %3212 = vmatpush.bf16.msrb.mxu2 %v5374_v22  ;;  %v6133_v4 = vld [vmem:[#allocation6 + $0x570] sm:$0xf0]  ;;  %v5853_v22 = vld [vmem:[#allocation6 + $0x6a0] sm:$0xf] }
 0x34b   : > { %v2839_v15 = vpop.f32.mrf.mxu2  ;;  %3358 = vmatpush.bf16.msrb.mxu1 %v5874_v41  ;;  %v5694_v53 = vor.u32 %v6133_v4, %v5693_v61 }
 0x34c   : > { %v2888_v11 = vpop.f32.mrf.mxu3 }
 0x34d   : > { %v2889_v21 = vadd.f32 %v2888_v11, %v2839_v15  ;;  %v2939_v55 = vpop.f32.mrf.mxu0  ;;  %3310 = vmatpush.bf16.msrb.mxu0 %v5694_v53  ;;  %v5854_v15 = vor.u32 %v6173_v8, %v5853_v22  ;;  %v6088_v53 = vld [vmem:[#allocation6 + $0x408] sm:$0xf0] }
 0x34f   : > { %v2988_v46 = vpop.f32.mrf.mxu1  ;;  %v2938_v60 = vadd.f32 %v2937_v56, %v2889_v21  ;;  %v8510_v56 = vrot.slane %v7296_v23, 5  ;;  %v5353_v21 = vld [vmem:[#allocation6 + $0x2b8] sm:$0xf]  ;;  %3359 = vmatpush.bf16.msrb.mxu1 %v5854_v15 }
 0x350   : > { %v5673_v15 = vld [vmem:[#allocation6 + $0x538] sm:$0xf] }
 0x351   : > { %v7352_v28 = vadd.f32 %v2986_v33, %v2938_v60  ;;  %v6048_v60 = vld [vmem:[#allocation6 + $0x2c8] sm:$0xf0] }
 0x352   : > { %v5354_v4 = vor.u32 %v6048_v60, %v5353_v21 }
 0x353   : > { %v2841_v29 = vpop.f32.mrf.mxu2 }
 0x354   : > { %v2890_v52 = vpop.f32.mrf.mxu3  ;;  %3213 = vmatpush.bf16.msrb.mxu2 %v5354_v4 }
 0x355   : > { %v2891_v57 = vadd.f32 %v2890_v52, %v2841_v29  ;;  %v2942_v54 = vpop.f32.mrf.mxu0  ;;  %v3791_v14 = vpop.permute.xlu0 %3790 }
 0x356   : > { %v3838_v0 = vrot.slane %v3791_v14, 5 }
 0x357   : > { %v2991_v41 = vpop.f32.mrf.mxu1  ;;  %v2940_v42 = vadd.f32 %v2939_v55, %v2891_v57  ;;  %v5513_v55 = vld [vmem:[#allocation6 + $0x3f8] sm:$0xf] }
 0x358   : > { %3039 = vmatmul.bf16.gmra.mxu2 %v8478_v59  ;;  %3137 = vmatmul.bf16.gmra.mxu0 %v8498_v63  ;;  %v3839_v33 = vsel %vm3826_vm3, %v8510_v56, %v3838_v0  ;;  %v7364_v63 = vpop.permute.xlu2 %3794  ;;  %v5514_v52 = vor.u32 %v6088_v53, %v5513_v55 }
 0x359   : > { %3088 = vmatmul.bf16.gmra.mxu3 %v8511_v49  ;;  %v3881_v11 = vadd.f32 %v3839_v33, %v7164_v39  ;;  %v7362_v61 = vadd.f32 %v2988_v46, %v2940_v42  ;;  %v3842_v46 = vrot.slane %v7364_v63, 5 }
 0x35a   : > { %3186 = vmatmul.bf16.gmra.mxu1 %v8499_v50  ;;  %3262 = vmatpush.bf16.msrb.mxu3 %v5514_v52 }
 0x35b   : > { %v2844_v23 = vpop.f32.mrf.mxu2  ;;  %v3898_v29 = vsel %vm3490_vm0, %v3881_v11, 0.0  ;;  %v6128_v11 = vld [vmem:[#allocation6 + $0x548] sm:$0xf0] }
 0x35c   : > { %v2893_v57 = vpop.f32.mrf.mxu3  ;;  %v3937_v14 = vrot.slane %v3898_v29, 3  ;;  %v5674_v55 = vor.u32 %v6128_v11, %v5673_v15  ;;  %v8514_v11 = vld [vmem:[#allocation51_spill] sm:$0xff] }
 0x35d   : > { %v2894_v50 = vadd.f32 %v2893_v57, %v2844_v23  ;;  %v2944_v39 = vpop.f32.mrf.mxu0  ;;  %v3793_v22 = vpop.permute.xlu1 %3792 }
 0x35e   : > { %v7372_v42 = vsel %vm3728_vm2, %v3935_v9, %v3937_v14  ;;  %v3840_v56 = vrot.slane %v3793_v22, 5  ;;  %3311 = vmatpush.bf16.msrb.mxu0 %v5674_v55  ;;  %v5833_v22 = vld [vmem:[#allocation6 + $0x678] sm:$0xf] }
 0x35f   : > { %v2993_v8 = vpop.f32.mrf.mxu1  ;;  %v2943_v33 = vadd.f32 %v2942_v54, %v2894_v50 }
 0x360   : > { %v3841_v21 = vsel %vm3826_vm3, %v3838_v0, %v3840_v56  ;;  %v3843_v60 = vsel %vm3826_vm3, %v3840_v56, %v3842_v46  ;;  %v6168_v56 = vld [vmem:[#allocation6 + $0x688] sm:$0xf0] }
 0x361   : > { %v3882_v4 = vadd.f32 %v3841_v21, %v7177_v5  ;;  %v3883_v53 = vadd.f32 %v3843_v60, %v7186_v10  ;;  %v7378_v63 = vadd.f32 %v2991_v41, %v2943_v33  ;;  %v8513_v33 = vld [vmem:[#allocation49_spill] sm:$0xff]  ;;  %v5834_v15 = vor.u32 %v6168_v56, %v5833_v22  ;;  %v5333_v21 = vld [vmem:[#allocation6 + $0x290] sm:$0xf] }
 0x362   : > { %v6043_v60 = vld [vmem:[#allocation6 + $0x2a0] sm:$0xf0] }
 0x363   : > { %v2846_v13 = vpop.f32.mrf.mxu2  ;;  %v3899_v9 = vsel %vm3490_vm0, %v3882_v4, 0.0  ;;  %v3900_v54 = vsel %vm3490_vm0, %v3883_v53, 0.0  ;;  %3360 = vmatpush.bf16.msrb.mxu1 %v5834_v15  ;;  %v5334_v4 = vor.u32 %v6043_v60, %v5333_v21  ;;  %v6083_v53 = vld [vmem:[#allocation6 + $0x3e0] sm:$0xf0] }
 0x364   : > { %v2895_v23 = vpop.f32.mrf.mxu3  ;;  %v3939_v29 = vrot.slane %v3899_v9, 3  ;;  %v3941_v0 = vrot.slane %v3900_v54, 3  ;;  %v6123_v56 = vld [vmem:[#allocation6 + $0x520] sm:$0xf0] }
 0x365   : > { %v2896_v52 = vadd.f32 %v2895_v23, %v2846_v13  ;;  %v2947_v57 = vpop.f32.mrf.mxu0  ;;  %3214 = vmatpush.bf16.msrb.mxu2 %v5334_v4  ;;  %v3801_v21 = vpop.permute.xlu2 %3800 }
 0x366   : > { %v7385_v50 = vsel %vm3728_vm2, %v3937_v14, %v3939_v29  ;;  %v7388_v5 = vsel %vm3728_vm2, %v3939_v29, %v3941_v0  ;;  %v5493_v14 = vld [vmem:[#allocation6 + $0x3d0] sm:$0xf] }
 0x367   : > { %8512 = vst [vmem:[#allocation63_spill] sm:$0xff] %v7388_v5  ;;  %v2996_v10 = vpop.f32.mrf.mxu1  ;;  %v2945_v41 = vadd.f32 %v2944_v39, %v2896_v52  ;;  %v5494_v13 = vor.u32 %v6083_v53, %v5493_v14 }
 0x368   : > { %3044 = vmatmul.bf16.gmra.mxu2 %v8513_v33  ;;  %3142 = vmatmul.bf16.gmra.mxu0 %v8500_v44 }
 0x369   : > { %3093 = vmatmul.bf16.gmra.mxu3 %v8514_v11  ;;  %v7394_v55 = vadd.f32 %v2993_v8, %v2945_v41 }
 0x36a   : > { %3191 = vmatmul.bf16.gmra.mxu1 %v8501_v27  ;;  %3263 = vmatpush.bf16.msrb.mxu3 %v5494_v13  ;;  %v5653_v27 = vld [vmem:[#allocation6 + $0x510] sm:$0xf] }
 0x36b   : > { %v2849_v39 = vpop.f32.mrf.mxu2  ;;  %v5654_v8 = vor.u32 %v6123_v56, %v5653_v27 }
 0x36c   : > { %v2898_v9 = vpop.f32.mrf.mxu3 }
 0x36d   : > { %v2899_v54 = vadd.f32 %v2898_v9, %v2849_v39  ;;  %v2949_v23 = vpop.f32.mrf.mxu0  ;;  %v3797_v44 = vpop.permute.xlu0 %3796  ;;  %3312 = vmatpush.bf16.msrb.mxu0 %v5654_v8  ;;  %v3848_v9 = vrot.slane %v3801_v21, 5 }
 0x36e   : > { %v3844_v52 = vrot.slane %v3797_v44, 5 }
 0x36f   : > { %v2998_v29 = vpop.f32.mrf.mxu1  ;;  %v2948_v22 = vadd.f32 %v2947_v57, %v2899_v54 }
 0x370   : > { %v3845_v5 = vsel %vm3826_vm3, %v3842_v46, %v3844_v52 }
 0x371   : > { %v3884_v41 = vadd.f32 %v3845_v5, %v7199_v51  ;;  %v7398_v15 = vadd.f32 %v2996_v10, %v2948_v22  ;;  %v5813_v5 = vld [vmem:[#allocation6 + $0x650] sm:$0xf]  ;;  %v6163_v10 = vld [vmem:[#allocation6 + $0x660] sm:$0xf0] }
 0x372   : > { %v8515_v22 = vld [vmem:[#allocation53_spill] sm:$0xff]  ;;  %v5814_v8 = vor.u32 %v6163_v10, %v5813_v5 }
 0x373   : > { %v2851_v60 = vpop.f32.mrf.mxu2  ;;  %v3901_v14 = vsel %vm3490_vm0, %v3884_v41, 0.0  ;;  %v8516_v41 = vld [vmem:[#allocation55_spill] sm:$0xff] }
 0x374   : > { %v2900_v4 = vpop.f32.mrf.mxu3  ;;  %v3943_v53 = vrot.slane %v3901_v14, 3  ;;  %3361 = vmatpush.bf16.msrb.mxu1 %v5814_v8 }
 0x375   : > { %v2901_v39 = vadd.f32 %v2900_v4, %v2851_v60  ;;  %v2952_v13 = vpop.f32.mrf.mxu0  ;;  %v3799_v57 = vpop.permute.xlu1 %3798 }
 0x376   : > { %v7403_v54 = vsel %vm3728_vm2, %v3941_v0, %v3943_v53  ;;  %v3846_v44 = vrot.slane %v3799_v57, 5 }
 0x377   : > { %v3001_v46 = vpop.f32.mrf.mxu1  ;;  %v2950_v51 = vadd.f32 %v2949_v23, %v2901_v39 }
 0x378   : > { %3049 = vmatmul.bf16.gmra.mxu2 %v8515_v22  ;;  %3147 = vmatmul.bf16.gmra.mxu0 %v8502_v38  ;;  %v3847_v27 = vsel %vm3826_vm3, %v3844_v52, %v3846_v44  ;;  %v3849_v56 = vsel %vm3826_vm3, %v3846_v44, %v3848_v9 }
 0x379   : > { %3098 = vmatmul.bf16.gmra.mxu3 %v8516_v41  ;;  %v3885_v0 = vadd.f32 %v3847_v27, %v7208_v58  ;;  %v3886_v21 = vadd.f32 %v3849_v56, %v7221_v24  ;;  %v7413_v23 = vadd.f32 %v2998_v29, %v2950_v51 }
 0x37a   : > { %3196 = vmatmul.bf16.gmra.mxu1 %v8503_v6 }
 0x37b   : > { %v2854_v60 = vpop.f32.mrf.mxu2  ;;  %v3902_v38 = vsel %vm3490_vm0, %v3885_v0, 0.0  ;;  %v3903_v52 = vsel %vm3490_vm0, %v3886_v21, 0.0 }
 0x37c   : > { %v2903_v14 = vpop.f32.mrf.mxu3  ;;  %v3945_v4 = vrot.slane %v3902_v38, 3  ;;  %v3947_v39 = vrot.slane %v3903_v52, 3  ;;  %v8519_v52 = vld [vmem:[#allocation61_spill] sm:$0xff] }
 0x37d   : > { %v2904_v57 = vadd.f32 %v2903_v14, %v2854_v60  ;;  %v2954_v44 = vpop.f32.mrf.mxu0  ;;  %v8518_v60 = vld [vmem:[#allocation58_spill] sm:$0xff] }
 0x37e   : > { %v7420_v6 = vsel %vm3728_vm2, %v3943_v53, %v3945_v4  ;;  %v7423_v58 = vsel %vm3728_vm2, %v3945_v4, %v3947_v39 }
 0x37f   : > { %8517 = vst [vmem:[#allocation30_spill] sm:$0xff] %v7423_v58  ;;  %v3003_v24 = vpop.f32.mrf.mxu1  ;;  %v2953_v29 = vadd.f32 %v2952_v13, %v2904_v57 }
 0x381   : > { %v7425_v51 = vadd.f32 %v3001_v46, %v2953_v29 }
 0x383   : > { %v2856_v5 = vpop.f32.mrf.mxu2 }
 0x384   : > { %v2905_v10 = vpop.f32.mrf.mxu3 }
 0x385   : > { %v2906_v27 = vadd.f32 %v2905_v10, %v2856_v5  ;;  %v2957_v56 = vpop.f32.mrf.mxu0  ;;  %v3803_v8 = vpop.permute.xlu0 %3802 }
 0x386   : > { %v3850_v21 = vrot.slane %v3803_v8, 5 }
 0x387   : > { %v3006_v0 = vpop.f32.mrf.mxu1  ;;  %v2955_v38 = vadd.f32 %v2954_v44, %v2906_v27 }
 0x388   : > { %3054 = vmatmul.bf16.gmra.mxu2 %v8518_v60  ;;  %3152 = vmatmul.bf16.gmra.mxu0 %v8504_v34  ;;  %v3851_v53 = vsel %vm3826_vm3, %v3848_v9, %v3850_v21 }
 0x389   : > { %3103 = vmatmul.bf16.gmra.mxu3 %v8519_v52  ;;  %v3887_v13 = vadd.f32 %v3851_v53, %v7230_v26  ;;  %v7433_v46 = vadd.f32 %v3003_v24, %v2955_v38 }
 0x38a   : > { %3201 = vmatmul.bf16.gmra.mxu1 %v8505_v48 }
 0x38b   : > { %v2859_v14 = vpop.f32.mrf.mxu2  ;;  %v3904_v4 = vsel %vm3490_vm0, %v3887_v13, 0.0 }
 0x38c   : > { %v2908_v57 = vpop.f32.mrf.mxu3  ;;  %v3949_v44 = vrot.slane %v3904_v4, 3 }
 0x38d   : > { %v2909_v29 = vadd.f32 %v2908_v57, %v2859_v14  ;;  %v2959_v5 = vpop.f32.mrf.mxu0  ;;  %v7437_v10 = vpop.permute.xlu1 %3804 }
 0x38e   : > { %8520 = vst [vmem:[#allocation33_spill] sm:$0xff] %v7437_v10  ;;  %v7440_v34 = vsel %vm3728_vm2, %v3947_v39, %v3949_v44  ;;  %v8395_v48 = vrot.slane %v7437_v10, 5 }
 0x38f   : > { %8521 = vst [vmem:[#allocation35_spill] sm:$0xff] %v7440_v34  ;;  %v3008_v9 = vpop.f32.mrf.mxu1  ;;  %v2958_v27 = vadd.f32 %v2957_v56, %v2909_v29  ;;  %v8525_v29 = vld [vmem:[#allocation31_spill] sm:$0xff] }
 0x390   : > { %v3853_v26 = vsel %vm3826_vm3, %v3850_v21, %v8395_v48 }
 0x391   : > { %v3888_v24 = vadd.f32 %v3853_v26, %v7243_v3  ;;  %v7447_v8 = vadd.f32 %v3006_v0, %v2958_v27  ;;  %v8524_v0 = vld [vmem:[#allocation29_spill] sm:$0xff] }
 0x393   : > { %v2861_v38 = vpop.f32.mrf.mxu2  ;;  %v7451_v53 = vsel %vm3490_vm0, %v3888_v24, 0.0 }
 0x394   : > { %8522 = vst [vmem:[#allocation37_spill] sm:$0xff] %v7451_v53  ;;  %v2910_v13 = vpop.f32.mrf.mxu3  ;;  %v8394_v39 = vrot.slane %v7451_v53, 3 }
 0x395   : > { %v2911_v14 = vadd.f32 %v2910_v13, %v2861_v38  ;;  %v3118_v4 = vpop.f32.mrf.mxu0 }
 0x396   : > { %v7457_v56 = vsel %vm3728_vm2, %v3949_v44, %v8394_v39 }
 0x397   : > { %8523 = vst [vmem:[#allocation39_spill] sm:$0xff] %v7457_v56  ;;  %v3167_v21 = vpop.f32.mrf.mxu1  ;;  %v2960_v57 = vadd.f32 %v2959_v5, %v2911_v14  ;;  %v7668_v56 = vld [vmem:[#allocation2 + $0x70] sm:$0xff] }
 0x398   : > { %v7459_v3 = vadd.f32 %v3167_v21, %v3118_v4  ;;  %3215 = vmatmul.bf16.vlgmr.msrb.gmra.mxu2 %v8524_v0  ;;  %3313 = vmatmul.bf16.vlgmr.msrb.gmra.mxu0 %v8468_v45 }
 0x399   : > { %3264 = vmatmul.bf16.vlgmr.msrb.gmra.mxu3 %v8525_v29  ;;  %v7465_v27 = vadd.f32 %v3008_v9, %v2960_v57 }
 0x39a   : > { %3362 = vmatmul.bf16.vlgmr.msrb.gmra.mxu1 %v8507_v17 }
 0x39b   : > { %v3020_v26 = vpop.f32.mrf.mxu2 }
 0x39c   : > { %v3021_v24 = vadd.f32 %v3020_v26, %v7273_v37  ;;  %v3069_v38 = vpop.f32.mrf.mxu3  ;;  %v8526_v26 = vld [vmem:[#allocation34_spill] sm:$0xff] }
 0x39d   : > { %v3120_v44 = vpop.f32.mrf.mxu0 }
 0x39e   : > { %v3070_v13 = vadd.f32 %v3069_v38, %v3021_v24 }
 0x39f   : > { %v3169_v39 = vpop.f32.mrf.mxu1 }
 0x3a0   : > { %v7468_v5 = vadd.f32 %v3169_v39, %v3120_v44  ;;  %3406 = vst [vmem:[#allocation2 + $0x28] sm:$0xff] %v3070_v13 }
 0x3a3   : > { %v3022_v14 = vpop.f32.mrf.mxu2 }
 0x3a4   : > { %v3023_v4 = vadd.f32 %v3022_v14, %v7283_v2  ;;  %v3071_v45 = vpop.f32.mrf.mxu3 }
 0x3a5   : > { %v3123_v21 = vpop.f32.mrf.mxu0 }
 0x3a6   : > { %v3072_v0 = vadd.f32 %v3071_v45, %v3023_v4 }
 0x3a7   : > { %v3172_v29 = vpop.f32.mrf.mxu1  ;;  %v3991_v9 = vld [vmem:[#allocation2 + $0x28] sm:$0xf0] }
 0x3a8   : > { %v7471_v17 = vadd.f32 %v3172_v29, %v3123_v21  ;;  %3220 = vmatmul.bf16.gmra.mxu2 %v6709_v16  ;;  %3318 = vmatmul.bf16.gmra.mxu0 %v8472_v32  ;;  %v4027_v37 = vrot.slane %v3991_v9, 7  ;;  %v4028_v57 = vrot.slane %v3072_v0, 7  ;;  %v4008_v39 = vld [vmem:[#allocation2 + $0x28] sm:$0xe0] }
 0x3a9   : > { %3269 = vmatmul.bf16.gmra.mxu3 %v8526_v26 }
 0x3aa   : > { %3367 = vmatmul.bf16.gmra.mxu1 %v8473_v30  ;;  %v4029_v2 = vsel %vm3643_vm1, %v4027_v37, %v4028_v57  ;;  %v7480_v24 = vsel %vm3490_vm0, %v4008_v39, %v4027_v37 }
 0x3ab   : > { %v3025_v38 = vpop.f32.mrf.mxu2  ;;  %v7484_v44 = vsel %vm3490_vm0, %v3072_v0, %v4029_v2  ;;  %v4111_v16 = vrot.slane %v7480_v24, 5 }
 0x3ac   : > { %v3026_v32 = vadd.f32 %v3025_v38, %v7289_v36  ;;  %v3074_v13 = vpop.f32.mrf.mxu3  ;;  %v4112_v14 = vrot.slane %v7484_v44, 5 }
 0x3ad   : > { %v3125_v30 = vpop.f32.mrf.mxu0 }
 0x3ae   : > { %v3075_v4 = vadd.f32 %v3074_v13, %v3026_v32  ;;  %v4113_v21 = vsel %vm3826_vm3, %v4111_v16, %v4112_v14 }
 0x3af   : > { %v3174_v45 = vpop.f32.mrf.mxu1  ;;  %4160 = vrot.lane.b32.xlu1 %v4113_v21, %s6465_s21 }
 0x3b0   : > { %v7490_v29 = vadd.f32 %v3174_v45, %v3125_v30  ;;  %v4030_v9 = vrot.slane %v3075_v4, 7  ;;  %v8528_v45 = vld [vmem:[#allocation38_spill] sm:$0xff] }
 0x3b2   : > { %v4031_v0 = vsel %vm3643_vm1, %v4028_v57, %v4030_v9  ;;  %v8527_v57 = vld [vmem:[#allocation36_spill] sm:$0xff] }
 0x3b3   : > { %v3027_v37 = vpop.f32.mrf.mxu2  ;;  %v7496_v26 = vsel %vm3490_vm0, %v3075_v4, %v4031_v0 }
 0x3b4   : > { %v3028_v36 = vadd.f32 %v3027_v37, %v7311_v20  ;;  %v3076_v39 = vpop.f32.mrf.mxu3  ;;  %v4114_v2 = vrot.slane %v7496_v26, 5 }
 0x3b5   : > { %v3128_v38 = vpop.f32.mrf.mxu0 }
 0x3b6   : > { %v3077_v32 = vadd.f32 %v3076_v39, %v3028_v36  ;;  %v4115_v13 = vsel %vm3826_vm3, %v4112_v14, %v4114_v2 }
 0x3b7   : > { %v3177_v16 = vpop.f32.mrf.mxu1  ;;  %4162 = vrot.lane.b32.xlu2 %v4115_v13, %s6465_s21 }
 0x3b8   : > { %v7501_v30 = vadd.f32 %v3177_v16, %v3128_v38  ;;  %3225 = vmatmul.bf16.gmra.mxu2 %v8527_v57  ;;  %3323 = vmatmul.bf16.gmra.mxu0 %v8474_v62  ;;  %v4032_v4 = vrot.slane %v3077_v32, 7 }
 0x3b9   : > { %3274 = vmatmul.bf16.gmra.mxu3 %v8528_v45 }
 0x3ba   : > { %3372 = vmatmul.bf16.gmra.mxu1 %v8475_v31  ;;  %v4033_v20 = vsel %vm3643_vm1, %v4030_v9, %v4032_v4 }
 0x3bb   : > { %v3030_v21 = vpop.f32.mrf.mxu2  ;;  %v7511_v0 = vsel %vm3490_vm0, %v3077_v32, %v4033_v20 }
 0x3bc   : > { %v3031_v14 = vadd.f32 %v3030_v21, %v7322_v40  ;;  %v3079_v37 = vpop.f32.mrf.mxu3  ;;  %v4116_v36 = vrot.slane %v7511_v0, 5 }
 0x3bd   : > { %v3130_v39 = vpop.f32.mrf.mxu0 }
 0x3be   : > { %v3080_v38 = vadd.f32 %v3079_v37, %v3031_v14  ;;  %v4117_v16 = vsel %vm3826_vm3, %v4114_v2, %v4116_v36 }
 0x3bf   : > { %v3179_v62 = vpop.f32.mrf.mxu1  ;;  %4164 = vrot.lane.b32.xlu0 %v4117_v16, %s6465_s21 }
 0x3c0   : > { %v7516_v13 = vadd.f32 %v3179_v62, %v3130_v39  ;;  %v4034_v31 = vrot.slane %v3080_v38, 7  ;;  %v8530_v62 = vld [vmem:[#allocation42_spill] sm:$0xff] }
 0x3c2   : > { %v4035_v9 = vsel %vm3643_vm1, %v4032_v4, %v4034_v31  ;;  %v8529_v4 = vld [vmem:[#allocation40_spill] sm:$0xff] }
 0x3c3   : > { %v3032_v57 = vpop.f32.mrf.mxu2  ;;  %v7522_v32 = vsel %vm3490_vm0, %v3080_v38, %v4035_v9 }
 0x3c4   : > { %v3033_v40 = vadd.f32 %v3032_v57, %v7350_v25  ;;  %v3081_v45 = vpop.f32.mrf.mxu3  ;;  %v4118_v20 = vrot.slane %v7522_v32, 5 }
 0x3c5   : > { %v3133_v21 = vpop.f32.mrf.mxu0 }
 0x3c6   : > { %v3082_v14 = vadd.f32 %v3081_v45, %v3033_v40  ;;  %v4119_v37 = vsel %vm3826_vm3, %v4116_v36, %v4118_v20 }
 0x3c7   : > { %v3182_v2 = vpop.f32.mrf.mxu1  ;;  %4166 = vrot.lane.b32.xlu1 %v4119_v37, %s6465_s21 }
 0x3c8   : > { %v7527_v39 = vadd.f32 %v3182_v2, %v3133_v21  ;;  %3230 = vmatmul.bf16.gmra.mxu2 %v8529_v4  ;;  %3328 = vmatmul.bf16.gmra.mxu0 %v8476_v19  ;;  %v4036_v38 = vrot.slane %v3082_v14, 7 }
 0x3c9   : > { %3279 = vmatmul.bf16.gmra.mxu3 %v8530_v62 }
 0x3ca   : > { %3377 = vmatmul.bf16.gmra.mxu1 %v8477_v1  ;;  %v4037_v25 = vsel %vm3643_vm1, %v4034_v31, %v4036_v38 }
 0x3cb   : > { %v3035_v16 = vpop.f32.mrf.mxu2  ;;  %v7537_v9 = vsel %vm3490_vm0, %v3082_v14, %v4037_v25 }
 0x3cc   : > { %v3036_v36 = vadd.f32 %v3035_v16, %v7352_v28  ;;  %v3084_v57 = vpop.f32.mrf.mxu3  ;;  %v4120_v40 = vrot.slane %v7537_v9, 5 }
 0x3cd   : > { %v3135_v45 = vpop.f32.mrf.mxu0 }
 0x3ce   : > { %v3085_v21 = vadd.f32 %v3084_v57, %v3036_v36  ;;  %v4121_v2 = vsel %vm3826_vm3, %v4118_v20, %v4120_v40 }
 0x3cf   : > { %v3184_v19 = vpop.f32.mrf.mxu1  ;;  %4168 = vrot.lane.b32.xlu2 %v4121_v2, %s6465_s21 }
 0x3d0   : > { %v7542_v37 = vadd.f32 %v3184_v19, %v3135_v45  ;;  %v4038_v1 = vrot.slane %v3085_v21, 7  ;;  %v8532_v19 = vld [vmem:[#allocation46_spill] sm:$0xff] }
 0x3d2   : > { %v4039_v31 = vsel %vm3643_vm1, %v4036_v38, %v4038_v1  ;;  %v8531_v38 = vld [vmem:[#allocation44_spill] sm:$0xff] }
 0x3d3   : > { %v3037_v4 = vpop.f32.mrf.mxu2  ;;  %v7548_v14 = vsel %vm3490_vm0, %v3085_v21, %v4039_v31 }
 0x3d4   : > { %v3038_v28 = vadd.f32 %v3037_v4, %v7362_v61  ;;  %v3086_v62 = vpop.f32.mrf.mxu3  ;;  %v4122_v25 = vrot.slane %v7548_v14, 5 }
 0x3d5   : > { %v3138_v16 = vpop.f32.mrf.mxu0 }
 0x3d6   : > { %v3087_v36 = vadd.f32 %v3086_v62, %v3038_v28  ;;  %v4123_v57 = vsel %vm3826_vm3, %v4120_v40, %v4122_v25 }
 0x3d7   : > { %v3187_v20 = vpop.f32.mrf.mxu1  ;;  %4170 = vrot.lane.b32.xlu0 %v4123_v57, %s6465_s21 }
 0x3d8   : > { %v7553_v45 = vadd.f32 %v3187_v20, %v3138_v16  ;;  %3235 = vmatmul.bf16.gmra.mxu2 %v8531_v38  ;;  %3333 = vmatmul.bf16.gmra.mxu0 %v8478_v59  ;;  %v4040_v21 = vrot.slane %v3087_v36, 7 }
 0x3d9   : > { %3284 = vmatmul.bf16.gmra.mxu3 %v8532_v19 }
 0x3da   : > { %3382 = vmatmul.bf16.gmra.mxu1 %v8511_v49  ;;  %v4041_v61 = vsel %vm3643_vm1, %v4038_v1, %v4040_v21 }
 0x3db   : > { %v3040_v2 = vpop.f32.mrf.mxu2  ;;  %v7563_v31 = vsel %vm3490_vm0, %v3087_v36, %v4041_v61 }
 0x3dc   : > { %v3041_v40 = vadd.f32 %v3040_v2, %v7378_v63  ;;  %v3089_v4 = vpop.f32.mrf.mxu3  ;;  %v4124_v28 = vrot.slane %v7563_v31, 5 }
 0x3dd   : > { %v3140_v62 = vpop.f32.mrf.mxu0 }
 0x3de   : > { %v3090_v16 = vadd.f32 %v3089_v4, %v3041_v40  ;;  %v4125_v20 = vsel %vm3826_vm3, %v4122_v25, %v4124_v28 }
 0x3df   : > { %v3189_v59 = vpop.f32.mrf.mxu1  ;;  %4172 = vrot.lane.b32.xlu1 %v4125_v20, %s6465_s21 }
 0x3e0   : > { %v7568_v57 = vadd.f32 %v3189_v59, %v3140_v62  ;;  %v4042_v49 = vrot.slane %v3090_v16, 7  ;;  %v8534_v59 = vld [vmem:[#allocation50_spill] sm:$0xff] }
 0x3e2   : > { %v4043_v1 = vsel %vm3643_vm1, %v4040_v21, %v4042_v49  ;;  %v8533_v21 = vld [vmem:[#allocation48_spill] sm:$0xff] }
 0x3e3   : > { %v3042_v38 = vpop.f32.mrf.mxu2  ;;  %v7574_v36 = vsel %vm3490_vm0, %v3090_v16, %v4043_v1 }
 0x3e4   : > { %v3043_v63 = vadd.f32 %v3042_v38, %v7394_v55  ;;  %v3091_v19 = vpop.f32.mrf.mxu3  ;;  %v4126_v61 = vrot.slane %v7574_v36, 5 }
 0x3e5   : > { %v3143_v2 = vpop.f32.mrf.mxu0 }
 0x3e6   : > { %v3092_v40 = vadd.f32 %v3091_v19, %v3043_v63  ;;  %v4127_v4 = vsel %vm3826_vm3, %v4124_v28, %v4126_v61 }
 0x3e7   : > { %v3192_v25 = vpop.f32.mrf.mxu1  ;;  %4174 = vrot.lane.b32.xlu2 %v4127_v4, %s6465_s21 }
 0x3e8   : > { %v7579_v62 = vadd.f32 %v3192_v25, %v3143_v2  ;;  %3240 = vmatmul.bf16.gmra.mxu2 %v8533_v21  ;;  %3338 = vmatmul.bf16.gmra.mxu0 %v8513_v33  ;;  %v4044_v16 = vrot.slane %v3092_v40, 7 }
 0x3e9   : > { %3289 = vmatmul.bf16.gmra.mxu3 %v8534_v59 }
 0x3ea   : > { %3387 = vmatmul.bf16.gmra.mxu1 %v8514_v11  ;;  %v4045_v55 = vsel %vm3643_vm1, %v4042_v49, %v4044_v16 }
 0x3eb   : > { %v3045_v20 = vpop.f32.mrf.mxu2  ;;  %v7589_v1 = vsel %vm3490_vm0, %v3092_v40, %v4045_v55 }
 0x3ec   : > { %v3046_v28 = vadd.f32 %v3045_v20, %v7398_v15  ;;  %v3094_v38 = vpop.f32.mrf.mxu3  ;;  %v4128_v63 = vrot.slane %v7589_v1, 5 }
 0x3ed   : > { %v3145_v19 = vpop.f32.mrf.mxu0 }
 0x3ee   : > { %v3095_v2 = vadd.f32 %v3094_v38, %v3046_v28  ;;  %v4129_v25 = vsel %vm3826_vm3, %v4126_v61, %v4128_v63 }
 0x3ef   : > { %v3194_v33 = vpop.f32.mrf.mxu1  ;;  %4176 = vrot.lane.b32.xlu0 %v4129_v25, %s6465_s21 }
 0x3f0   : > { %v7594_v4 = vadd.f32 %v3194_v33, %v3145_v19  ;;  %v4046_v11 = vrot.slane %v3095_v2, 7  ;;  %v8536_v33 = vld [vmem:[#allocation54_spill] sm:$0xff] }
 0x3f2   : > { %v4047_v49 = vsel %vm3643_vm1, %v4044_v16, %v4046_v11  ;;  %v8535_v16 = vld [vmem:[#allocation52_spill] sm:$0xff] }
 0x3f3   : > { %v3047_v21 = vpop.f32.mrf.mxu2  ;;  %v7600_v40 = vsel %vm3490_vm0, %v3095_v2, %v4047_v49 }
 0x3f4   : > { %v3048_v15 = vadd.f32 %v3047_v21, %v7413_v23  ;;  %v3096_v59 = vpop.f32.mrf.mxu3  ;;  %v4130_v55 = vrot.slane %v7600_v40, 5 }
 0x3f5   : > { %v3148_v20 = vpop.f32.mrf.mxu0 }
 0x3f6   : > { %v3097_v28 = vadd.f32 %v3096_v59, %v3048_v15  ;;  %v4131_v38 = vsel %vm3826_vm3, %v4128_v63, %v4130_v55 }
 0x3f7   : > { %v3197_v61 = vpop.f32.mrf.mxu1  ;;  %4178 = vrot.lane.b32.xlu2 %v4131_v38, %s6465_s21 }
 0x3f8   : > { %v7605_v19 = vadd.f32 %v3197_v61, %v3148_v20  ;;  %3245 = vmatmul.bf16.gmra.mxu2 %v8535_v16  ;;  %3343 = vmatmul.bf16.gmra.mxu0 %v8515_v22  ;;  %v4048_v2 = vrot.slane %v3097_v28, 7 }
 0x3f9   : > { %3294 = vmatmul.bf16.gmra.mxu3 %v8536_v33 }
 0x3fa   : > { %3392 = vmatmul.bf16.gmra.mxu1 %v8516_v41  ;;  %v4049_v23 = vsel %vm3643_vm1, %v4046_v11, %v4048_v2 }
 0x3fb   : > { %v3050_v25 = vpop.f32.mrf.mxu2  ;;  %v7615_v49 = vsel %vm3490_vm0, %v3097_v28, %v4049_v23 }
 0x3fc   : > { %v3051_v63 = vadd.f32 %v3050_v25, %v7425_v51  ;;  %v3099_v21 = vpop.f32.mrf.mxu3  ;;  %v4132_v15 = vrot.slane %v7615_v49, 5 }
 0x3fd   : > { %v3150_v59 = vpop.f32.mrf.mxu0 }
 0x3fe   : > { %v3100_v20 = vadd.f32 %v3099_v21, %v3051_v63  ;;  %v4133_v61 = vsel %vm3826_vm3, %v4130_v55, %v4132_v15 }
 0x3ff   : > { %v3199_v22 = vpop.f32.mrf.mxu1  ;;  %4180 = vrot.lane.b32.xlu0 %v4133_v61, %s6465_s21 }
 0x400   : > { %v7620_v38 = vadd.f32 %v3199_v22, %v3150_v59  ;;  %v4050_v41 = vrot.slane %v3100_v20, 7  ;;  %v8538_v22 = vld [vmem:[#allocation60_spill] sm:$0xff] }
 0x402   : > { %v4051_v11 = vsel %vm3643_vm1, %v4048_v2, %v4050_v41  ;;  %v8537_v2 = vld [vmem:[#allocation57_spill] sm:$0xff] }
 0x403   : > { %v3052_v16 = vpop.f32.mrf.mxu2  ;;  %v7626_v28 = vsel %vm3490_vm0, %v3100_v20, %v4051_v11 }
 0x404   : > { %v3053_v51 = vadd.f32 %v3052_v16, %v7433_v46  ;;  %v3101_v33 = vpop.f32.mrf.mxu3  ;;  %v4134_v23 = vrot.slane %v7626_v28, 5 }
 0x405   : > { %v3153_v25 = vpop.f32.mrf.mxu0 }
 0x406   : > { %v3102_v63 = vadd.f32 %v3101_v33, %v3053_v51  ;;  %v4135_v21 = vsel %vm3826_vm3, %v4132_v15, %v4134_v23 }
 0x407   : > { %v3202_v55 = vpop.f32.mrf.mxu1  ;;  %4182 = vrot.lane.b32.xlu0 %v4135_v21, %s6465_s21 }
 0x408   : > { %v7631_v59 = vadd.f32 %v3202_v55, %v3153_v25  ;;  %3250 = vmatmul.bf16.gmra.mxu2 %v8537_v2  ;;  %3348 = vmatmul.bf16.gmra.mxu0 %v8518_v60  ;;  %v4052_v20 = vrot.slane %v3102_v63, 7 }
 0x409   : > { %3299 = vmatmul.bf16.gmra.mxu3 %v8538_v22 }
 0x40a   : > { %3397 = vmatmul.bf16.gmra.mxu1 %v8519_v52  ;;  %v4053_v46 = vsel %vm3643_vm1, %v4050_v41, %v4052_v20 }
 0x40b   : > { %v3055_v61 = vpop.f32.mrf.mxu2  ;;  %v7641_v11 = vsel %vm3490_vm0, %v3102_v63, %v4053_v46 }
 0x40c   : > { %8539 = vst [vmem:[#allocation41_spill] sm:$0xff] %v7641_v11  ;;  %v3056_v15 = vadd.f32 %v3055_v61, %v7447_v8  ;;  %v3104_v16 = vpop.f32.mrf.mxu3  ;;  %v4136_v51 = vrot.slane %v7641_v11, 5 }
 0x40d   : > { %v3155_v33 = vpop.f32.mrf.mxu0 }
 0x40e   : > { %v3105_v25 = vadd.f32 %v3104_v16, %v3056_v15  ;;  %v4137_v55 = vsel %vm3826_vm3, %v4134_v23, %v4136_v51  ;;  %v4007_v15 = vld [vmem:[#allocation2 + $0x180] sm:$0xf] }
 0x40f   : > { %v3204_v60 = vpop.f32.mrf.mxu1  ;;  %4184 = vrot.lane.b32.xlu1 %v4137_v55, %s6465_s21  ;;  %v4058_v55 = vrot.slane %v4007_v15, 7 }
 0x410   : > { %v7646_v21 = vadd.f32 %v3204_v60, %v3155_v33  ;;  %v4054_v52 = vrot.slane %v3105_v25, 7  ;;  %v7657_v60 = vpop.permute.xlu2 %3806 }
 0x411   : > { %8541 = vst [vmem:[#allocation45_spill] sm:$0xff] %v7657_v60 }
 0x412   : > { %v4055_v41 = vsel %vm3643_vm1, %v4052_v20, %v4054_v52 }
 0x413   : > { %v3057_v2 = vpop.f32.mrf.mxu2  ;;  %v7652_v63 = vsel %vm3490_vm0, %v3105_v25, %v4055_v41 }
 0x414   : > { %8540 = vst [vmem:[#allocation43_spill] sm:$0xff] %v7652_v63  ;;  %v3058_v8 = vadd.f32 %v3057_v2, %v7465_v27  ;;  %v3106_v22 = vpop.f32.mrf.mxu3  ;;  %v4138_v46 = vrot.slane %v7652_v63, 5  ;;  %v3507_v63 = vld [vmem:[#allocation2 + $0x8] sm:$0xfe] }
 0x415   : > { %v3314_v61 = vpop.f32.mrf.mxu0 }
 0x416   : > { %v3107_v23 = vadd.f32 %v3106_v22, %v3058_v8  ;;  %v4139_v33 = vsel %vm3826_vm3, %v4136_v51, %v4138_v46  ;;  %v4009_v22 = vld [vmem:[#allocation2 + $0x180] sm:$0x1f] }
 0x417   : > { %v3363_v16 = vpop.f32.mrf.mxu1  ;;  %4186 = vrot.lane.b32.xlu2 %v4139_v33, %s6465_s21 }
 0x418   : > { %v4056_v20 = vrot.slane %v3107_v23, 7  ;;  %v7671_v11 = vpop.permute.xlu2 %4162 }
 0x41a   : > { %v4057_v25 = vsel %vm3643_vm1, %v4054_v52, %v4056_v20  ;;  %v4059_v51 = vsel %vm3643_vm1, %v4056_v20, %v4058_v55  ;;  %v3542_v55 = vrot.slane %v3507_v63, 1 }
 0x41b   : > { %v3216_v41 = vpop.f32.mrf.mxu2  ;;  %v7663_v27 = vsel %vm3490_vm0, %v3107_v23, %v4057_v25  ;;  %v3543_v23 = vrot.slane %v7668_v56, 1 }
 0x41c   : > { %8542 = vst [vmem:[#allocation14_spill] sm:$0xff] %v7663_v27  ;;  %v3217_v2 = vadd.f32 %v3216_v41, %v7459_v3  ;;  %v3265_v48 = vpop.f32.mrf.mxu3  ;;  %v4140_v8 = vrot.slane %v7663_v27, 5  ;;  %v7676_v3 = vsel %vm3490_vm0, %v4009_v22, %v4059_v51 }
 0x41d   : > { %v3316_v33 = vpop.f32.mrf.mxu0  ;;  %8543 = vst [vmem:[#allocation16_spill] sm:$0xff] %v7676_v3  ;;  %v3544_v22 = vsel %vm3541_vm4, %v3542_v55, %v3543_v23 }
 0x41e   : > { %v3266_v53 = vadd.f32 %v3265_v48, %v3217_v2  ;;  %v4141_v52 = vsel %vm3826_vm3, %v4138_v46, %v4140_v8  ;;  %v4209_v48 = vrot.slane %v7671_v11, 3  ;;  %v4142_v46 = vrot.slane %v7676_v3, 5 }
 0x41f   : > { %v3365_v15 = vpop.f32.mrf.mxu1  ;;  %4188 = vrot.lane.b32.xlu0 %v4141_v52, %s6465_s21 }
 0x420   : > { %v3315_v25 = vadd.f32 %v3314_v61, %v3266_v53 }
 0x421   : > { %v4161_v20 = vpop.permute.xlu1 %4160 }
 0x422   : > { %v3364_v41 = vadd.f32 %v3363_v16, %v3315_v25  ;;  %v4208_v2 = vrot.slane %v4161_v20, 3  ;;  %v3491_v16 = vld [vmem:[#allocation2 + $0xc8] sm:$0xff]  ;;  %v4143_v20 = vsel %vm3826_vm3, %v4140_v8, %v4142_v46  ;;  %v3509_v46 = vld [vmem:[#allocation2 + $0x160] sm:$0xff] }
 0x423   : > { %v3218_v27 = vpop.f32.mrf.mxu2 }
 0x424   : > { %3407 = vst [vmem:[#allocation2 + $0xe8] sm:$0xff] %v3364_v41  ;;  %v3219_v52 = vadd.f32 %v3218_v27, %v7468_v5  ;;  %v3267_v10 = vpop.f32.mrf.mxu3  ;;  %v4210_v51 = vsel %vm3728_vm2, %v4208_v2, %v4209_v48  ;;  %v4256_v53 = vadd.f32 %v4208_v2, %v7480_v24  ;;  %v3591_v41 = vadd.f32 %v3544_v22, %v3491_v16  ;;  %v7692_v2 = vpop.permute.xlu0 %3808 }
 0x425   : > { %v3319_v56 = vpop.f32.mrf.mxu0  ;;  %v4257_v63 = vadd.f32 %v4210_v51, %v7484_v44  ;;  %8544 = vst [vmem:[#allocation18_spill] sm:$0xff] %v7692_v2 }
 0x426   : > { %v3268_v61 = vadd.f32 %v3267_v10, %v3219_v52  ;;  %v4273_v25 = vsel %vm3490_vm0, %v4256_v53, 0.0  ;;  %v3975_v10 = vadd.f32 %v7301_v7, %v3591_v41 }
 0x427   : > { %v3368_v11 = vpop.f32.mrf.mxu1  ;;  %v4274_v5 = vsel %vm3490_vm0, %v4257_v63, 0.0  ;;  %v4307_v27 = vrot.slane %v4273_v25, 5  ;;  %4190 = vrot.lane.b32.xlu0 %v4143_v20, %s6465_s21 }
 0x428   : > { %v3317_v55 = vadd.f32 %v3316_v33, %v3268_v61  ;;  %v4308_v24 = vrot.slane %v4274_v5, 5 }
 0x42a   : > { %v3366_v44 = vadd.f32 %v3365_v15, %v3317_v55  ;;  %v4309_v52 = vsel %vm3826_vm3, %v4307_v27, %v4308_v24  ;;  %v3545_v15 = vrot.slane %v3509_v46, 1  ;;  %v3510_v46 = vld [vmem:[#allocation2 + $0x50] sm:$0xff] }
 0x42b   : > { %v7696_v51 = vadd.f32 %v4309_v52, %v3975_v10  ;;  %v3221_v53 = vpop.f32.mrf.mxu2  ;;  %v4372_v8 = vld [vmem:[#allocation2 + $0xe8] sm:$0xc0]  ;;  %v3547_v60 = vrot.slane %v3510_v46, 1 }
 0x42c   : > { %v3222_v22 = vadd.f32 %v3221_v53, %v7471_v17  ;;  %v3270_v63 = vpop.f32.mrf.mxu3  ;;  %v4408_v16 = vrot.slane %v4372_v8, 7  ;;  %v4409_v25 = vrot.slane %v3366_v44, 7  ;;  %v4389_v33 = vld [vmem:[#allocation2 + $0xe8] sm:$0x80] }
 0x42d   : > { %v3321_v20 = vpop.f32.mrf.mxu0 }
 0x42e   : > { %v3271_v61 = vadd.f32 %v3270_v63, %v3222_v22  ;;  %v4410_v3 = vsel %vm3643_vm1, %v4408_v16, %v4409_v25  ;;  %v7702_v7 = vsel %vm3490_vm0, %v4389_v33, %v4408_v16  ;;  %v3546_v22 = vsel %vm3541_vm4, %v3543_v23, %v3545_v15  ;;  %v7713_v16 = vld [vmem:[#allocation2 + $0x240] sm:$0xff] }
 0x42f   : > { %v3370_v5 = vpop.f32.mrf.mxu1  ;;  %v7706_v41 = vsel %vm3490_vm0, %v3366_v44, %v4410_v3  ;;  %v4492_v17 = vrot.slane %v7702_v7, 7  ;;  %v3549_v58 = vrot.slane %v7713_v16, 1 }
 0x430   : > { %v3320_v27 = vadd.f32 %v3319_v56, %v3271_v61  ;;  %v4493_v55 = vrot.slane %v7706_v41, 7  ;;  %v3492_v61 = vld [vmem:[#allocation2 + $0xf0] sm:$0xff] }
 0x431   : > { %v4165_v10 = vpop.permute.xlu0 %4164 }
 0x432   : > { %v3369_v52 = vadd.f32 %v3368_v11, %v3320_v27  ;;  %v4211_v53 = vrot.slane %v4165_v10, 3  ;;  %v4494_v8 = vsel %vm3643_vm1, %v4492_v17, %v4493_v55  ;;  %v3592_v27 = vadd.f32 %v3546_v22, %v3492_v61  ;;  %v7718_v17 = vpop.permute.xlu2 %4168 }
 0x433   : > { %v3223_v63 = vpop.f32.mrf.mxu2  ;;  %4541 = vrot.lane.b32.xlu2 %v4494_v8, %s6465_s21 }
 0x434   : > { %v3224_v3 = vadd.f32 %v3223_v63, %v7490_v29  ;;  %v3272_v44 = vpop.f32.mrf.mxu3  ;;  %v4212_v56 = vsel %vm3728_vm2, %v4209_v48, %v4211_v53  ;;  %v4411_v33 = vrot.slane %v3369_v52, 7  ;;  %v3976_v22 = vadd.f32 %v7318_v18, %v3592_v27 }
 0x435   : > { %v3324_v34 = vpop.f32.mrf.mxu0  ;;  %v4258_v11 = vadd.f32 %v4212_v56, %v7496_v26 }
 0x436   : > { %v3273_v23 = vadd.f32 %v3272_v44, %v3224_v3  ;;  %v4412_v8 = vsel %vm3643_vm1, %v4409_v25, %v4411_v33  ;;  %v4215_v3 = vrot.slane %v7718_v17, 3 }
 0x437   : > { %v3373_v10 = vpop.f32.mrf.mxu1  ;;  %v4275_v29 = vsel %vm3490_vm0, %v4258_v11, 0.0  ;;  %v7726_v48 = vsel %vm3490_vm0, %v3369_v52, %v4412_v8  ;;  %v3548_v11 = vsel %vm3541_vm4, %v3545_v15, %v3547_v60  ;;  %v3493_v15 = vld [vmem:[#allocation2 + $0x150] sm:$0xff] }
 0x438   : > { %v3322_v63 = vadd.f32 %v3321_v20, %v3273_v23  ;;  %v4310_v2 = vrot.slane %v4275_v29, 5  ;;  %v4495_v26 = vrot.slane %v7726_v48, 7  ;;  %v3550_v20 = vsel %vm3541_vm4, %v3547_v60, %v3549_v58 }
 0x439   : > { %v4167_v44 = vpop.permute.xlu1 %4166 }
 0x43a   : > { %v3371_v25 = vadd.f32 %v3370_v5, %v3322_v63  ;;  %v4311_v46 = vsel %vm3826_vm3, %v4308_v24, %v4310_v2  ;;  %v4213_v56 = vrot.slane %v4167_v44, 3  ;;  %v4496_v61 = vsel %vm3643_vm1, %v4493_v55, %v4495_v26  ;;  %v3494_v63 = vld [vmem:[#allocation2 + $0xd0] sm:$0xff] }
 0x43b   : > { %v7737_v52 = vadd.f32 %v4311_v46, %v3976_v22  ;;  %v3226_v23 = vpop.f32.mrf.mxu2  ;;  %4543 = vrot.lane.b32.xlu1 %v4496_v61, %s6465_s21  ;;  %v3593_v22 = vadd.f32 %v3548_v11, %v3493_v15  ;;  %v3594_v61 = vadd.f32 %v3550_v20, %v3494_v63 }
 0x43c   : > { %v3227_v18 = vadd.f32 %v3226_v23, %v7501_v30  ;;  %v3275_v27 = vpop.f32.mrf.mxu3  ;;  %v4214_v5 = vsel %vm3728_vm2, %v4211_v53, %v4213_v56  ;;  %v4216_v24 = vsel %vm3728_vm2, %v4213_v56, %v4215_v3  ;;  %v4413_v55 = vrot.slane %v3371_v25, 7 }
 0x43d   : > { %v3326_v8 = vpop.f32.mrf.mxu0  ;;  %v4259_v29 = vadd.f32 %v4214_v5, %v7511_v0  ;;  %v4260_v60 = vadd.f32 %v4216_v24, %v7522_v32 }
 0x43e   : > { %v3276_v44 = vadd.f32 %v3275_v27, %v3227_v18  ;;  %v4414_v30 = vsel %vm3643_vm1, %v4411_v33, %v4413_v55  ;;  %v3977_v18 = vadd.f32 %v7336_v47, %v3593_v22  ;;  %v3978_v33 = vadd.f32 %v7339_v43, %v3594_v61  ;;  %v3512_v22 = vld [vmem:[#allocation2 + $0x190] sm:$0xff] }
 0x43f   : > { %v3375_v46 = vpop.f32.mrf.mxu1  ;;  %v4276_v53 = vsel %vm3490_vm0, %v4259_v29, 0.0  ;;  %v4277_v56 = vsel %vm3490_vm0, %v4260_v60, 0.0  ;;  %v7754_v23 = vsel %vm3490_vm0, %v3371_v25, %v4414_v30  ;;  %v3551_v61 = vrot.slane %v3512_v22, 1 }
 0x440   : > { %v3325_v0 = vadd.f32 %v3324_v34, %v3276_v44  ;;  %v4312_v5 = vrot.slane %v4276_v53, 5  ;;  %v4314_v32 = vrot.slane %v4277_v56, 5  ;;  %v4497_v11 = vrot.slane %v7754_v23, 7 }
 0x442   : > { %v3374_v20 = vadd.f32 %v3373_v10, %v3325_v0  ;;  %v4313_v27 = vsel %vm3826_vm3, %v4310_v2, %v4312_v5  ;;  %v4315_v24 = vsel %vm3826_vm3, %v4312_v5, %v4314_v32  ;;  %v4498_v34 = vsel %vm3643_vm1, %v4495_v26, %v4497_v11 }
 0x443   : > { %v7761_v15 = vadd.f32 %v4313_v27, %v3977_v18  ;;  %v7763_v29 = vadd.f32 %v4315_v24, %v3978_v33  ;;  %v3228_v25 = vpop.f32.mrf.mxu2  ;;  %4545 = vrot.lane.b32.xlu2 %v4498_v34, %s6465_s21  ;;  %v7783_v24 = vld [vmem:[#allocation2 + $0x268] sm:$0xff] }
 0x444   : > { %v3229_v60 = vadd.f32 %v3228_v25, %v7516_v13  ;;  %v3277_v63 = vpop.f32.mrf.mxu3  ;;  %v4415_v47 = vrot.slane %v3374_v20, 7  ;;  %v3495_v25 = vld [vmem:[#allocation2 + $0x198] sm:$0xff]  ;;  %v3553_v17 = vrot.slane %v7783_v24, 1 }
 0x445   : > { %v3329_v43 = vpop.f32.mrf.mxu0 }
 0x446   : > { %v3278_v10 = vadd.f32 %v3277_v63, %v3229_v60  ;;  %v4416_v2 = vsel %vm3643_vm1, %v4413_v55, %v4415_v47  ;;  %v3552_v55 = vsel %vm3541_vm4, %v3549_v58, %v3551_v61 }
 0x447   : > { %v3378_v44 = vpop.f32.mrf.mxu1  ;;  %v7771_v30 = vsel %vm3490_vm0, %v3374_v20, %v4416_v2  ;;  %v3595_v63 = vadd.f32 %v3552_v55, %v3495_v25 }
 0x448   : > { %v3327_v53 = vadd.f32 %v3326_v8, %v3278_v10  ;;  %v4499_v26 = vrot.slane %v7771_v30, 7 }
 0x449   : > { %v4171_v56 = vpop.permute.xlu0 %4170 }
 0x44a   : > { %v3376_v13 = vadd.f32 %v3375_v46, %v3327_v53  ;;  %v4217_v0 = vrot.slane %v4171_v56, 3  ;;  %v4500_v5 = vsel %vm3643_vm1, %v4497_v11, %v4499_v26 }
 0x44b   : > { %v3231_v18 = vpop.f32.mrf.mxu2  ;;  %4547 = vrot.lane.b32.xlu0 %v4500_v5, %s6465_s21 }
 0x44c   : > { %v3232_v33 = vadd.f32 %v3231_v18, %v7527_v39  ;;  %v3280_v20 = vpop.f32.mrf.mxu3  ;;  %v4218_v8 = vsel %vm3728_vm2, %v4215_v3, %v4217_v0  ;;  %v4417_v27 = vrot.slane %v3376_v13, 7 }
 0x44d   : > { %v3331_v46 = vpop.f32.mrf.mxu0  ;;  %v4261_v11 = vadd.f32 %v4218_v8, %v7537_v9  ;;  %v3979_v9 = vadd.f32 %v7344_v35, %v3595_v63  ;;  %v3496_v8 = vld [vmem:[#allocation2 + $0x148] sm:$0xff] }
 0x44e   : > { %v3281_v34 = vadd.f32 %v3280_v20, %v3232_v33  ;;  %v4418_v16 = vsel %vm3643_vm1, %v4415_v47, %v4417_v27 }
 0x44f   : > { %v3380_v60 = vpop.f32.mrf.mxu1  ;;  %v4278_v58 = vsel %vm3490_vm0, %v4261_v11, 0.0  ;;  %v7791_v39 = vsel %vm3490_vm0, %v3376_v13, %v4418_v16 }
 0x450   : > { %v3330_v3 = vadd.f32 %v3329_v43, %v3281_v34  ;;  %v4316_v22 = vrot.slane %v4278_v58, 5  ;;  %v4501_v10 = vrot.slane %v7791_v39, 7  ;;  %v3554_v43 = vsel %vm3541_vm4, %v3551_v61, %v3553_v17 }
 0x451   : > { %v7796_v2 = vpop.permute.xlu1 %4172  ;;  %v3596_v34 = vadd.f32 %v3554_v43, %v3496_v8 }
 0x452   : > { %v3379_v53 = vadd.f32 %v3378_v44, %v3330_v3  ;;  %v4317_v47 = vsel %vm3826_vm3, %v4314_v32, %v4316_v22  ;;  %v4219_v56 = vrot.slane %v7796_v2, 3  ;;  %v4502_v13 = vsel %vm3643_vm1, %v4499_v26, %v4501_v10  ;;  %v8004_v2 = vld [vmem:[%s8288_s2] ss:$0 sm:$0xff] }
 0x453   : > { %v7800_v5 = vadd.f32 %v4317_v47, %v3979_v9  ;;  %v3233_v18 = vpop.f32.mrf.mxu2  ;;  %4549 = vrot.lane.b32.xlu1 %v4502_v13, %s6465_s21 }
 0x454   : > { %v3234_v55 = vadd.f32 %v3233_v18, %v7542_v37  ;;  %v3282_v33 = vpop.f32.mrf.mxu3  ;;  %v4220_v35 = vsel %vm3728_vm2, %v4217_v0, %v4219_v56  ;;  %v4419_v32 = vrot.slane %v3379_v53, 7 }
 0x455   : > { %v3334_v44 = vpop.f32.mrf.mxu0  ;;  %v4262_v20 = vadd.f32 %v4220_v35, %v7548_v14  ;;  %v3980_v14 = vadd.f32 %v7372_v42, %v3596_v34 }
 0x456   : > { %v3283_v11 = vadd.f32 %v3282_v33, %v3234_v55  ;;  %v4420_v25 = vsel %vm3643_vm1, %v4417_v27, %v4419_v32 }
 0x457   : > { %v3383_v26 = vpop.f32.mrf.mxu1  ;;  %v7815_v37 = vsel %vm3490_vm0, %v4262_v20, 0.0  ;;  %v7819_v61 = vsel %vm3490_vm0, %v3379_v53, %v4420_v25 }
 0x458   : > { %v3332_v0 = vadd.f32 %v3331_v46, %v3283_v11  ;;  %v4318_v16 = vrot.slane %v7815_v37, 5  ;;  %v4503_v63 = vrot.slane %v7819_v61, 7 }
 0x45a   : > { %v3381_v58 = vadd.f32 %v3380_v60, %v3332_v0  ;;  %v4319_v27 = vsel %vm3826_vm3, %v4316_v22, %v4318_v16  ;;  %v4504_v3 = vsel %vm3643_vm1, %v4501_v10, %v4503_v63 }
 0x45b   : > { %v7828_v9 = vadd.f32 %v4319_v27, %v3980_v14  ;;  %v3236_v47 = vpop.f32.mrf.mxu2  ;;  %4551 = vrot.lane.b32.xlu1 %v4504_v3, %s6465_s21 }
 0x45c   : > { %v3237_v53 = vadd.f32 %v3236_v47, %v7553_v45  ;;  %v3285_v18 = vpop.f32.mrf.mxu3  ;;  %v4421_v46 = vrot.slane %v3381_v58, 7 }
 0x45d   : > { %v3336_v13 = vpop.f32.mrf.mxu0 }
 0x45e   : > { %v3286_v43 = vadd.f32 %v3285_v18, %v3237_v53  ;;  %v4422_v42 = vsel %vm3643_vm1, %v4419_v32, %v4421_v46 }
 0x45f   : > { %v3385_v55 = vpop.f32.mrf.mxu1  ;;  %v7835_v60 = vsel %vm3490_vm0, %v3381_v58, %v4422_v42 }
 0x460   : > { %v3335_v22 = vadd.f32 %v3334_v44, %v3286_v43  ;;  %v4505_v10 = vrot.slane %v7835_v60, 7 }
 0x462   : > { %v3384_v33 = vadd.f32 %v3383_v26, %v3335_v22  ;;  %v4506_v35 = vsel %vm3643_vm1, %v4503_v63, %v4505_v10 }
 0x463   : > { %v3238_v45 = vpop.f32.mrf.mxu2  ;;  %4553 = vrot.lane.b32.xlu2 %v4506_v35, %s6465_s21 }
 0x464   : > { %v3239_v20 = vadd.f32 %v3238_v45, %v7568_v57  ;;  %v3287_v8 = vpop.f32.mrf.mxu3  ;;  %v4423_v11 = vrot.slane %v3384_v33, 7 }
 0x465   : > { %v3339_v25 = vpop.f32.mrf.mxu0 }
 0x466   : > { %v3288_v34 = vadd.f32 %v3287_v8, %v3239_v20  ;;  %v4424_v32 = vsel %vm3643_vm1, %v4421_v46, %v4423_v11 }
 0x467   : > { %v3388_v0 = vpop.f32.mrf.mxu1  ;;  %v7844_v44 = vsel %vm3490_vm0, %v3384_v33, %v4424_v32 }
 0x468   : > { %v3337_v14 = vadd.f32 %v3336_v13, %v3288_v34  ;;  %v4507_v26 = vrot.slane %v7844_v44, 7 }
 0x46a   : > { %v3386_v63 = vadd.f32 %v3385_v55, %v3337_v14  ;;  %v4508_v58 = vsel %vm3643_vm1, %v4505_v10, %v4507_v26 }
 0x46b   : > { %v3241_v27 = vpop.f32.mrf.mxu2  ;;  %4555 = vrot.lane.b32.xlu0 %v4508_v58, %s6465_s21 }
 0x46c   : > { %v3242_v57 = vadd.f32 %v3241_v27, %v7579_v62  ;;  %v3290_v3 = vpop.f32.mrf.mxu3  ;;  %v4425_v47 = vrot.slane %v3386_v63, 7 }
 0x46d   : > { %v3341_v46 = vpop.f32.mrf.mxu0 }
 0x46e   : > { %v3291_v53 = vadd.f32 %v3290_v3, %v3242_v57  ;;  %v4426_v18 = vsel %vm3643_vm1, %v4423_v11, %v4425_v47 }
 0x46f   : > { %v7853_v43 = vsel %vm3490_vm0, %v3386_v63, %v4426_v18  ;;  %v3390_v42 = vpop.f32.mrf.mxu1 }
 0x470   : > { %v3340_v13 = vadd.f32 %v3339_v25, %v3291_v53  ;;  %v4509_v55 = vrot.slane %v7853_v43, 7 }
 0x472   : > { %v3389_v22 = vadd.f32 %v3388_v0, %v3340_v13  ;;  %v4510_v10 = vsel %vm3643_vm1, %v4507_v26, %v4509_v55 }
 0x473   : > { %v3243_v33 = vpop.f32.mrf.mxu2  ;;  %4557 = vrot.lane.b32.xlu1 %v4510_v10, %s6465_s21 }
 0x474   : > { %v3244_v62 = vadd.f32 %v3243_v33, %v7594_v4  ;;  %v3292_v35 = vpop.f32.mrf.mxu3  ;;  %v4427_v45 = vrot.slane %v3389_v22, 7 }
 0x475   : > { %v3344_v32 = vpop.f32.mrf.mxu0 }
 0x476   : > { %v3293_v20 = vadd.f32 %v3292_v35, %v3244_v62  ;;  %v4428_v8 = vsel %vm3643_vm1, %v4425_v47, %v4427_v45 }
 0x477   : > { %v7862_v11 = vsel %vm3490_vm0, %v3389_v22, %v4428_v8  ;;  %v3393_v26 = vpop.f32.mrf.mxu1 }
 0x478   : > { %v3342_v25 = vadd.f32 %v3341_v46, %v3293_v20  ;;  %v4511_v34 = vrot.slane %v7862_v11, 7 }
 0x47a   : > { %v3391_v0 = vadd.f32 %v3390_v42, %v3342_v25  ;;  %v4512_v14 = vsel %vm3643_vm1, %v4509_v55, %v4511_v34 }
 0x47b   : > { %v3246_v63 = vpop.f32.mrf.mxu2  ;;  %4559 = vrot.lane.b32.xlu1 %v4512_v14, %s6465_s21 }
 0x47c   : > { %v3247_v4 = vadd.f32 %v3246_v63, %v7605_v19  ;;  %v3295_v58 = vpop.f32.mrf.mxu3  ;;  %v4429_v27 = vrot.slane %v3391_v0, 7 }
 0x47d   : > { %v3346_v55 = vpop.f32.mrf.mxu0 }
 0x47e   : > { %v3296_v57 = vadd.f32 %v3295_v58, %v3247_v4  ;;  %v4430_v3 = vsel %vm3643_vm1, %v4427_v45, %v4429_v27 }
 0x47f   : > { %v7871_v47 = vsel %vm3490_vm0, %v3391_v0, %v4430_v3  ;;  %v3395_v33 = vpop.f32.mrf.mxu1 }
 0x480   : > { %v3345_v53 = vadd.f32 %v3344_v32, %v3296_v57  ;;  %v4513_v18 = vrot.slane %v7871_v47, 7  ;;  %v7884_v32 = vpop.permute.xlu2 %4174 }
 0x482   : > { %v3394_v46 = vadd.f32 %v3393_v26, %v3345_v53  ;;  %v4514_v13 = vsel %vm3643_vm1, %v4511_v34, %v4513_v18 }
 0x483   : > { %v3248_v42 = vpop.f32.mrf.mxu2  ;;  %4561 = vrot.lane.b32.xlu2 %v4514_v13, %s6465_s21 }
 0x484   : > { %v3249_v19 = vadd.f32 %v3248_v42, %v7620_v38  ;;  %v3297_v22 = vpop.f32.mrf.mxu3  ;;  %v4431_v10 = vrot.slane %v3394_v46, 7 }
 0x485   : > { %v3349_v63 = vpop.f32.mrf.mxu0 }
 0x486   : > { %v3298_v62 = vadd.f32 %v3297_v22, %v3249_v19  ;;  %v4432_v35 = vsel %vm3643_vm1, %v4429_v27, %v4431_v10 }
 0x487   : > { %v7880_v45 = vsel %vm3490_vm0, %v3394_v46, %v4432_v35  ;;  %v3398_v27 = vpop.f32.mrf.mxu1 }
 0x488   : > { %v3347_v20 = vadd.f32 %v3346_v55, %v3298_v62  ;;  %v4515_v8 = vrot.slane %v7880_v45, 7 }
 0x48a   : > { %v3396_v25 = vadd.f32 %v3395_v33, %v3347_v20  ;;  %v4516_v34 = vsel %vm3643_vm1, %v4513_v18, %v4515_v8  ;;  %v7894_v18 = vpop.permute.xlu0 %4176  ;;  %v4388_v20 = vld [vmem:[#allocation2 + $0x260] sm:$0x3f] }
 0x48b   : > { %v3251_v0 = vpop.f32.mrf.mxu2  ;;  %4563 = vrot.lane.b32.xlu1 %v4516_v34, %s6465_s21 }
 0x48c   : > { %v3252_v38 = vadd.f32 %v3251_v0, %v7631_v59  ;;  %v3300_v14 = vpop.f32.mrf.mxu3  ;;  %v4433_v26 = vrot.slane %v3396_v25, 7  ;;  %v7897_v59 = vpop.permute.xlu2 %4178 }
 0x48d   : > { %v3351_v62 = vpop.f32.mrf.mxu0 }
 0x48e   : > { %v3301_v4 = vadd.f32 %v3300_v14, %v3252_v38  ;;  %v4434_v58 = vsel %vm3643_vm1, %v4431_v10, %v4433_v26  ;;  %v4439_v14 = vrot.slane %v4388_v20, 7 }
 0x48f   : > { %v7891_v57 = vsel %vm3490_vm0, %v3396_v25, %v4434_v58  ;;  %v3400_v0 = vpop.f32.mrf.mxu1 }
 0x490   : > { %v3350_v3 = vadd.f32 %v3349_v63, %v3301_v4  ;;  %v4517_v53 = vrot.slane %v7891_v57, 7  ;;  %v4390_v4 = vld [vmem:[#allocation2 + $0x260] sm:$0x7f] }
 0x492   : > { %v3399_v46 = vadd.f32 %v3398_v27, %v3350_v3  ;;  %v4518_v13 = vsel %vm3643_vm1, %v4515_v8, %v4517_v53  ;;  %v7907_v34 = vpop.permute.xlu0 %4180 }
 0x493   : > { %v3253_v55 = vpop.f32.mrf.mxu2  ;;  %4565 = vrot.lane.b32.xlu2 %v4518_v13, %s6465_s21 }
 0x494   : > { %v3254_v42 = vadd.f32 %v3253_v55, %v7646_v21  ;;  %v4435_v19 = vrot.slane %v3399_v46, 7  ;;  %v3302_v22 = vpop.f32.mrf.mxu3  ;;  %v7910_v63 = vpop.permute.xlu2 %4186 }
 0x496   : > { %v3303_v10 = vadd.f32 %v3302_v22, %v3254_v42  ;;  %v4436_v33 = vsel %vm3643_vm1, %v4433_v26, %v4435_v19 }
 0x497   : > { %v7904_v35 = vsel %vm3490_vm0, %v3399_v46, %v4436_v33 }
 0x498   : > { %v3352_v25 = vadd.f32 %v3351_v62, %v3303_v10  ;;  %v4519_v8 = vrot.slane %v7904_v35, 7  ;;  %v7931_v10 = vpop.permute.xlu1 %4184 }
 0x49a   : > { %v3401_v38 = vadd.f32 %v3400_v0, %v3352_v25  ;;  %v4520_v21 = vsel %vm3643_vm1, %v4517_v53, %v4519_v8  ;;  %v7926_v42 = vpop.permute.xlu0 %4182 }
 0x49b   : > { %4567 = vrot.lane.b32.xlu0 %v4520_v21, %s6465_s21 }
 0x49c   : > { %v4437_v26 = vrot.slane %v3401_v38, 7  ;;  %v4542_v22 = vpop.permute.xlu2 %4541 }
 0x49d   : > { %v4589_v33 = vrot.slane %v4542_v22, 1 }
 0x49e   : > { %v4438_v58 = vsel %vm3643_vm1, %v4435_v19, %v4437_v26  ;;  %v4440_v27 = vsel %vm3643_vm1, %v4437_v26, %v4439_v14 }
 0x49f   : > { %v7917_v3 = vsel %vm3490_vm0, %v3401_v38, %v4438_v58  ;;  %v7922_v53 = vsel %vm3490_vm0, %v4390_v4, %v4440_v27  ;;  %v4637_v25 = vadd.f32 %v4589_v33, %v7702_v7 }
 0x4a0   : > { %v4521_v46 = vrot.slane %v7917_v3, 7  ;;  %v4523_v13 = vrot.slane %v7922_v53, 7 }
 0x4a1   : > { %v4654_v26 = vsel %vm3490_vm0, %v4637_v25, 0.0 }
 0x4a2   : > { %v4522_v55 = vsel %vm3643_vm1, %v4519_v8, %v4521_v46  ;;  %v4524_v19 = vsel %vm3643_vm1, %v4521_v46, %v4523_v13  ;;  %v7933_v62 = vpop.permute.xlu0 %4188  ;;  %v4688_v46 = vrot.slane %v4654_v26, 7 }
 0x4a3   : > { %4569 = vrot.lane.b32.xlu1 %v4522_v55, %s6465_s21  ;;  %4571 = vrot.lane.b32.xlu2 %v4524_v19, %s6465_s21  ;;  %v7948_v19 = vld [vmem:[#allocation8] sm:$0xff] }
 0x4a4   : > { %v4546_v20 = vpop.permute.xlu2 %4545 }
 0x4a5   : > { %v4592_v38 = vrot.slane %v4546_v20, 1 }
 0x4aa   : > { %v7946_v22 = vpop.permute.xlu0 %4190 }
 0x4ad   : > { %v4544_v0 = vpop.permute.xlu1 %4543 }
 0x4ae   : > { %v4590_v8 = vrot.slane %v4544_v0, 1 }
 0x4b0   : > { %v4591_v21 = vsel %vm3541_vm4, %v4589_v33, %v4590_v8  ;;  %v4593_v14 = vsel %vm3541_vm4, %v4590_v8, %v4592_v38  ;;  %v7950_v33 = vld [vmem:[#allocation8 + $0x8] sm:$0xff] }
 0x4b1   : > { %v4638_v4 = vadd.f32 %v4591_v21, %v7706_v41  ;;  %v4639_v58 = vadd.f32 %v4593_v14, %v7726_v48 }
 0x4b3   : > { %v4655_v27 = vsel %vm3490_vm0, %v4638_v4, 0.0  ;;  %v4656_v7 = vsel %vm3490_vm0, %v4639_v58, 0.0 }
 0x4b4   : > { %v4689_v13 = vrot.slane %v4655_v27, 7  ;;  %v4691_v55 = vrot.slane %v4656_v7, 7 }
 0x4b6   : > { %v4690_v20 = vsel %vm3643_vm1, %v4688_v46, %v4689_v13  ;;  %v4692_v41 = vsel %vm3643_vm1, %v4689_v13, %v4691_v55 }
 0x4b7   : > { %v4737_v48 = vadd.f32 %v4690_v20, %v7696_v51  ;;  %v4738_v25 = vadd.f32 %v4692_v41, %v7737_v52 }
 0x4b9   : > { %v4755_v0 = vadd.f32 %v7948_v19, %v4737_v48  ;;  %v4756_v8 = vadd.f32 %v7950_v33, %v4738_v25 }
 0x4bb   : > { %v4771_v21 = vmax.f32 %v4755_v0, %v4756_v8 }
 0x4bd   : > { %v4548_v14 = vpop.permute.xlu0 %4547  ;;  %v4772_v51 = vrot.slane %v4771_v21, 4  ;;  %v4554_v48 = vpop.permute.xlu2 %4553 }
 0x4be   : > { %v4594_v26 = vrot.slane %v4548_v14, 1  ;;  %v4600_v14 = vrot.slane %v4554_v48, 1  ;;  %v4223_v48 = vrot.slane %v7894_v18, 3 }
 0x4c0   : > { %v4595_v4 = vsel %vm3541_vm4, %v4592_v38, %v4594_v26  ;;  %v4773_v38 = vmax.f32 %v4771_v21, %v4772_v51 }
 0x4c1   : > { %v4640_v58 = vadd.f32 %v4595_v4, %v7754_v23 }
 0x4c3   : > { %v4657_v27 = vsel %vm3490_vm0, %v4640_v58, 0.0 }
 0x4c4   : > { %v4693_v46 = vrot.slane %v4657_v27, 7 }
 0x4c5   : > { %v4550_v7 = vpop.permute.xlu1 %4549 }
 0x4c6   : > { %v4596_v13 = vrot.slane %v4550_v7, 1  ;;  %v4694_v41 = vsel %vm3643_vm1, %v4691_v55, %v4693_v46 }
 0x4c7   : > { %v4739_v23 = vadd.f32 %v4694_v41, %v7761_v15 }
 0x4c8   : > { %v4597_v52 = vsel %vm3541_vm4, %v4594_v26, %v4596_v13  ;;  %v4774_v26 = vrot.slane %v4773_v38, 2 }
 0x4c9   : > { %v4641_v20 = vadd.f32 %v4597_v52, %v7771_v30  ;;  %v4757_v7 = vadd.f32 %v7948_v19, %v4739_v23  ;;  %v4221_v23 = vrot.slane %v7884_v32, 3 }
 0x4cb   : > { %v4658_v25 = vsel %vm3490_vm0, %v4641_v20, 0.0  ;;  %v4775_v20 = vmax.f32 %v4773_v38, %v4774_v26  ;;  %v4222_v38 = vsel %vm3728_vm2, %v4219_v56, %v4221_v23  ;;  %v4224_v18 = vsel %vm3728_vm2, %v4221_v23, %v4223_v48 }
 0x4cc   : > { %v4695_v0 = vrot.slane %v4658_v25, 7 }
 0x4cd   : > { %v4552_v8 = vpop.permute.xlu1 %4551 }
 0x4ce   : > { %v4696_v4 = vsel %vm3643_vm1, %v4693_v46, %v4695_v0  ;;  %v4598_v58 = vrot.slane %v4552_v8, 1 }
 0x4cf   : > { %v4740_v27 = vadd.f32 %v4696_v4, %v7763_v29 }
 0x4d0   : > { %v4599_v30 = vsel %vm3541_vm4, %v4596_v13, %v4598_v58  ;;  %v4601_v55 = vsel %vm3541_vm4, %v4598_v58, %v4600_v14 }
 0x4d1   : > { %v4758_v52 = vadd.f32 %v7950_v33, %v4740_v27  ;;  %v4642_v21 = vadd.f32 %v4599_v30, %v7791_v39  ;;  %v4643_v15 = vadd.f32 %v4601_v55, %v7819_v61  ;;  %v4776_v27 = vrot.slane %v4775_v20, 1  ;;  %v3514_v30 = vld [vmem:[#allocation2 + $0x1a0] sm:$0xff] }
 0x4d2   : > { %v7997_v55 = vld [vmem:[#allocation2 + $0x80] sm:$0xff] }
 0x4d3   : > { %v4778_v51 = vmax.f32 %v4757_v7, %v4758_v52  ;;  %v4659_v46 = vsel %vm3490_vm0, %v4642_v21, 0.0  ;;  %v7980_v29 = vsel %vm3490_vm0, %v4643_v15, 0.0  ;;  %v4777_v56 = vmax.f32 %v4775_v20, %v4776_v27 }
 0x4d4   : > { %v4697_v13 = vrot.slane %v4659_v46, 7  ;;  %v4699_v41 = vrot.slane %v7980_v29, 7  ;;  %v4227_v15 = vrot.slane %v7907_v34, 3  ;;  %v3557_v23 = vrot.slane %v7997_v55, 1 }
 0x4d5   : > { %v4779_v25 = vrot.slane %v4778_v51, 4 }
 0x4d6   : > { %v4698_v39 = vsel %vm3643_vm1, %v4695_v0, %v4697_v13  ;;  %v4700_v61 = vsel %vm3643_vm1, %v4697_v13, %v4699_v41 }
 0x4d7   : > { %v4780_v8 = vmax.f32 %v4778_v51, %v4779_v25  ;;  %v4741_v4 = vadd.f32 %v4698_v39, %v7800_v5  ;;  %v4742_v58 = vadd.f32 %v4700_v61, %v7828_v9  ;;  %v4263_v5 = vadd.f32 %v4222_v38, %v7563_v31 }
 0x4d8   : > { %v4264_v9 = vadd.f32 %v4224_v18, %v7574_v36  ;;  %v3555_v25 = vrot.slane %v3514_v30, 1  ;;  %v4225_v39 = vrot.slane %v7897_v59, 3 }
 0x4d9   : > { %v4781_v26 = vrot.slane %v4780_v8, 2  ;;  %v4759_v32 = vadd.f32 %v7948_v19, %v4741_v4  ;;  %v4760_v0 = vadd.f32 %v7950_v33, %v4742_v58  ;;  %v4831_v4 = vadd.f32 %v8004_v2, %v4777_v56 }
 0x4da   : > { %v4226_v20 = vsel %vm3728_vm2, %v4223_v48, %v4225_v39  ;;  %v8017_v38 = vsel %vm3490_vm0, %v4264_v9, 0.0  ;;  %v4228_v59 = vsel %vm3728_vm2, %v4225_v39, %v4227_v15  ;;  %v3556_v18 = vsel %vm3541_vm4, %v3553_v17, %v3555_v25  ;;  %v3497_v17 = vld [vmem:[#allocation2 + $0x218] sm:$0xff] }
 0x4db   : > { %v4782_v7 = vmax.f32 %v4780_v8, %v4781_v26  ;;  %v4785_v52 = vmax.f32 %v4759_v32, %v4760_v0  ;;  %v4280_v8 = vsel %vm3490_vm0, %v4263_v5, 0.0  ;;  %v3558_v48 = vsel %vm3541_vm4, %v3555_v25, %v3557_v23  ;;  %v3516_v26 = vld [vmem:[#allocation2 + $0x128] sm:$0xff] }
 0x4dc   : > { %v8029_v32 = vld [vmem:[#allocation2 + $0x248] sm:$0xff]  ;;  %v4320_v0 = vrot.slane %v4280_v8, 5  ;;  %v4265_v30 = vadd.f32 %v4226_v20, %v7589_v1  ;;  %v4266_v5 = vadd.f32 %v4228_v59, %v7600_v40  ;;  %v4839_v9 = vmax.f32 %v4831_v4, 0.0 }
 0x4dd   : > { %v4556_v21 = vpop.permute.xlu0 %4555  ;;  %v4783_v51 = vrot.slane %v4782_v7, 1  ;;  %v4786_v46 = vrot.slane %v4785_v52, 4  ;;  %v3597_v25 = vadd.f32 %v3556_v18, %v3497_v17  ;;  %v3559_v39 = vrot.slane %v3516_v26, 1 }
 0x4de   : > { %v4602_v13 = vrot.slane %v4556_v21, 1  ;;  %v4321_v1 = vsel %vm3826_vm3, %v4318_v16, %v4320_v0 }
 0x4df   : > { %v4784_v31 = vmax.f32 %v4782_v7, %v4783_v51  ;;  %v4787_v61 = vmax.f32 %v4785_v52, %v4786_v46  ;;  %v4322_v52 = vrot.slane %v8017_v38, 5  ;;  %v3981_v4 = vadd.f32 %v7385_v50, %v3597_v25 }
 0x4e0   : > { %v4603_v36 = vsel %vm3541_vm4, %v4600_v14, %v4602_v13  ;;  %v3560_v50 = vsel %vm3541_vm4, %v3557_v23, %v3559_v39  ;;  %v3499_v23 = vld [vmem:[#allocation2 + $0x30] sm:$0xff] }
 0x4e1   : > { %v4644_v58 = vadd.f32 %v4603_v36, %v7835_v60  ;;  %v4832_v27 = vadd.f32 %v8004_v2, %v4784_v31  ;;  %v4788_v14 = vrot.slane %v4787_v61, 2  ;;  %v3561_v31 = vrot.slane %v8029_v32, 1  ;;  %v3498_v36 = vld [vmem:[#allocation2 + $0x78] sm:$0xff] }
 0x4e2   : > { %v3598_v20 = vadd.f32 %v3558_v48, %v3498_v36  ;;  %v4323_v59 = vsel %vm3826_vm3, %v4320_v0, %v4322_v52  ;;  %v4362_v18 = vadd.f32 %v4321_v1, %v3981_v4  ;;  %v8054_v48 = vpop.permute.xlu2 %4561  ;;  %v4231_v1 = vrot.slane %v7931_v10, 3 }
 0x4e3   : > { %v4661_v60 = vsel %vm3490_vm0, %v4644_v58, 0.0  ;;  %v4840_v55 = vmax.f32 %v4832_v27, 0.0  ;;  %v4789_v7 = vmax.f32 %v4787_v61, %v4788_v14  ;;  %v4282_v58 = vsel %vm3490_vm0, %v4265_v30, 0.0 }
 0x4e4   : > { %v4701_v21 = vrot.slane %v4661_v60, 7  ;;  %v8046_v27 = vsel %vm3490_vm0, %v4266_v5, 0.0  ;;  %v3562_v60 = vsel %vm3541_vm4, %v3559_v39, %v3561_v31  ;;  %v4324_v26 = vrot.slane %v4282_v58, 5  ;;  %v3500_v5 = vld [vmem:[#allocation2 + $0x1f0] sm:$0xff] }
 0x4e5   : > { %v4558_v24 = vpop.permute.xlu1 %4557  ;;  %v4790_v56 = vrot.slane %v4789_v7, 1  ;;  %v4855_v46 = vrot.slane %v4840_v55, 7  ;;  %v4326_v30 = vrot.slane %v8046_v27, 5  ;;  %v3600_v25 = vadd.f32 %v3562_v60, %v3500_v5 }
 0x4e6   : > { %v4604_v51 = vrot.slane %v4558_v24, 1  ;;  %v4702_v37 = vsel %vm3643_vm1, %v4699_v41, %v4701_v21  ;;  %v4608_v24 = vrot.slane %v8054_v48, 1  ;;  %v4229_v39 = vrot.slane %v7926_v42, 3 }
 0x4e7   : > { %v4791_v61 = vmax.f32 %v4789_v7, %v4790_v56  ;;  %v4857_v8 = vsel %vm4856_vm5, %v4855_v46, %v4839_v9  ;;  %v4743_v55 = vadd.f32 %v4702_v37, %v4362_v18  ;;  %v3599_v46 = vadd.f32 %v3560_v50, %v3499_v23 }
 0x4e8   : > { %v4605_v40 = vsel %vm3541_vm4, %v4602_v13, %v4604_v51  ;;  %v8545_v13 = vld [vmem:[#allocation63_spill] sm:$0xff]  ;;  %v3984_v37 = vadd.f32 %v7420_v6, %v3600_v25  ;;  %v4232_v6 = vsel %vm3728_vm2, %v4229_v39, %v4231_v1  ;;  %v4233_v27 = vrot.slane %v7910_v63, 3  ;;  %v3523_v63 = vld [vmem:[#allocation2 + $0x108] sm:$0x1] }
 0x4e9   : > { %v4645_v38 = vadd.f32 %v4605_v40, %v7844_v44  ;;  %v4833_v16 = vadd.f32 %v8004_v2, %v4791_v61  ;;  %v3982_v14 = vadd.f32 %v8545_v13, %v3598_v20  ;;  %v4761_v4 = vadd.f32 %v7948_v19, %v4743_v55 }
 0x4ea   : > { %v3983_v42 = vadd.f32 %v7403_v54, %v3599_v46  ;;  %v4230_v13 = vsel %vm3728_vm2, %v4227_v15, %v4229_v39  ;;  %v3501_v46 = vld [vmem:[#allocation2 + $0x98] sm:$0xff] }
 0x4eb   : > { %v4662_v44 = vsel %vm3490_vm0, %v4645_v38, 0.0  ;;  %v4841_v0 = vmax.f32 %v4833_v16, 0.0  ;;  %v4363_v41 = vadd.f32 %v4323_v59, %v3982_v14  ;;  %v3518_v59 = vld [vmem:[#allocation2 + $0x1c8] sm:$0xff]  ;;  %v8082_v16 = vld [vmem:[#allocation2 + $0x38] sm:$0xff]  ;;  %v4267_v60 = vadd.f32 %v4230_v13, %v7615_v49 }
 0x4ec   : > { %v4703_v29 = vrot.slane %v4662_v44, 7  ;;  %v3563_v50 = vrot.slane %v3518_v59, 1  ;;  %v3565_v15 = vrot.slane %v8082_v16, 1 }
 0x4ed   : > { %v4560_v7 = vpop.permute.xlu1 %4559  ;;  %v4858_v56 = vrot.slane %v4841_v0, 6  ;;  %v8120_v39 = vpop.permute.xlu2 %4565 }
 0x4ee   : > { %v4704_v9 = vsel %vm3643_vm1, %v4701_v21, %v4703_v29  ;;  %v4606_v17 = vrot.slane %v4560_v7, 1  ;;  %v3564_v5 = vsel %vm3541_vm4, %v3561_v31, %v3563_v50 }
 0x4ef   : > { %v4744_v36 = vadd.f32 %v4704_v9, %v4363_v41  ;;  %v8070_v20 = vsel %vm4859_vm6, %v4858_v56, %v4857_v8  ;;  %v4327_v8 = vsel %vm3826_vm3, %v4324_v26, %v4326_v30  ;;  %v4268_v41 = vadd.f32 %v4232_v6, %v7626_v28  ;;  %v8112_v56 = vld [vmem:[#allocation2 + $0x280] sm:$0xff] }
 0x4f0   : > { %v4607_v61 = vsel %vm3541_vm4, %v4604_v51, %v4606_v17  ;;  %v4609_v40 = vsel %vm3541_vm4, %v4606_v17, %v4608_v24  ;;  %v4325_v51 = vsel %vm3826_vm3, %v4322_v52, %v4324_v26  ;;  %v4365_v34 = vadd.f32 %v4327_v8, %v3984_v37 }
 0x4f1   : > { %v4762_v21 = vadd.f32 %v7950_v33, %v4744_v36  ;;  %v4646_v58 = vadd.f32 %v4607_v61, %v7853_v43  ;;  %v4647_v38 = vadd.f32 %v4609_v40, %v7862_v11  ;;  %v4364_v18 = vadd.f32 %v4325_v51, %v3983_v42  ;;  %v3502_v61 = vld [vmem:[#allocation2 + $0x1c0] sm:$0xff]  ;;  %v8122_v40 = vld [vmem:[#allocation2 + $0x170] sm:$0xff] }
 0x4f2   : > { %v4284_v28 = vsel %vm3490_vm0, %v4267_v60, 0.0  ;;  %v8118_v32 = vsel %vm3490_vm0, %v4268_v41, 0.0  ;;  %v3601_v36 = vadd.f32 %v3564_v5, %v3501_v46  ;;  %v4612_v51 = vrot.slane %v8120_v39, 1  ;;  %v8550_v5 = vld [vmem:[#allocation33_spill] sm:$0xff] }
 0x4f3   : > { %v4792_v43 = vmax.f32 %v4761_v4, %v4762_v21  ;;  %v4663_v11 = vsel %vm3490_vm0, %v4646_v58, 0.0  ;;  %v8091_v54 = vsel %vm3490_vm0, %v4647_v38, 0.0  ;;  %v3567_v21 = vrot.slane %v8112_v56, 1 }
 0x4f4   : > { %v4705_v52 = vrot.slane %v4663_v11, 7  ;;  %v4707_v14 = vrot.slane %v8091_v54, 7  ;;  %v4328_v59 = vrot.slane %v4284_v28, 5  ;;  %v4330_v37 = vrot.slane %v8118_v32, 5 }
 0x4f5   : > { %v4793_v44 = vrot.slane %v4792_v43, 4  ;;  %v3569_v13 = vrot.slane %v8122_v40, 1 }
 0x4f6   : > { %v4706_v26 = vsel %vm3643_vm1, %v4703_v29, %v4705_v52  ;;  %v4708_v0 = vsel %vm3643_vm1, %v4705_v52, %v4707_v14  ;;  %v3566_v29 = vsel %vm3541_vm4, %v3563_v50, %v3565_v15  ;;  %v8547_v50 = vld [vmem:[#allocation30_spill] sm:$0xff]  ;;  %v4329_v48 = vsel %vm3826_vm3, %v4326_v30, %v4328_v59 }
 0x4f7   : > { %v4794_v55 = vmax.f32 %v4792_v43, %v4793_v44  ;;  %v4745_v7 = vadd.f32 %v4706_v26, %v4364_v18  ;;  %v4746_v23 = vadd.f32 %v4708_v0, %v4365_v34  ;;  %v3602_v4 = vadd.f32 %v3566_v29, %v3502_v61  ;;  %v8546_v43 = vld [vmem:[#allocation18_spill] sm:$0xff]  ;;  %v8548_v34 = vld [vmem:[#allocation45_spill] sm:$0xff]  ;;  %v8549_v0 = vld [vmem:[#allocation35_spill] sm:$0xff] }
 0x4f8   : > { %v3856_v11 = vrot.slane %v8546_v43, 5  ;;  %v3985_v18 = vadd.f32 %v8547_v50, %v3601_v36  ;;  %v3854_v44 = vrot.slane %v8548_v34, 5  ;;  %v4235_v61 = vrot.slane %v7933_v62, 3  ;;  %v8553_v50 = vld [vmem:[#allocation62_spill] sm:$0xff]  ;;  %v8554_v34 = vld [vmem:[#allocation59_spill] sm:$0xff] }
 0x4f9   : > { %v4795_v9 = vrot.slane %v4794_v55, 2  ;;  %v4763_v17 = vadd.f32 %v7948_v19, %v4745_v7  ;;  %v4764_v49 = vadd.f32 %v7950_v33, %v4746_v23  ;;  %v3986_v41 = vadd.f32 %v8549_v0, %v3602_v4 }
 0x4fa   : > { %v3857_v29 = vsel %vm3826_vm3, %v3854_v44, %v3856_v11  ;;  %v3891_v54 = vadd.f32 %v3856_v11, %v8553_v50 }
 0x4fb   : > { %v4796_v31 = vmax.f32 %v4794_v55, %v4795_v9  ;;  %v4799_v25 = vmax.f32 %v4763_v17, %v4764_v49  ;;  %v8551_v9 = vrot.slane %v8550_v5, 5 }
 0x4fd   : > { %v4797_v58 = vrot.slane %v4796_v31, 1  ;;  %v4800_v38 = vrot.slane %v4799_v25, 4  ;;  %v4564_v42 = vpop.permute.xlu1 %4563  ;;  %v3855_v17 = vsel %vm3826_vm3, %v8551_v9, %v3854_v44  ;;  %v3890_v44 = vadd.f32 %v3857_v29, %v8554_v34 }
 0x4fe   : > { %v4610_v8 = vrot.slane %v4564_v42, 1  ;;  %v3522_v42 = vld [vmem:[#allocation2 + $0x200] sm:$0xff]  ;;  %v3908_v9 = vsel %vm3490_vm0, %v3891_v54, 0.0 }
 0x4ff   : > { %v4798_v6 = vmax.f32 %v4796_v31, %v4797_v58  ;;  %v4801_v52 = vmax.f32 %v4799_v25, %v4800_v38  ;;  %v4366_v31 = vadd.f32 %v4329_v48, %v3985_v18  ;;  %v3571_v0 = vrot.slane %v3522_v42, 1  ;;  %v8556_v48 = vld [vmem:[#allocation43_spill] sm:$0xff]  ;;  %v3504_v42 = vld [vmem:[#allocation2 + $0x2a0] sm:$0xff] }
 0x500   : > { %v4611_v60 = vsel %vm3541_vm4, %v4608_v24, %v4610_v8  ;;  %v4613_v26 = vsel %vm3541_vm4, %v4610_v8, %v4612_v51  ;;  %v4331_v24 = vsel %vm3826_vm3, %v4328_v59, %v4330_v37  ;;  %v4234_v59 = vsel %vm3728_vm2, %v4231_v1, %v4233_v27 }
 0x501   : > { %v4802_v55 = vrot.slane %v4801_v52, 2  ;;  %v4648_v7 = vadd.f32 %v4611_v60, %v7871_v47  ;;  %v4649_v23 = vadd.f32 %v4613_v26, %v7880_v45  ;;  %v4834_v49 = vadd.f32 %v8004_v2, %v4798_v6 }
 0x502   : > { %v4367_v25 = vadd.f32 %v4331_v24, %v3986_v41  ;;  %v3573_v1 = vrot.slane %v3523_v63, 1  ;;  %v8555_v41 = vld [vmem:[#allocation41_spill] sm:$0xff]  ;;  %v3907_v16 = vsel %vm3490_vm0, %v3890_v44, 0.0  ;;  %v3957_v63 = vrot.slane %v3908_v9, 3 }
 0x503   : > { %v4803_v56 = vmax.f32 %v4801_v52, %v4802_v55  ;;  %v4665_v47 = vsel %vm3490_vm0, %v4648_v7, 0.0  ;;  %v8155_v45 = vsel %vm3490_vm0, %v4649_v23, 0.0  ;;  %v4842_v28 = vmax.f32 %v4834_v49, 0.0  ;;  %v8552_v52 = vld [vmem:[#allocation56_spill] sm:$0xff] }
 0x504   : > { %v4709_v46 = vrot.slane %v4665_v47, 7  ;;  %v4711_v30 = vrot.slane %v8155_v45, 7  ;;  %v3889_v62 = vadd.f32 %v3855_v17, %v8552_v52  ;;  %v4269_v55 = vadd.f32 %v4234_v59, %v8555_v41  ;;  %v3505_v59 = vld [vmem:[#allocation2] sm:$0xff]  ;;  %v8561_v41 = vld [vmem:[#allocation39_spill] sm:$0xff] }
 0x505   : > { %v4804_v36 = vrot.slane %v4803_v56, 1  ;;  %v4861_v38 = vrot.slane %v4842_v28, 5  ;;  %v4236_v7 = vsel %vm3728_vm2, %v4233_v27, %v4235_v61  ;;  %v4572_v27 = vpop.permute.xlu2 %4571  ;;  %v8557_v28 = vld [vmem:[#allocation14_spill] sm:$0xff] }
 0x506   : > { %v4710_v4 = vsel %vm3643_vm1, %v4707_v14, %v4709_v46  ;;  %v4712_v58 = vsel %vm3643_vm1, %v4709_v46, %v4711_v30  ;;  %v4237_v14 = vrot.slane %v7946_v22, 3  ;;  %v3568_v22 = vsel %vm3541_vm4, %v3565_v15, %v3567_v21 }
 0x507   : > { %v4747_v8 = vadd.f32 %v4710_v4, %v4366_v31  ;;  %v4748_v43 = vadd.f32 %v4712_v58, %v4367_v25  ;;  %v4805_v6 = vmax.f32 %v4803_v56, %v4804_v36  ;;  %v4863_v18 = vsel %vm4862_vm7, %v4861_v38, %v8070_v20  ;;  %v8558_v25 = vld [vmem:[#allocation16_spill] sm:$0xff] }
 0x508   : > { %v3570_v20 = vsel %vm3541_vm4, %v3567_v21, %v3569_v13  ;;  %v3906_v5 = vsel %vm3490_vm0, %v3889_v62, 0.0  ;;  %v4238_v17 = vsel %vm3728_vm2, %v4235_v61, %v4237_v14  ;;  %v4270_v15 = vadd.f32 %v4236_v7, %v8556_v48 }
 0x509   : > { %v4765_v60 = vadd.f32 %v7948_v19, %v4747_v8  ;;  %v4766_v26 = vadd.f32 %v7950_v33, %v4748_v43  ;;  %v4835_v10 = vadd.f32 %v8004_v2, %v4805_v6  ;;  %v3572_v21 = vsel %vm3541_vm4, %v3569_v13, %v3571_v0  ;;  %v3503_v13 = vld [vmem:[#allocation2 + $0x1f8] sm:$0xff] }
 0x50a   : > { %v3574_v56 = vsel %vm3541_vm4, %v3571_v0, %v3573_v1  ;;  %v4286_v47 = vsel %vm3490_vm0, %v4269_v55, 0.0  ;;  %v4271_v31 = vadd.f32 %v4238_v17, %v8557_v28  ;;  %v4272_v36 = vadd.f32 %v4237_v14, %v8558_v25 }
 0x50b   : > { %v4806_v11 = vmax.f32 %v4765_v60, %v4766_v26  ;;  %v4843_v23 = vmax.f32 %v4835_v10, 0.0  ;;  %v3953_v58 = vrot.slane %v3906_v5, 3  ;;  %v3955_v38 = vrot.slane %v3907_v16, 3  ;;  %v8559_v60 = vld [vmem:[#allocation37_spill] sm:$0xff] }
 0x50c   : > { %v4287_v8 = vsel %vm3490_vm0, %v4270_v15, 0.0  ;;  %v4618_v6 = vrot.slane %v4572_v27, 1  ;;  %v3603_v62 = vadd.f32 %v3568_v22, %v3503_v13  ;;  %v3604_v50 = vadd.f32 %v3570_v20, %v3504_v42 }
 0x50d   : > { %v4807_v24 = vrot.slane %v4806_v11, 4  ;;  %v4568_v49 = vpop.permute.xlu0 %4567  ;;  %v4864_v29 = vrot.slane %v4843_v23, 4  ;;  %v3605_v54 = vadd.f32 %v3572_v21, %v3505_v59  ;;  %v4332_v14 = vrot.slane %v4286_v47, 5 }
 0x50e   : > { %v4614_v46 = vrot.slane %v4568_v49, 1  ;;  %v4288_v39 = vsel %vm3490_vm0, %v4271_v31, 0.0  ;;  %v8560_v26 = vrot.slane %v8559_v60, 3  ;;  %v3956_v1 = vsel %vm3728_vm2, %v3953_v58, %v3955_v38 }
 0x50f   : > { %v4808_v61 = vmax.f32 %v4806_v11, %v4807_v24  ;;  %v8201_v4 = vsel %vm4865_vm8, %v4864_v29, %v4863_v18  ;;  %v3506_v18 = vld [vmem:[#allocation2 + $0xb0] sm:$0xff]  ;;  %v4334_v0 = vrot.slane %v4287_v8, 5  ;;  %v3987_v55 = vadd.f32 %v8561_v41, %v3603_v62 }
 0x510   : > { %v4615_v40 = vsel %vm3541_vm4, %v4612_v51, %v4614_v46  ;;  %v4289_v51 = vsel %vm3490_vm0, %v4272_v36, 0.0  ;;  %v3954_v10 = vsel %vm3728_vm2, %v8560_v26, %v3953_v58  ;;  %v3958_v7 = vsel %vm3728_vm2, %v3955_v38, %v3957_v63 }
 0x511   : > { %v4809_v43 = vrot.slane %v4808_v61, 2  ;;  %v4650_v52 = vadd.f32 %v4615_v40, %v7891_v57  ;;  %v3606_v57 = vadd.f32 %v3574_v56, %v3506_v18  ;;  %v4653_v22 = vadd.f32 %v4618_v6, %v7922_v53 }
 0x512   : > { %v4336_v23 = vrot.slane %v4288_v39, 5  ;;  %v4338_v5 = vrot.slane %v4289_v51, 5  ;;  %v3988_v16 = vadd.f32 %v3954_v10, %v3604_v50  ;;  %v3989_v48 = vadd.f32 %v3956_v1, %v3605_v54 }
 0x513   : > { %v4810_v34 = vmax.f32 %v4808_v61, %v4809_v43  ;;  %v4667_v44 = vsel %vm3490_vm0, %v4650_v52, 0.0  ;;  %v4333_v15 = vsel %vm3826_vm3, %v4330_v37, %v4332_v14  ;;  %v3990_v49 = vadd.f32 %v3958_v7, %v3606_v57 }
 0x514   : > { %v4713_v9 = vrot.slane %v4667_v44, 7  ;;  %v4335_v29 = vsel %vm3826_vm3, %v4332_v14, %v4334_v0  ;;  %v4670_v56 = vsel %vm3490_vm0, %v4653_v22, 0.0  ;;  %v4368_v32 = vadd.f32 %v4333_v15, %v3987_v55 }
 0x515   : > { %v4570_v20 = vpop.permute.xlu1 %4569  ;;  %v4811_v11 = vrot.slane %v4810_v34, 1  ;;  %v4337_v37 = vsel %vm3826_vm3, %v4334_v0, %v4336_v23  ;;  %v4339_v31 = vsel %vm3826_vm3, %v4336_v23, %v4338_v5  ;;  %v4369_v25 = vadd.f32 %v4335_v29, %v3988_v16 }
 0x516   : > { %v4616_v17 = vrot.slane %v4570_v20, 1  ;;  %v4370_v63 = vadd.f32 %v4337_v37, %v3989_v48  ;;  %v4371_v40 = vadd.f32 %v4339_v31, %v3990_v49 }
 0x517   : > { %v4812_v24 = vmax.f32 %v4810_v34, %v4811_v11 }
 0x518   : > { %v4617_v21 = vsel %vm3541_vm4, %v4614_v46, %v4616_v17  ;;  %v4619_v53 = vsel %vm3541_vm4, %v4616_v17, %v4618_v6  ;;  %v4714_v46 = vsel %vm3643_vm1, %v4711_v30, %v4713_v9 }
 0x519   : > { %v4651_v47 = vadd.f32 %v4617_v21, %v7904_v35  ;;  %v4652_v27 = vadd.f32 %v4619_v53, %v7917_v3  ;;  %v4836_v28 = vadd.f32 %v8004_v2, %v4812_v24  ;;  %v4719_v3 = vrot.slane %v4670_v56, 7 }
 0x51a   : > { %v4749_v13 = vadd.f32 %v4714_v46, %v4368_v32 }
 0x51b   : > { %v4668_v36 = vsel %vm3490_vm0, %v4651_v47, 0.0  ;;  %v4669_v35 = vsel %vm3490_vm0, %v4652_v27, 0.0  ;;  %v4844_v61 = vmax.f32 %v4836_v28, 0.0 }
 0x51c   : > { %v4715_v58 = vrot.slane %v4668_v36, 7  ;;  %v4717_v38 = vrot.slane %v4669_v35, 7  ;;  %v4767_v52 = vadd.f32 %v7948_v19, %v4749_v13 }
 0x51d   : > { %v4867_v42 = vrot.slane %v4844_v61, 3 }
 0x51e   : > { %v4716_v45 = vsel %vm3643_vm1, %v4713_v9, %v4715_v58  ;;  %v4718_v30 = vsel %vm3643_vm1, %v4715_v58, %v4717_v38  ;;  %v4720_v59 = vsel %vm3643_vm1, %v4717_v38, %v4719_v3 }
 0x51f   : > { %v4750_v8 = vadd.f32 %v4716_v45, %v4369_v25  ;;  %v4751_v43 = vadd.f32 %v4718_v30, %v4370_v63  ;;  %v4752_v6 = vadd.f32 %v4720_v59, %v4371_v40  ;;  %v4869_v12 = vsel %vm4868_vm9, %v4867_v42, %v8201_v4 }
 0x521   : > { %v4768_v62 = vadd.f32 %v7950_v33, %v4750_v8  ;;  %v4769_v50 = vadd.f32 %v7948_v19, %v4751_v43  ;;  %v4770_v54 = vadd.f32 %v7950_v33, %v4752_v6 }
 0x523   : > { %v4813_v14 = vmax.f32 %v4767_v52, %v4768_v62  ;;  %v4820_v18 = vmax.f32 %v4769_v50, %v4770_v54 }
 0x525   : > { %v4814_v39 = vrot.slane %v4813_v14, 4  ;;  %v4821_v51 = vrot.slane %v4820_v18, 4 }
 0x527   : > { %v4815_v34 = vmax.f32 %v4813_v14, %v4814_v39  ;;  %v4822_v44 = vmax.f32 %v4820_v18, %v4821_v51 }
 0x529   : > { %v4816_v60 = vrot.slane %v4815_v34, 2  ;;  %v4823_v26 = vrot.slane %v4822_v44, 2 }
 0x52b   : > { %v4817_v10 = vmax.f32 %v4815_v34, %v4816_v60  ;;  %v4824_v4 = vmax.f32 %v4822_v44, %v4823_v26 }
 0x52d   : > { %v4818_v57 = vrot.slane %v4817_v10, 1  ;;  %v4825_v1 = vrot.slane %v4824_v4, 1 }
 0x52f   : > { %v4819_v0 = vmax.f32 %v4817_v10, %v4818_v57  ;;  %v4826_v41 = vmax.f32 %v4824_v4, %v4825_v1 }
 0x531   : > { %v4837_v19 = vadd.f32 %v8004_v2, %v4819_v0  ;;  %v4838_v33 = vadd.f32 %v8004_v2, %v4826_v41 }
 0x533   : > { %v4845_v55 = vmax.f32 %v4837_v19, 0.0  ;;  %v4846_v7 = vmax.f32 %v4838_v33, 0.0 }
 0x535   : > { %v4870_v22 = vrot.slane %v4845_v55, 2  ;;  %v4873_v20 = vrot.slane %v4846_v7, 1 }
 0x537   : > { %v4872_v11 = vsel %vm4871_vm10, %v4870_v22, %v4869_v12 }
 0x538   : > { %v4875_v23 = vsel %vm4874_vm11, %v4873_v20, %v4872_v11 }
 0x539   : > { %4877 = vst [vmem:[%s251_s29] sm:$0xff] %v4875_v23 }
 0x53a   : > { %6411 = shalt.err (!%p6408_p10)
}
 0x53b   : > { %6228 = dma.vmem_to_hbm [thread:$0]  (%p6560_p5), %s4892_s30, 128, %s4894_s27, %s4879_s19  }
 0x53c PF: > { %s4905_s5 = sand.u32 1, %s6442_s15   ;;  %p8562_p12 = scmp.ge.s32.totalorder %s6454_s18, 2 }
 0x53d   : > { %s4906_s28 = scalar_lea.sflag [#allocation5], %s4905_s5 }
 0x53e   : > { %p6242_p13 = pnand %p8562_p12, %p6526_p6 }
 0x540   : > { %p6243_p0 = pneg %p6242_p13 }
 0x542   : > { %6437 = dma.done.wait (%p6243_p0), %s4906_s28, 128  }
 0x543   : > { %6439 = vsyncadd (%p6243_p0), %s4906_s28, 4294967168  ;;  %p18_p3 = scmp.ge.s32.totalorder %s6547_s12, 4   ;;  %s8563_s15 = smov %s6446_s16 }
 0x544   : > { %s8564_s16 = smov %s6450_s17  ;;  %s8565_s17 = smov %s6556_s20 }
 0x545   : > { %s8566_s18 = smov %s6547_s12  ;;  %20 = sbr.rel (!%p18_p3) target bundleno = 6 (0x6), region = 89 }
 0x54a   :  { %4912 = vsyncpa [#allocation4], 1 }
 0x54b   :  { %4914 = vsyncpa [#allocation4 + $0x1], 1 }
 0x54c   :  { %4915 = vsyncpa [#allocation7], 1 }
 0x54d   :  { %4916 = vsyncpa [#allocation5], 1 }
 0x54e   :  { %4918 = vsyncpa [#allocation5 + $0x1], 1 }

</bundles_post_ra>
